<compile_context>
chip_gen: v6e
topology: v6e:2x2x1
jax: 0.10.0
libtpu: 0.0.40
codegen_flags: <defaults>
</compile_context>

<pallas_src>
import functools

import jax
import jax.numpy as jnp
from jax.experimental import pallas as pl
from jax.experimental.pallas import tpu as pltpu

# Single explicit scoped-VMEM limit: above v5e's 16 MiB scoped default, below
# v7x's 64 MiB physical VMEM (worst-case working set here is ~30 MiB).
_VMEM_LIMIT = 48 * 1024 * 1024


def _round_up(x, m):
    return (x + m - 1) // m * m


def _choose_tm(m):
    """M tile for the im2col matmul: multiple of 16, <=2048, >=2 tiles."""
    half = _round_up(max((m + 1) // 2, 16), 16)
    return min(2048, half)


def _cp(sem):
    return pltpu.CompilerParams(dimension_semantics=sem,
                                vmem_limit_bytes=_VMEM_LIMIT)


# ----------------------------- Pallas kernels -------------------------------

def _matmul_stats_kernel(p_ref, w_ref, y_ref, s_ref):
    """Layer-1 pass 1: bf16 patches-tile @ bf16 weights (f32 acc).

    Zero-padded patch rows contribute exactly zero to the per-channel sums, so
    no masking is needed (conv bias is folded away -> cancels under train BN).
    """
    z = jnp.dot(p_ref[...], w_ref[...], preferred_element_type=jnp.float32)
    y_ref[...] = z.astype(y_ref.dtype)
    s_ref[0] = jnp.concatenate(
        [jnp.sum(z, axis=0, keepdims=True),
         jnp.sum(z * z, axis=0, keepdims=True)], axis=0)


def _fused_conv_kernel(x_ref, w_ref, y_ref, s_ref, acc_ref, *,
                       kh, cin, ow_pad, l_rows):
    """Fused 5x5 stride-1 conv, gridded over (image, dx window column).

    x_ref : (1, H*OW_pad, Cin) bf16  dx-shifted slab (junk columns are zero)
    w_ref : (1, KH*Cin, Cout) bf16   weights for this dx (dy-major, then cin)
    y_ref : (1, OH*OW_pad, Cout) bf16  pre-BN output (written at last dx)
    s_ref : (1, 2, Cout) f32          per-image (sum, sum_sq) of pre-BN output
    acc   : (OH*OW_pad, Cout) f32     VMEM accumulator across the dx axis
    """
    dx = pl.program_id(1)

    @pl.when(dx == 0)
    def _():
        acc_ref[...] = jnp.zeros_like(acc_ref)

    for dy in range(kh):                       # aligned static slices -> views
        lhs = x_ref[0, dy * ow_pad: dy * ow_pad + l_rows, :]
        rhs = w_ref[0, dy * cin: (dy + 1) * cin, :]
        acc_ref[...] += jnp.dot(lhs, rhs, preferred_element_type=jnp.float32)

    @pl.when(dx == pl.num_programs(1) - 1)
    def _():
        z = acc_ref[...]
        y_ref[0] = z.astype(y_ref.dtype)
        # Junk (column-padded) positions are exactly zero, so plain sums give
        # the exact batch statistics over the real output positions.
        s_ref[0] = jnp.concatenate(
            [jnp.sum(z, axis=0, keepdims=True),
             jnp.sum(z * z, axis=0, keepdims=True)], axis=0)


def _bn_relu_flat_kernel(y_ref, sc_ref, sh_ref, o_ref):
    """Per-channel affine (gamma*rstd, beta-mu*gamma*rstd) + ReLU, flat tiles."""
    y = y_ref[...].astype(jnp.float32)
    o_ref[...] = jnp.maximum(y * sc_ref[...] + sh_ref[...], 0.0).astype(o_ref.dtype)


def _bn_relu_img_kernel(y_ref, sc_ref, sh_ref, o_ref, *, ow):
    """Per-image BN affine + ReLU that also drops the OW_pad column padding."""
    y = y_ref[0, :, :ow, :].astype(jnp.float32)
    o_ref[0] = jnp.maximum(y * sc_ref[0] + sh_ref[0], 0.0).astype(o_ref.dtype)


def _spatial_softmax_kernel(x_ref, px_ref, py_ref, sm_ref, ex_ref, ey_ref):
    x = x_ref[...].astype(jnp.float32)                      # (1, C, S)
    m = jnp.max(x, axis=-1, keepdims=True)
    e = jnp.exp(x - m)
    denom = jnp.sum(e, axis=-1, keepdims=True)
    inv = pl.reciprocal(denom, approx=False)                # exact; softmax sums == 1
    sm = e * inv
    sm_ref[...] = sm
    c = x.shape[1]
    ex_ref[...] = jnp.sum(sm * px_ref[...], axis=-1).reshape(1, 1, c)
    ey_ref[...] = jnp.sum(sm * py_ref[...], axis=-1).reshape(1, 1, c)


# ------------------------------ JAX wrappers ---------------------------------

def _bn_affine(sums, n, gamma, beta, cout):
    """Exact biased batch statistics -> per-channel scale/shift (f32)."""
    mean = sums[0] / n
    var = jnp.maximum(sums[1] / n - mean * mean, 0.0)
    rstd = jax.lax.rsqrt(var + 1e-5)
    scale = (gamma * rstd).reshape(1, cout).astype(jnp.float32)
    shift = (beta - mean * gamma * rstd).reshape(1, cout).astype(jnp.float32)
    return scale, shift


def _conv_bn_relu_im2col(x_nhwc, w, gamma, beta, stride):
    """Layer 1: VALID conv (stride) + train-mode BN + ReLU via tiled matmul."""
    B, H, W, Cin = x_nhwc.shape
    Cout, _, KH, KW = w.shape
    OH = (H - KH) // stride + 1
    OW = (W - KW) // stride + 1
    M = B * OH * OW
    K = KH * KW * Cin

    # im2col glue (feature order (kh, kw, cin)), bf16.  Kept for this layer
    # only (3-channel input, small patch matrix).
    cols = [x_nhwc[:, dy:dy + stride * OH:stride, dx:dx + stride * OW:stride, :]
            for dy in range(KH) for dx in range(KW)]
    p = jnp.stack(cols, axis=3).reshape(M, K).astype(jnp.bfloat16)

    TM = _choose_tm(M)
    n_tiles = -(-M // TM)
    M_pad = n_tiles * TM
    p = jnp.pad(p, ((0, M_pad - M), (0, 0)))
    wmat = jnp.transpose(w, (2, 3, 1, 0)).reshape(K, Cout).astype(jnp.bfloat16)

    y, psum = pl.pallas_call(
        _matmul_stats_kernel,
        grid=(n_tiles,),
        in_specs=[pl.BlockSpec((TM, K), lambda i: (i, 0)),
                  pl.BlockSpec((K, Cout), lambda i: (0, 0))],
        out_specs=(pl.BlockSpec((TM, Cout), lambda i: (i, 0)),
                   pl.BlockSpec((1, 2, Cout), lambda i: (i, 0, 0))),
        out_shape=(jax.ShapeDtypeStruct((M_pad, Cout), jnp.bfloat16),
                   jax.ShapeDtypeStruct((n_tiles, 2, Cout), jnp.float32)),
        compiler_params=_cp(("parallel",)),
    )(p, wmat)

    scale, shift = _bn_affine(jnp.sum(psum, axis=0), M, gamma, beta, Cout)

    out = pl.pallas_call(
        _bn_relu_flat_kernel,
        grid=(n_tiles,),
        in_specs=[pl.BlockSpec((TM, Cout), lambda i: (i, 0)),
                  pl.BlockSpec((1, Cout), lambda i: (0, 0)),
                  pl.BlockSpec((1, Cout), lambda i: (0, 0))],
        out_specs=pl.BlockSpec((TM, Cout), lambda i: (i, 0)),
        out_shape=jax.ShapeDtypeStruct((M_pad, Cout), jnp.bfloat16),
        compiler_params=_cp(("parallel",)),
    )(y, scale, shift)

    return out[:M].reshape(B, OH, OW, Cout)


def _conv_bn_relu_fused(a_nhwc, w, gamma, beta):
    """Layers 2/3: fused-gather 5x5 stride-1 conv + train-mode BN + ReLU."""
    B, H, W, Cin = a_nhwc.shape
    Cout, _, KH, KW = w.shape
    OH, OW = H - KH + 1, W - KW + 1
    OW_pad = _round_up(OW, 16)               # bf16 sublane-tile aligned row stride
    rows_in = H * OW_pad
    L = OH * OW_pad

    # KW dx-shifted slabs (only KW x the activation, not KH*KW x like im2col);
    # columns ow >= OW are zeroed so they contribute nothing to conv or stats.
    a = a_nhwc.astype(jnp.bfloat16)
    a = jnp.pad(a, ((0, 0), (0, 0), (0, OW_pad + KW - 1 - W), (0, 0)))
    col_ok = (jnp.arange(OW_pad) < OW)[None, None, :, None]
    slabs = jnp.stack([jnp.where(col_ok, a[:, :, dx:dx + OW_pad, :], 0)
                       for dx in range(KW)], axis=1)       # (B, KW, H, OW_pad, Cin)
    x_sh = slabs.reshape(B * KW, rows_in, Cin)

    # weights: (Cout, Cin, KH, KW) -> (KW, KH*Cin, Cout), dy-major then cin.
    w_mat = jnp.transpose(w, (3, 2, 1, 0)).reshape(KW, KH * Cin, Cout)
    w_mat = w_mat.astype(jnp.bfloat16)

    kern = functools.partial(_fused_conv_kernel, kh=KH, cin=Cin,
                             ow_pad=OW_pad, l_rows=L)
    y, psum = pl.pallas_call(
        kern,
        grid=(B, KW),
        in_specs=[pl.BlockSpec((1, rows_in, Cin), lambda b, dx: (b * KW + dx, 0, 0)),
                  pl.BlockSpec((1, KH * Cin, Cout), lambda b, dx: (dx, 0, 0))],
        out_specs=(pl.BlockSpec((1, L, Cout), lambda b, dx: (b, 0, 0)),
                   pl.BlockSpec((1, 2, Cout), lambda b, dx: (b, 0, 0))),
        out_shape=(jax.ShapeDtypeStruct((B, L, Cout), jnp.bfloat16),
                   jax.ShapeDtypeStruct((B, 2, Cout), jnp.float32)),
        scratch_shapes=[pltpu.VMEM((L, Cout), jnp.float32)],
        compiler_params=_cp(("parallel", "arbitrary")),
    )(x_sh, w_mat)

    scale, shift = _bn_affine(jnp.sum(psum, axis=0), B * OH * OW, gamma, beta, Cout)

    # BN affine + ReLU + removal of the OW_pad column padding, per image.
    y4 = y.reshape(B, OH, OW_pad, Cout)
    out = pl.pallas_call(
        functools.partial(_bn_relu_img_kernel, ow=OW),
        grid=(B,),
        in_specs=[pl.BlockSpec((1, OH, OW_pad, Cout), lambda b: (b, 0, 0, 0)),
                  pl.BlockSpec((1, Cout), lambda b: (0, 0)),
                  pl.BlockSpec((1, Cout), lambda b: (0, 0))],
        out_specs=pl.BlockSpec((1, OH, OW, Cout), lambda b: (b, 0, 0, 0)),
        out_shape=jax.ShapeDtypeStruct((B, OH, OW, Cout), jnp.bfloat16),
        compiler_params=_cp(("parallel",)),
    )(y4, scale, shift)
    return out


def spatial_softmax(x_bcs, pos_x_flat, pos_y_flat):
    B, C, S = x_bcs.shape
    sm, ex, ey = pl.pallas_call(
        _spatial_softmax_kernel,
        grid=(B,),
        in_specs=[pl.BlockSpec((1, C, S), lambda b: (b, 0, 0)),
                  pl.BlockSpec((1, 1, S), lambda b: (0, 0, 0)),
                  pl.BlockSpec((1, 1, S), lambda b: (0, 0, 0))],
        out_specs=(pl.BlockSpec((1, C, S), lambda b: (b, 0, 0)),
                   pl.BlockSpec((1, 1, C), lambda b: (b, 0, 0)),
                   pl.BlockSpec((1, 1, C), lambda b: (b, 0, 0))),
        out_shape=(jax.ShapeDtypeStruct((B, C, S), jnp.float32),
                   jax.ShapeDtypeStruct((B, 1, C), jnp.float32),
                   jax.ShapeDtypeStruct((B, 1, C), jnp.float32)),
        compiler_params=_cp(("parallel",)),
    )(x_bcs, pos_x_flat.reshape(1, 1, S), pos_y_flat.reshape(1, 1, S))
    return sm, ex[:, 0, :], ey[:, 0, :]


def spatial_autoencoder_forward(x, params, H, W):
    """Mirrors SpatialAutoencoder.forward with need_decoder=False.

    Conv biases (params b1/b2/b3) are accepted but unused: a per-channel
    constant added right before train-mode BatchNorm cancels exactly, so the
    forward output is mathematically unchanged.
    """
    x = x.reshape(-1, 3, H, W)                       # x.view(-1, 3, H, W)
    B = x.shape[0]
    x = jnp.transpose(x, (0, 2, 3, 1))               # single NCHW->NHWC

    h1 = _conv_bn_relu_im2col(x, params["w1"], params["g1"], params["be1"], stride=2)
    h2 = _conv_bn_relu_fused(h1, params["w2"], params["g2"], params["be2"])
    h3 = _conv_bn_relu_fused(h2, params["w3"], params["g3"], params["be3"])

    _, sh, sw, C = h3.shape                          # C == 16
    S = sh * sw
    x_flat = jnp.transpose(h3, (0, 3, 1, 2)).reshape(B, C, S)

    # setup_pixel_maps(): meshgrid(linspace(-1,1,W'), linspace(-1,1,H')) built
    # from the actual conv output size (equals the hard-coded 109 x final_width
    # grid for the module's real 240x320 inputs).
    pos_x, pos_y = jnp.meshgrid(jnp.linspace(-1.0, 1.0, sw),
                                jnp.linspace(-1.0, 1.0, sh))
    sm, expected_x, expected_y = spatial_softmax(
        x_flat, pos_x.reshape(-1).astype(jnp.float32),
        pos_y.reshape(-1).astype(jnp.float32))

    features = jnp.concatenate([expected_x, expected_y], axis=1)   # (B, 2*C)
    softmax_activations = sm.reshape(B, C, sh, sw)

    # need_decoder=False branch of the reference module.
    reconstructed = jnp.zeros((1,), jnp.float32)
    down_sampled_gray = jnp.zeros((1, 1), jnp.float32)             # zeros(1).view(1,-1)
    # TODO(synk): x/y_features_indices are computed but unused upstream; omitted.
    return features, reconstructed, down_sampled_gray, softmax_activations


# ---------------------------------- main -------------------------------------

if __name__ == "__main__":
    key = jax.random.PRNGKey(0)
    ks = jax.random.split(key, 16)

    B, H, W = 2, 30, 32        # small synthetic spatial size; conv chain -> 4x5 map
    x = jax.random.normal(ks[0], (B, 3, H, W), jnp.float32)

    def bn_params(k, c):
        k1, k2 = jax.random.split(k)
        return (1.0 + 0.1 * jax.random.normal(k1, (c,), jnp.float32),
                0.1 * jax.random.normal(k2, (c,), jnp.float32))

    g1, be1 = bn_params(ks[4], 64)
    g2, be2 = bn_params(ks[5], 32)
    g3, be3 = bn_params(ks[6], 16)

    params = {
        "w1": 0.05 * jax.random.normal(ks[1], (64, 3, 7, 7), jnp.float32),
        "b1": 0.05 * jax.random.normal(ks[7], (64,), jnp.float32),   # unused: cancels under train-mode BN
        "g1": g1, "be1": be1,
        "w2": 0.05 * jax.random.normal(ks[2], (32, 64, 5, 5), jnp.float32),
        "b2": 0.05 * jax.random.normal(ks[8], (32,), jnp.float32),   # unused
        "g2": g2, "be2": be2,
        "w3": 0.05 * jax.random.normal(ks[3], (16, 32, 5, 5), jnp.float32),
        "b3": 0.05 * jax.random.normal(ks[9], (16,), jnp.float32),   # unused
        "g3": g3, "be3": be3,
    }

    fwd = jax.jit(lambda xx, pp: spatial_autoencoder_forward(xx, pp, H, W))
    features, reconstructed, gray, softmax_acts = fwd(x, params)
    jax.block_until_ready((features, reconstructed, gray, softmax_acts))

    assert features.shape == (B, 32)
    assert softmax_acts.shape == (B, 16, 4, 5)
    assert reconstructed.shape == (1,) and gray.shape == (1, 1)
    assert bool(jnp.all(jnp.isfinite(features)))
    # softmax over spatial dims sums to 1 per (batch, channel)
    assert bool(jnp.allclose(jnp.sum(softmax_acts, axis=(2, 3)), 1.0, atol=1e-5))

    print("KERNEL_OK")
</pallas_src>

<mosaic_0001>
module attributes {stable_mosaic.version = 11 : i64} {
  func.func @_matmul_stats_kernel(%arg0: i32, %arg1: memref<160x147xbf16, #tpu.memory_space<vmem>>, %arg2: memref<147x64xbf16, #tpu.memory_space<vmem>>, %arg3: memref<160x64xbf16, #tpu.memory_space<vmem>>, %arg4: memref<1x2x64xf32, #tpu.memory_space<vmem>>) attributes {dimension_semantics = [#tpu.dimension_semantics<parallel>], iteration_bounds = array<i64: 2>, scalar_prefetch = 0 : i64, scratch_operands = 0 : i64, tpu.core_type = #tpu.core_type<tc>, window_params = [{transform_indices = @transform_0, window_bounds = array<i64: 160, 147>}, {pipeline_mode = #tpu.pipeline_mode<synchronous>, transform_indices = @transform_1, window_bounds = array<i64: 147, 64>}, {transform_indices = @transform_2, window_bounds = array<i64: 160, 64>}, {transform_indices = @transform_3, window_bounds = array<i64: 1, 2, 64>}]} {
    %c0 = arith.constant 0 : index
    %c0_0 = arith.constant 0 : index
    %0 = vector.load %arg1[%c0, %c0_0] : memref<160x147xbf16, #tpu.memory_space<vmem>>, vector<160x147xbf16>
    %c0_1 = arith.constant 0 : index
    %c0_2 = arith.constant 0 : index
    %1 = vector.load %arg2[%c0_1, %c0_2] : memref<147x64xbf16, #tpu.memory_space<vmem>>, vector<147x64xbf16>
    %cst = arith.constant dense<0.000000e+00> : vector<160x64xf32>
    %2 = tpu.matmul %0, %1, %cst {dimension_numbers = #tpu.dot_dimension_numbers<[1], [0], [0], [1], [0, 0, 1, 1], [], []>} : vector<160x147xbf16>, vector<147x64xbf16>, vector<160x64xf32> -> vector<160x64xf32>
    %3 = arith.truncf %2 : vector<160x64xf32> to vector<160x64xbf16>
    %c0_3 = arith.constant 0 : index
    %c0_4 = arith.constant 0 : index
    %4 = vector.load %arg3[%c0_3, %c0_4] : memref<160x64xbf16, #tpu.memory_space<vmem>>, vector<160x64xbf16>
    tpu.vector_store %arg3[%c0_3, %c0_4], %3 {strides = array<i32>} : memref<160x64xbf16, #tpu.memory_space<vmem>>, vector<160x64xbf16>,
    %cst_5 = arith.constant dense<0.000000e+00> : vector<64xf32>
    %5 = vector.multi_reduction <add>, %2, %cst_5 [0] : vector<160x64xf32> to vector<64xf32>
    %6 = vector.shape_cast %5 : vector<64xf32> to vector<1x64xf32>
    %7 = arith.mulf %2, %2 : vector<160x64xf32>
    %cst_6 = arith.constant dense<0.000000e+00> : vector<64xf32>
    %8 = vector.multi_reduction <add>, %7, %cst_6 [0] : vector<160x64xf32> to vector<64xf32>
    %9 = vector.shape_cast %8 : vector<64xf32> to vector<1x64xf32>
    %10 = tpu.concatenate %6, %9 in 0 : vector<1x64xf32>, vector<1x64xf32> -> vector<2x64xf32>
    %c0_7 = arith.constant 0 : index
    %c0_8 = arith.constant 0 : index
    %c0_9 = arith.constant 0 : index
    %11 = vector.load %arg4[%c0_7, %c0_8, %c0_9] : memref<1x2x64xf32, #tpu.memory_space<vmem>>, vector<1x2x64xf32>
    %12 = vector.shape_cast %11 : vector<1x2x64xf32> to vector<2x64xf32>
    %13 = vector.shape_cast %10 : vector<2x64xf32> to vector<1x2x64xf32>
    tpu.vector_store %arg4[%c0_7, %c0_8, %c0_9], %13 {strides = array<i32>} : memref<1x2x64xf32, #tpu.memory_space<vmem>>, vector<1x2x64xf32>,
    return
  }
  func.func @transform_0(%arg0: i32) -> (i32, i32) {
    %c0_i32 = arith.constant 0 : i32
    %c0_i32_0 = arith.constant 0 : i32
    return %arg0, %c0_i32 : i32, i32
  }
  func.func @transform_1(%arg0: i32) -> (i32, i32) {
    %c0_i32 = arith.constant 0 : i32
    %c0_i32_0 = arith.constant 0 : i32
    %c0_i32_1 = arith.constant 0 : i32
    return %c0_i32, %c0_i32_0 : i32, i32
  }
  func.func @transform_2(%arg0: i32) -> (i32, i32) {
    %c0_i32 = arith.constant 0 : i32
    %c0_i32_0 = arith.constant 0 : i32
    return %arg0, %c0_i32 : i32, i32
  }
  func.func @transform_3(%arg0: i32) -> (i32, i32, i32) {
    %c0_i32 = arith.constant 0 : i32
    %c0_i32_0 = arith.constant 0 : i32
    %c0_i32_1 = arith.constant 0 : i32
    return %arg0, %c0_i32, %c0_i32_0 : i32, i32, i32
  }
}

module attributes {stable_mosaic.version = 11 : i64} {
  func.func @_bn_relu_flat_kernel(%arg0: i32, %arg1: memref<160x64xbf16, #tpu.memory_space<vmem>>, %arg2: memref<1x64xf32, #tpu.memory_space<vmem>>, %arg3: memref<1x64xf32, #tpu.memory_space<vmem>>, %arg4: memref<160x64xbf16, #tpu.memory_space<vmem>>) attributes {dimension_semantics = [#tpu.dimension_semantics<parallel>], iteration_bounds = array<i64: 2>, scalar_prefetch = 0 : i64, scratch_operands = 0 : i64, tpu.core_type = #tpu.core_type<tc>, window_params = [{transform_indices = @transform_0, window_bounds = array<i64: 160, 64>}, {pipeline_mode = #tpu.pipeline_mode<synchronous>, transform_indices = @transform_1, window_bounds = array<i64: 1, 64>}, {pipeline_mode = #tpu.pipeline_mode<synchronous>, transform_indices = @transform_2, window_bounds = array<i64: 1, 64>}, {transform_indices = @transform_3, window_bounds = array<i64: 160, 64>}]} {
    %c0 = arith.constant 0 : index
    %c0_0 = arith.constant 0 : index
    %0 = vector.load %arg1[%c0, %c0_0] : memref<160x64xbf16, #tpu.memory_space<vmem>>, vector<160x64xbf16>
    %1 = arith.extf %0 : vector<160x64xbf16> to vector<160x64xf32>
    %c0_1 = arith.constant 0 : index
    %c0_2 = arith.constant 0 : index
    %2 = vector.load %arg2[%c0_1, %c0_2] : memref<1x64xf32, #tpu.memory_space<vmem>>, vector<1x64xf32>
    %3 = vector.broadcast %2 : vector<1x64xf32> to vector<160x64xf32>
    %4 = arith.mulf %1, %3 : vector<160x64xf32>
    %c0_3 = arith.constant 0 : index
    %c0_4 = arith.constant 0 : index
    %5 = vector.load %arg3[%c0_3, %c0_4] : memref<1x64xf32, #tpu.memory_space<vmem>>, vector<1x64xf32>
    %6 = vector.broadcast %5 : vector<1x64xf32> to vector<160x64xf32>
    %7 = arith.addf %4, %6 : vector<160x64xf32>
    %cst = arith.constant 0.000000e+00 : f32
    %8 = vector.broadcast %cst : f32 to vector<160x64xf32>
    %9 = arith.maximumf %7, %8 : vector<160x64xf32>
    %10 = arith.truncf %9 : vector<160x64xf32> to vector<160x64xbf16>
    %c0_5 = arith.constant 0 : index
    %c0_6 = arith.constant 0 : index
    %11 = vector.load %arg4[%c0_5, %c0_6] : memref<160x64xbf16, #tpu.memory_space<vmem>>, vector<160x64xbf16>
    tpu.vector_store %arg4[%c0_5, %c0_6], %10 {strides = array<i32>} : memref<160x64xbf16, #tpu.memory_space<vmem>>, vector<160x64xbf16>,
    return
  }
  func.func @transform_0(%arg0: i32) -> (i32, i32) {
    %c0_i32 = arith.constant 0 : i32
    %c0_i32_0 = arith.constant 0 : i32
    return %arg0, %c0_i32 : i32, i32
  }
  func.func @transform_1(%arg0: i32) -> (i32, i32) {
    %c0_i32 = arith.constant 0 : i32
    %c0_i32_0 = arith.constant 0 : i32
    %c0_i32_1 = arith.constant 0 : i32
    return %c0_i32, %c0_i32_0 : i32, i32
  }
  func.func @transform_2(%arg0: i32) -> (i32, i32) {
    %c0_i32 = arith.constant 0 : i32
    %c0_i32_0 = arith.constant 0 : i32
    %c0_i32_1 = arith.constant 0 : i32
    return %c0_i32, %c0_i32_0 : i32, i32
  }
  func.func @transform_3(%arg0: i32) -> (i32, i32) {
    %c0_i32 = arith.constant 0 : i32
    %c0_i32_0 = arith.constant 0 : i32
    return %arg0, %c0_i32 : i32, i32
  }
}

module attributes {stable_mosaic.version = 11 : i64} {
  func.func @_fused_conv_kernel(%arg0: i32, %arg1: i32, %arg2: memref<1x192x64xbf16, #tpu.memory_space<vmem>>, %arg3: memref<1x320x32xbf16, #tpu.memory_space<vmem>>, %arg4: memref<1x128x32xbf16, #tpu.memory_space<vmem>>, %arg5: memref<1x2x32xf32, #tpu.memory_space<vmem>>, %arg6: memref<128x32xf32, #tpu.memory_space<vmem>>) attributes {dimension_semantics = [#tpu.dimension_semantics<parallel>, #tpu.dimension_semantics<arbitrary>], iteration_bounds = array<i64: 2, 5>, scalar_prefetch = 0 : i64, scratch_operands = 1 : i64, tpu.core_type = #tpu.core_type<tc>, window_params = [{transform_indices = @transform_0, window_bounds = array<i64: 1, 192, 64>}, {transform_indices = @transform_1, window_bounds = array<i64: 1, 320, 32>}, {transform_indices = @transform_2, window_bounds = array<i64: 1, 128, 32>}, {transform_indices = @transform_3, window_bounds = array<i64: 1, 2, 32>}]} {
    %c0_i32 = arith.constant 0 : i32
    %0 = arith.cmpi eq, %arg1, %c0_i32 : i32
    %1 = arith.extui %0 : i1 to i32
    %c0_i32_0 = arith.constant 0 : i32
    %2 = arith.cmpi ne, %1, %c0_i32_0 : i32
    scf.if %2 {
      %cst_48 = arith.constant 0.000000e+00 : f32
      %46 = vector.broadcast %cst_48 : f32 to vector<128x32xf32>
      %c0_49 = arith.constant 0 : index
      %c0_50 = arith.constant 0 : index
      %47 = vector.load %arg6[%c0_49, %c0_50] : memref<128x32xf32, #tpu.memory_space<vmem>>, vector<128x32xf32>
      tpu.vector_store %arg6[%c0_49, %c0_50], %46 {strides = array<i32>} : memref<128x32xf32, #tpu.memory_space<vmem>>, vector<128x32xf32>,
    } else {
    }
    %c0 = arith.constant 0 : index
    %c0_1 = arith.constant 0 : index
    %c0_2 = arith.constant 0 : index
    %3 = vector.load %arg2[%c0, %c0_1, %c0_2] : memref<1x192x64xbf16, #tpu.memory_space<vmem>>, vector<1x128x64xbf16>
    %4 = vector.shape_cast %3 : vector<1x128x64xbf16> to vector<128x64xbf16>
    %c0_3 = arith.constant 0 : index
    %c0_4 = arith.constant 0 : index
    %c0_5 = arith.constant 0 : index
    %5 = vector.load %arg3[%c0_3, %c0_4, %c0_5] : memref<1x320x32xbf16, #tpu.memory_space<vmem>>, vector<1x64x32xbf16>
    %6 = vector.shape_cast %5 : vector<1x64x32xbf16> to vector<64x32xbf16>
    %c0_6 = arith.constant 0 : index
    %c0_7 = arith.constant 0 : index
    %7 = vector.load %arg6[%c0_6, %c0_7] : memref<128x32xf32, #tpu.memory_space<vmem>>, vector<128x32xf32>
    %cst = arith.constant dense<0.000000e+00> : vector<128x32xf32>
    %8 = tpu.matmul %4, %6, %cst {dimension_numbers = #tpu.dot_dimension_numbers<[1], [0], [0], [1], [0, 0, 1, 1], [], []>} : vector<128x64xbf16>, vector<64x32xbf16>, vector<128x32xf32> -> vector<128x32xf32>
    %9 = arith.addf %7, %8 : vector<128x32xf32>
    %c0_8 = arith.constant 0 : index
    %c0_9 = arith.constant 0 : index
    %10 = vector.load %arg6[%c0_8, %c0_9] : memref<128x32xf32, #tpu.memory_space<vmem>>, vector<128x32xf32>
    tpu.vector_store %arg6[%c0_8, %c0_9], %9 {strides = array<i32>} : memref<128x32xf32, #tpu.memory_space<vmem>>, vector<128x32xf32>,
    %c0_10 = arith.constant 0 : index
    %c16 = arith.constant 16 : index
    %c0_11 = arith.constant 0 : index
    %11 = vector.load %arg2[%c0_10, %c16, %c0_11] : memref<1x192x64xbf16, #tpu.memory_space<vmem>>, vector<1x128x64xbf16>
    %12 = vector.shape_cast %11 : vector<1x128x64xbf16> to vector<128x64xbf16>
    %c0_12 = arith.constant 0 : index
    %c64 = arith.constant 64 : index
    %c0_13 = arith.constant 0 : index
    %13 = vector.load %arg3[%c0_12, %c64, %c0_13] : memref<1x320x32xbf16, #tpu.memory_space<vmem>>, vector<1x64x32xbf16>
    %14 = vector.shape_cast %13 : vector<1x64x32xbf16> to vector<64x32xbf16>
    %c0_14 = arith.constant 0 : index
    %c0_15 = arith.constant 0 : index
    %15 = vector.load %arg6[%c0_14, %c0_15] : memref<128x32xf32, #tpu.memory_space<vmem>>, vector<128x32xf32>
    %cst_16 = arith.constant dense<0.000000e+00> : vector<128x32xf32>
    %16 = tpu.matmul %12, %14, %cst_16 {dimension_numbers = #tpu.dot_dimension_numbers<[1], [0], [0], [1], [0, 0, 1, 1], [], []>} : vector<128x64xbf16>, vector<64x32xbf16>, vector<128x32xf32> -> vector<128x32xf32>
    %17 = arith.addf %15, %16 : vector<128x32xf32>
    %c0_17 = arith.constant 0 : index
    %c0_18 = arith.constant 0 : index
    %18 = vector.load %arg6[%c0_17, %c0_18] : memref<128x32xf32, #tpu.memory_space<vmem>>, vector<128x32xf32>
    tpu.vector_store %arg6[%c0_17, %c0_18], %17 {strides = array<i32>} : memref<128x32xf32, #tpu.memory_space<vmem>>, vector<128x32xf32>,
    %c0_19 = arith.constant 0 : index
    %c32 = arith.constant 32 : index
    %c0_20 = arith.constant 0 : index
    %19 = vector.load %arg2[%c0_19, %c32, %c0_20] : memref<1x192x64xbf16, #tpu.memory_space<vmem>>, vector<1x128x64xbf16>
    %20 = vector.shape_cast %19 : vector<1x128x64xbf16> to vector<128x64xbf16>
    %c0_21 = arith.constant 0 : index
    %c128 = arith.constant 128 : index
    %c0_22 = arith.constant 0 : index
    %21 = vector.load %arg3[%c0_21, %c128, %c0_22] : memref<1x320x32xbf16, #tpu.memory_space<vmem>>, vector<1x64x32xbf16>
    %22 = vector.shape_cast %21 : vector<1x64x32xbf16> to vector<64x32xbf16>
    %c0_23 = arith.constant 0 : index
    %c0_24 = arith.constant 0 : index
    %23 = vector.load %arg6[%c0_23, %c0_24] : memref<128x32xf32, #tpu.memory_space<vmem>>, vector<128x32xf32>
    %cst_25 = arith.constant dense<0.000000e+00> : vector<128x32xf32>
    %24 = tpu.matmul %20, %22, %cst_25 {dimension_numbers = #tpu.dot_dimension_numbers<[1], [0], [0], [1], [0, 0, 1, 1], [], []>} : vector<128x64xbf16>, vector<64x32xbf16>, vector<128x32xf32> -> vector<128x32xf32>
    %25 = arith.addf %23, %24 : vector<128x32xf32>
    %c0_26 = arith.constant 0 : index
    %c0_27 = arith.constant 0 : index
    %26 = vector.load %arg6[%c0_26, %c0_27] : memref<128x32xf32, #tpu.memory_space<vmem>>, vector<128x32xf32>
    tpu.vector_store %arg6[%c0_26, %c0_27], %25 {strides = array<i32>} : memref<128x32xf32, #tpu.memory_space<vmem>>, vector<128x32xf32>,
    %c0_28 = arith.constant 0 : index
    %c48 = arith.constant 48 : index
    %c0_29 = arith.constant 0 : index
    %27 = vector.load %arg2[%c0_28, %c48, %c0_29] : memref<1x192x64xbf16, #tpu.memory_space<vmem>>, vector<1x128x64xbf16>
    %28 = vector.shape_cast %27 : vector<1x128x64xbf16> to vector<128x64xbf16>
    %c0_30 = arith.constant 0 : index
    %c192 = arith.constant 192 : index
    %c0_31 = arith.constant 0 : index
    %29 = vector.load %arg3[%c0_30, %c192, %c0_31] : memref<1x320x32xbf16, #tpu.memory_space<vmem>>, vector<1x64x32xbf16>
    %30 = vector.shape_cast %29 : vector<1x64x32xbf16> to vector<64x32xbf16>
    %c0_32 = arith.constant 0 : index
    %c0_33 = arith.constant 0 : index
    %31 = vector.load %arg6[%c0_32, %c0_33] : memref<128x32xf32, #tpu.memory_space<vmem>>, vector<128x32xf32>
    %cst_34 = arith.constant dense<0.000000e+00> : vector<128x32xf32>
    %32 = tpu.matmul %28, %30, %cst_34 {dimension_numbers = #tpu.dot_dimension_numbers<[1], [0], [0], [1], [0, 0, 1, 1], [], []>} : vector<128x64xbf16>, vector<64x32xbf16>, vector<128x32xf32> -> vector<128x32xf32>
    %33 = arith.addf %31, %32 : vector<128x32xf32>
    %c0_35 = arith.constant 0 : index
    %c0_36 = arith.constant 0 : index
    %34 = vector.load %arg6[%c0_35, %c0_36] : memref<128x32xf32, #tpu.memory_space<vmem>>, vector<128x32xf32>
    tpu.vector_store %arg6[%c0_35, %c0_36], %33 {strides = array<i32>} : memref<128x32xf32, #tpu.memory_space<vmem>>, vector<128x32xf32>,
    %c0_37 = arith.constant 0 : index
    %c64_38 = arith.constant 64 : index
    %c0_39 = arith.constant 0 : index
    %35 = vector.load %arg2[%c0_37, %c64_38, %c0_39] : memref<1x192x64xbf16, #tpu.memory_space<vmem>>, vector<1x128x64xbf16>
    %36 = vector.shape_cast %35 : vector<1x128x64xbf16> to vector<128x64xbf16>
    %c0_40 = arith.constant 0 : index
    %c256 = arith.constant 256 : index
    %c0_41 = arith.constant 0 : index
    %37 = vector.load %arg3[%c0_40, %c256, %c0_41] : memref<1x320x32xbf16, #tpu.memory_space<vmem>>, vector<1x64x32xbf16>
    %38 = vector.shape_cast %37 : vector<1x64x32xbf16> to vector<64x32xbf16>
    %c0_42 = arith.constant 0 : index
    %c0_43 = arith.constant 0 : index
    %39 = vector.load %arg6[%c0_42, %c0_43] : memref<128x32xf32, #tpu.memory_space<vmem>>, vector<128x32xf32>
    %cst_44 = arith.constant dense<0.000000e+00> : vector<128x32xf32>
    %40 = tpu.matmul %36, %38, %cst_44 {dimension_numbers = #tpu.dot_dimension_numbers<[1], [0], [0], [1], [0, 0, 1, 1], [], []>} : vector<128x64xbf16>, vector<64x32xbf16>, vector<128x32xf32> -> vector<128x32xf32>
    %41 = arith.addf %39, %40 : vector<128x32xf32>
    %c0_45 = arith.constant 0 : index
    %c0_46 = arith.constant 0 : index
    %42 = vector.load %arg6[%c0_45, %c0_46] : memref<128x32xf32, #tpu.memory_space<vmem>>, vector<128x32xf32>
    tpu.vector_store %arg6[%c0_45, %c0_46], %41 {strides = array<i32>} : memref<128x32xf32, #tpu.memory_space<vmem>>, vector<128x32xf32>,
    %c4_i32 = arith.constant 4 : i32
    %43 = arith.cmpi eq, %arg1, %c4_i32 : i32
    %44 = arith.extui %43 : i1 to i32
    %c0_i32_47 = arith.constant 0 : i32
    %45 = arith.cmpi ne, %44, %c0_i32_47 : i32
    scf.if %45 {
      %c0_48 = arith.constant 0 : index
      %c0_49 = arith.constant 0 : index
      %46 = vector.load %arg6[%c0_48, %c0_49] : memref<128x32xf32, #tpu.memory_space<vmem>>, vector<128x32xf32>
      %47 = arith.truncf %46 : vector<128x32xf32> to vector<128x32xbf16>
      %c0_50 = arith.constant 0 : index
      %c0_51 = arith.constant 0 : index
      %c0_52 = arith.constant 0 : index
      %48 = vector.load %arg4[%c0_50, %c0_51, %c0_52] : memref<1x128x32xbf16, #tpu.memory_space<vmem>>, vector<1x128x32xbf16>
      %49 = vector.shape_cast %48 : vector<1x128x32xbf16> to vector<128x32xbf16>
      %50 = vector.shape_cast %47 : vector<128x32xbf16> to vector<1x128x32xbf16>
      tpu.vector_store %arg4[%c0_50, %c0_51, %c0_52], %50 {strides = array<i32>} : memref<1x128x32xbf16, #tpu.memory_space<vmem>>, vector<1x128x32xbf16>,
      %cst_53 = arith.constant dense<0.000000e+00> : vector<32xf32>
      %51 = vector.multi_reduction <add>, %46, %cst_53 [0] : vector<128x32xf32> to vector<32xf32>
      %52 = vector.shape_cast %51 : vector<32xf32> to vector<1x32xf32>
      %53 = arith.mulf %46, %46 : vector<128x32xf32>
      %cst_54 = arith.constant dense<0.000000e+00> : vector<32xf32>
      %54 = vector.multi_reduction <add>, %53, %cst_54 [0] : vector<128x32xf32> to vector<32xf32>
      %55 = vector.shape_cast %54 : vector<32xf32> to vector<1x32xf32>
      %56 = tpu.concatenate %52, %55 in 0 : vector<1x32xf32>, vector<1x32xf32> -> vector<2x32xf32>
      %c0_55 = arith.constant 0 : index
      %c0_56 = arith.constant 0 : index
      %c0_57 = arith.constant 0 : index
      %57 = vector.load %arg5[%c0_55, %c0_56, %c0_57] : memref<1x2x32xf32, #tpu.memory_space<vmem>>, vector<1x2x32xf32>
      %58 = vector.shape_cast %57 : vector<1x2x32xf32> to vector<2x32xf32>
      %59 = vector.shape_cast %56 : vector<2x32xf32> to vector<1x2x32xf32>
      tpu.vector_store %arg5[%c0_55, %c0_56, %c0_57], %59 {strides = array<i32>} : memref<1x2x32xf32, #tpu.memory_space<vmem>>, vector<1x2x32xf32>,
    } else {
    }
    return
  }
  func.func @transform_0(%arg0: i32, %arg1: i32) -> (i32, i32, i32) {
    %c5_i32 = arith.constant 5 : i32
    %0 = arith.muli %arg0, %c5_i32 : i32
    %1 = arith.addi %0, %arg1 : i32
    %c0_i32 = arith.constant 0 : i32
    %c0_i32_0 = arith.constant 0 : i32
    %c0_i32_1 = arith.constant 0 : i32
    return %1, %c0_i32, %c0_i32_0 : i32, i32, i32
  }
  func.func @transform_1(%arg0: i32, %arg1: i32) -> (i32, i32, i32) {
    %c0_i32 = arith.constant 0 : i32
    %c0_i32_0 = arith.constant 0 : i32
    %c0_i32_1 = arith.constant 0 : i32
    return %arg1, %c0_i32, %c0_i32_0 : i32, i32, i32
  }
  func.func @transform_2(%arg0: i32, %arg1: i32) -> (i32, i32, i32) {
    %c0_i32 = arith.constant 0 : i32
    %c0_i32_0 = arith.constant 0 : i32
    %c0_i32_1 = arith.constant 0 : i32
    return %arg0, %c0_i32, %c0_i32_0 : i32, i32, i32
  }
  func.func @transform_3(%arg0: i32, %arg1: i32) -> (i32, i32, i32) {
    %c0_i32 = arith.constant 0 : i32
    %c0_i32_0 = arith.constant 0 : i32
    %c0_i32_1 = arith.constant 0 : i32
    return %arg0, %c0_i32, %c0_i32_0 : i32, i32, i32
  }
}

module attributes {stable_mosaic.version = 11 : i64} {
  func.func @_bn_relu_img_kernel(%arg0: i32, %arg1: memref<1x8x16x32xbf16, #tpu.memory_space<vmem>>, %arg2: memref<1x32xf32, #tpu.memory_space<vmem>>, %arg3: memref<1x32xf32, #tpu.memory_space<vmem>>, %arg4: memref<1x8x9x32xbf16, #tpu.memory_space<vmem>>) attributes {dimension_semantics = [#tpu.dimension_semantics<parallel>], iteration_bounds = array<i64: 2>, scalar_prefetch = 0 : i64, scratch_operands = 0 : i64, tpu.core_type = #tpu.core_type<tc>, window_params = [{transform_indices = @transform_0, window_bounds = array<i64: 1, 8, 16, 32>}, {pipeline_mode = #tpu.pipeline_mode<synchronous>, transform_indices = @transform_1, window_bounds = array<i64: 1, 32>}, {pipeline_mode = #tpu.pipeline_mode<synchronous>, transform_indices = @transform_2, window_bounds = array<i64: 1, 32>}, {transform_indices = @transform_3, window_bounds = array<i64: 1, 8, 9, 32>}]} {
    %c0 = arith.constant 0 : index
    %c0_0 = arith.constant 0 : index
    %c0_1 = arith.constant 0 : index
    %c0_2 = arith.constant 0 : index
    %0 = vector.load %arg1[%c0, %c0_0, %c0_1, %c0_2] : memref<1x8x16x32xbf16, #tpu.memory_space<vmem>>, vector<1x8x9x32xbf16>
    %1 = vector.shape_cast %0 : vector<1x8x9x32xbf16> to vector<8x9x32xbf16>
    %2 = arith.extf %1 : vector<8x9x32xbf16> to vector<8x9x32xf32>
    %c0_3 = arith.constant 0 : index
    %c0_4 = arith.constant 0 : index
    %3 = vector.load %arg2[%c0_3, %c0_4] : memref<1x32xf32, #tpu.memory_space<vmem>>, vector<1x32xf32>
    %4 = vector.shape_cast %3 : vector<1x32xf32> to vector<32xf32>
    %5 = vector.shape_cast %4 : vector<32xf32> to vector<1x1x32xf32>
    %6 = vector.broadcast %5 : vector<1x1x32xf32> to vector<8x9x32xf32>
    %7 = arith.mulf %2, %6 : vector<8x9x32xf32>
    %c0_5 = arith.constant 0 : index
    %c0_6 = arith.constant 0 : index
    %8 = vector.load %arg3[%c0_5, %c0_6] : memref<1x32xf32, #tpu.memory_space<vmem>>, vector<1x32xf32>
    %9 = vector.shape_cast %8 : vector<1x32xf32> to vector<32xf32>
    %10 = vector.shape_cast %9 : vector<32xf32> to vector<1x1x32xf32>
    %11 = vector.broadcast %10 : vector<1x1x32xf32> to vector<8x9x32xf32>
    %12 = arith.addf %7, %11 : vector<8x9x32xf32>
    %cst = arith.constant 0.000000e+00 : f32
    %13 = vector.broadcast %cst : f32 to vector<8x9x32xf32>
    %14 = arith.maximumf %12, %13 : vector<8x9x32xf32>
    %15 = arith.truncf %14 : vector<8x9x32xf32> to vector<8x9x32xbf16>
    %c0_7 = arith.constant 0 : index
    %c0_8 = arith.constant 0 : index
    %c0_9 = arith.constant 0 : index
    %c0_10 = arith.constant 0 : index
    %16 = vector.load %arg4[%c0_7, %c0_8, %c0_9, %c0_10] : memref<1x8x9x32xbf16, #tpu.memory_space<vmem>>, vector<1x8x9x32xbf16>
    %17 = vector.shape_cast %16 : vector<1x8x9x32xbf16> to vector<8x9x32xbf16>
    %18 = vector.shape_cast %15 : vector<8x9x32xbf16> to vector<1x8x9x32xbf16>
    tpu.vector_store %arg4[%c0_7, %c0_8, %c0_9, %c0_10], %18 {strides = array<i32>} : memref<1x8x9x32xbf16, #tpu.memory_space<vmem>>, vector<1x8x9x32xbf16>,
    return
  }
  func.func @transform_0(%arg0: i32) -> (i32, i32, i32, i32) {
    %c0_i32 = arith.constant 0 : i32
    %c0_i32_0 = arith.constant 0 : i32
    %c0_i32_1 = arith.constant 0 : i32
    %c0_i32_2 = arith.constant 0 : i32
    return %arg0, %c0_i32, %c0_i32_0, %c0_i32_1 : i32, i32, i32, i32
  }
  func.func @transform_1(%arg0: i32) -> (i32, i32) {
    %c0_i32 = arith.constant 0 : i32
    %c0_i32_0 = arith.constant 0 : i32
    %c0_i32_1 = arith.constant 0 : i32
    return %c0_i32, %c0_i32_0 : i32, i32
  }
  func.func @transform_2(%arg0: i32) -> (i32, i32) {
    %c0_i32 = arith.constant 0 : i32
    %c0_i32_0 = arith.constant 0 : i32
    %c0_i32_1 = arith.constant 0 : i32
    return %c0_i32, %c0_i32_0 : i32, i32
  }
  func.func @transform_3(%arg0: i32) -> (i32, i32, i32, i32) {
    %c0_i32 = arith.constant 0 : i32
    %c0_i32_0 = arith.constant 0 : i32
    %c0_i32_1 = arith.constant 0 : i32
    %c0_i32_2 = arith.constant 0 : i32
    return %arg0, %c0_i32, %c0_i32_0, %c0_i32_1 : i32, i32, i32, i32
  }
}

module attributes {stable_mosaic.version = 11 : i64} {
  func.func @_bn_relu_img_kernel(%arg0: i32, %arg1: memref<1x4x16x16xbf16, #tpu.memory_space<vmem>>, %arg2: memref<1x16xf32, #tpu.memory_space<vmem>>, %arg3: memref<1x16xf32, #tpu.memory_space<vmem>>, %arg4: memref<1x4x5x16xbf16, #tpu.memory_space<vmem>>) attributes {dimension_semantics = [#tpu.dimension_semantics<parallel>], iteration_bounds = array<i64: 2>, scalar_prefetch = 0 : i64, scratch_operands = 0 : i64, tpu.core_type = #tpu.core_type<tc>, window_params = [{transform_indices = @transform_0, window_bounds = array<i64: 1, 4, 16, 16>}, {pipeline_mode = #tpu.pipeline_mode<synchronous>, transform_indices = @transform_1, window_bounds = array<i64: 1, 16>}, {pipeline_mode = #tpu.pipeline_mode<synchronous>, transform_indices = @transform_2, window_bounds = array<i64: 1, 16>}, {transform_indices = @transform_3, window_bounds = array<i64: 1, 4, 5, 16>}]} {
    %c0 = arith.constant 0 : index
    %c0_0 = arith.constant 0 : index
    %c0_1 = arith.constant 0 : index
    %c0_2 = arith.constant 0 : index
    %0 = vector.load %arg1[%c0, %c0_0, %c0_1, %c0_2] : memref<1x4x16x16xbf16, #tpu.memory_space<vmem>>, vector<1x4x5x16xbf16>
    %1 = vector.shape_cast %0 : vector<1x4x5x16xbf16> to vector<4x5x16xbf16>
    %2 = arith.extf %1 : vector<4x5x16xbf16> to vector<4x5x16xf32>
    %c0_3 = arith.constant 0 : index
    %c0_4 = arith.constant 0 : index
    %3 = vector.load %arg2[%c0_3, %c0_4] : memref<1x16xf32, #tpu.memory_space<vmem>>, vector<1x16xf32>
    %4 = vector.shape_cast %3 : vector<1x16xf32> to vector<16xf32>
    %5 = vector.shape_cast %4 : vector<16xf32> to vector<1x1x16xf32>
    %6 = vector.broadcast %5 : vector<1x1x16xf32> to vector<4x5x16xf32>
    %7 = arith.mulf %2, %6 : vector<4x5x16xf32>
    %c0_5 = arith.constant 0 : index
    %c0_6 = arith.constant 0 : index
    %8 = vector.load %arg3[%c0_5, %c0_6] : memref<1x16xf32, #tpu.memory_space<vmem>>, vector<1x16xf32>
    %9 = vector.shape_cast %8 : vector<1x16xf32> to vector<16xf32>
    %10 = vector.shape_cast %9 : vector<16xf32> to vector<1x1x16xf32>
    %11 = vector.broadcast %10 : vector<1x1x16xf32> to vector<4x5x16xf32>
    %12 = arith.addf %7, %11 : vector<4x5x16xf32>
    %cst = arith.constant 0.000000e+00 : f32
    %13 = vector.broadcast %cst : f32 to vector<4x5x16xf32>
    %14 = arith.maximumf %12, %13 : vector<4x5x16xf32>
    %15 = arith.truncf %14 : vector<4x5x16xf32> to vector<4x5x16xbf16>
    %c0_7 = arith.constant 0 : index
    %c0_8 = arith.constant 0 : index
    %c0_9 = arith.constant 0 : index
    %c0_10 = arith.constant 0 : index
    %16 = vector.load %arg4[%c0_7, %c0_8, %c0_9, %c0_10] : memref<1x4x5x16xbf16, #tpu.memory_space<vmem>>, vector<1x4x5x16xbf16>
    %17 = vector.shape_cast %16 : vector<1x4x5x16xbf16> to vector<4x5x16xbf16>
    %18 = vector.shape_cast %15 : vector<4x5x16xbf16> to vector<1x4x5x16xbf16>
    tpu.vector_store %arg4[%c0_7, %c0_8, %c0_9, %c0_10], %18 {strides = array<i32>} : memref<1x4x5x16xbf16, #tpu.memory_space<vmem>>, vector<1x4x5x16xbf16>,
    return
  }
  func.func @transform_0(%arg0: i32) -> (i32, i32, i32, i32) {
    %c0_i32 = arith.constant 0 : i32
    %c0_i32_0 = arith.constant 0 : i32
    %c0_i32_1 = arith.constant 0 : i32
    %c0_i32_2 = arith.constant 0 : i32
    return %arg0, %c0_i32, %c0_i32_0, %c0_i32_1 : i32, i32, i32, i32
  }
  func.func @transform_1(%arg0: i32) -> (i32, i32) {
    %c0_i32 = arith.constant 0 : i32
    %c0_i32_0 = arith.constant 0 : i32
    %c0_i32_1 = arith.constant 0 : i32
    return %c0_i32, %c0_i32_0 : i32, i32
  }
  func.func @transform_2(%arg0: i32) -> (i32, i32) {
    %c0_i32 = arith.constant 0 : i32
    %c0_i32_0 = arith.constant 0 : i32
    %c0_i32_1 = arith.constant 0 : i32
    return %c0_i32, %c0_i32_0 : i32, i32
  }
  func.func @transform_3(%arg0: i32) -> (i32, i32, i32, i32) {
    %c0_i32 = arith.constant 0 : i32
    %c0_i32_0 = arith.constant 0 : i32
    %c0_i32_1 = arith.constant 0 : i32
    %c0_i32_2 = arith.constant 0 : i32
    return %arg0, %c0_i32, %c0_i32_0, %c0_i32_1 : i32, i32, i32, i32
  }
}

module attributes {stable_mosaic.version = 11 : i64} {
  func.func @_fused_conv_kernel(%arg0: i32, %arg1: i32, %arg2: memref<1x128x32xbf16, #tpu.memory_space<vmem>>, %arg3: memref<1x160x16xbf16, #tpu.memory_space<vmem>>, %arg4: memref<1x64x16xbf16, #tpu.memory_space<vmem>>, %arg5: memref<1x2x16xf32, #tpu.memory_space<vmem>>, %arg6: memref<64x16xf32, #tpu.memory_space<vmem>>) attributes {dimension_semantics = [#tpu.dimension_semantics<parallel>, #tpu.dimension_semantics<arbitrary>], iteration_bounds = array<i64: 2, 5>, scalar_prefetch = 0 : i64, scratch_operands = 1 : i64, tpu.core_type = #tpu.core_type<tc>, window_params = [{transform_indices = @transform_0, window_bounds = array<i64: 1, 128, 32>}, {transform_indices = @transform_1, window_bounds = array<i64: 1, 160, 16>}, {transform_indices = @transform_2, window_bounds = array<i64: 1, 64, 16>}, {transform_indices = @transform_3, window_bounds = array<i64: 1, 2, 16>}]} {
    %c0_i32 = arith.constant 0 : i32
    %0 = arith.cmpi eq, %arg1, %c0_i32 : i32
    %1 = arith.extui %0 : i1 to i32
    %c0_i32_0 = arith.constant 0 : i32
    %2 = arith.cmpi ne, %1, %c0_i32_0 : i32
    scf.if %2 {
      %cst_49 = arith.constant 0.000000e+00 : f32
      %46 = vector.broadcast %cst_49 : f32 to vector<64x16xf32>
      %c0_50 = arith.constant 0 : index
      %c0_51 = arith.constant 0 : index
      %47 = vector.load %arg6[%c0_50, %c0_51] : memref<64x16xf32, #tpu.memory_space<vmem>>, vector<64x16xf32>
      tpu.vector_store %arg6[%c0_50, %c0_51], %46 {strides = array<i32>} : memref<64x16xf32, #tpu.memory_space<vmem>>, vector<64x16xf32>,
    } else {
    }
    %c0 = arith.constant 0 : index
    %c0_1 = arith.constant 0 : index
    %c0_2 = arith.constant 0 : index
    %3 = vector.load %arg2[%c0, %c0_1, %c0_2] : memref<1x128x32xbf16, #tpu.memory_space<vmem>>, vector<1x64x32xbf16>
    %4 = vector.shape_cast %3 : vector<1x64x32xbf16> to vector<64x32xbf16>
    %c0_3 = arith.constant 0 : index
    %c0_4 = arith.constant 0 : index
    %c0_5 = arith.constant 0 : index
    %5 = vector.load %arg3[%c0_3, %c0_4, %c0_5] : memref<1x160x16xbf16, #tpu.memory_space<vmem>>, vector<1x32x16xbf16>
    %6 = vector.shape_cast %5 : vector<1x32x16xbf16> to vector<32x16xbf16>
    %c0_6 = arith.constant 0 : index
    %c0_7 = arith.constant 0 : index
    %7 = vector.load %arg6[%c0_6, %c0_7] : memref<64x16xf32, #tpu.memory_space<vmem>>, vector<64x16xf32>
    %cst = arith.constant dense<0.000000e+00> : vector<64x16xf32>
    %8 = tpu.matmul %4, %6, %cst {dimension_numbers = #tpu.dot_dimension_numbers<[1], [0], [0], [1], [0, 0, 1, 1], [], []>} : vector<64x32xbf16>, vector<32x16xbf16>, vector<64x16xf32> -> vector<64x16xf32>
    %9 = arith.addf %7, %8 : vector<64x16xf32>
    %c0_8 = arith.constant 0 : index
    %c0_9 = arith.constant 0 : index
    %10 = vector.load %arg6[%c0_8, %c0_9] : memref<64x16xf32, #tpu.memory_space<vmem>>, vector<64x16xf32>
    tpu.vector_store %arg6[%c0_8, %c0_9], %9 {strides = array<i32>} : memref<64x16xf32, #tpu.memory_space<vmem>>, vector<64x16xf32>,
    %c0_10 = arith.constant 0 : index
    %c16 = arith.constant 16 : index
    %c0_11 = arith.constant 0 : index
    %11 = vector.load %arg2[%c0_10, %c16, %c0_11] : memref<1x128x32xbf16, #tpu.memory_space<vmem>>, vector<1x64x32xbf16>
    %12 = vector.shape_cast %11 : vector<1x64x32xbf16> to vector<64x32xbf16>
    %c0_12 = arith.constant 0 : index
    %c32 = arith.constant 32 : index
    %c0_13 = arith.constant 0 : index
    %13 = vector.load %arg3[%c0_12, %c32, %c0_13] : memref<1x160x16xbf16, #tpu.memory_space<vmem>>, vector<1x32x16xbf16>
    %14 = vector.shape_cast %13 : vector<1x32x16xbf16> to vector<32x16xbf16>
    %c0_14 = arith.constant 0 : index
    %c0_15 = arith.constant 0 : index
    %15 = vector.load %arg6[%c0_14, %c0_15] : memref<64x16xf32, #tpu.memory_space<vmem>>, vector<64x16xf32>
    %cst_16 = arith.constant dense<0.000000e+00> : vector<64x16xf32>
    %16 = tpu.matmul %12, %14, %cst_16 {dimension_numbers = #tpu.dot_dimension_numbers<[1], [0], [0], [1], [0, 0, 1, 1], [], []>} : vector<64x32xbf16>, vector<32x16xbf16>, vector<64x16xf32> -> vector<64x16xf32>
    %17 = arith.addf %15, %16 : vector<64x16xf32>
    %c0_17 = arith.constant 0 : index
    %c0_18 = arith.constant 0 : index
    %18 = vector.load %arg6[%c0_17, %c0_18] : memref<64x16xf32, #tpu.memory_space<vmem>>, vector<64x16xf32>
    tpu.vector_store %arg6[%c0_17, %c0_18], %17 {strides = array<i32>} : memref<64x16xf32, #tpu.memory_space<vmem>>, vector<64x16xf32>,
    %c0_19 = arith.constant 0 : index
    %c32_20 = arith.constant 32 : index
    %c0_21 = arith.constant 0 : index
    %19 = vector.load %arg2[%c0_19, %c32_20, %c0_21] : memref<1x128x32xbf16, #tpu.memory_space<vmem>>, vector<1x64x32xbf16>
    %20 = vector.shape_cast %19 : vector<1x64x32xbf16> to vector<64x32xbf16>
    %c0_22 = arith.constant 0 : index
    %c64 = arith.constant 64 : index
    %c0_23 = arith.constant 0 : index
    %21 = vector.load %arg3[%c0_22, %c64, %c0_23] : memref<1x160x16xbf16, #tpu.memory_space<vmem>>, vector<1x32x16xbf16>
    %22 = vector.shape_cast %21 : vector<1x32x16xbf16> to vector<32x16xbf16>
    %c0_24 = arith.constant 0 : index
    %c0_25 = arith.constant 0 : index
    %23 = vector.load %arg6[%c0_24, %c0_25] : memref<64x16xf32, #tpu.memory_space<vmem>>, vector<64x16xf32>
    %cst_26 = arith.constant dense<0.000000e+00> : vector<64x16xf32>
    %24 = tpu.matmul %20, %22, %cst_26 {dimension_numbers = #tpu.dot_dimension_numbers<[1], [0], [0], [1], [0, 0, 1, 1], [], []>} : vector<64x32xbf16>, vector<32x16xbf16>, vector<64x16xf32> -> vector<64x16xf32>
    %25 = arith.addf %23, %24 : vector<64x16xf32>
    %c0_27 = arith.constant 0 : index
    %c0_28 = arith.constant 0 : index
    %26 = vector.load %arg6[%c0_27, %c0_28] : memref<64x16xf32, #tpu.memory_space<vmem>>, vector<64x16xf32>
    tpu.vector_store %arg6[%c0_27, %c0_28], %25 {strides = array<i32>} : memref<64x16xf32, #tpu.memory_space<vmem>>, vector<64x16xf32>,
    %c0_29 = arith.constant 0 : index
    %c48 = arith.constant 48 : index
    %c0_30 = arith.constant 0 : index
    %27 = vector.load %arg2[%c0_29, %c48, %c0_30] : memref<1x128x32xbf16, #tpu.memory_space<vmem>>, vector<1x64x32xbf16>
    %28 = vector.shape_cast %27 : vector<1x64x32xbf16> to vector<64x32xbf16>
    %c0_31 = arith.constant 0 : index
    %c96 = arith.constant 96 : index
    %c0_32 = arith.constant 0 : index
    %29 = vector.load %arg3[%c0_31, %c96, %c0_32] : memref<1x160x16xbf16, #tpu.memory_space<vmem>>, vector<1x32x16xbf16>
    %30 = vector.shape_cast %29 : vector<1x32x16xbf16> to vector<32x16xbf16>
    %c0_33 = arith.constant 0 : index
    %c0_34 = arith.constant 0 : index
    %31 = vector.load %arg6[%c0_33, %c0_34] : memref<64x16xf32, #tpu.memory_space<vmem>>, vector<64x16xf32>
    %cst_35 = arith.constant dense<0.000000e+00> : vector<64x16xf32>
    %32 = tpu.matmul %28, %30, %cst_35 {dimension_numbers = #tpu.dot_dimension_numbers<[1], [0], [0], [1], [0, 0, 1, 1], [], []>} : vector<64x32xbf16>, vector<32x16xbf16>, vector<64x16xf32> -> vector<64x16xf32>
    %33 = arith.addf %31, %32 : vector<64x16xf32>
    %c0_36 = arith.constant 0 : index
    %c0_37 = arith.constant 0 : index
    %34 = vector.load %arg6[%c0_36, %c0_37] : memref<64x16xf32, #tpu.memory_space<vmem>>, vector<64x16xf32>
    tpu.vector_store %arg6[%c0_36, %c0_37], %33 {strides = array<i32>} : memref<64x16xf32, #tpu.memory_space<vmem>>, vector<64x16xf32>,
    %c0_38 = arith.constant 0 : index
    %c64_39 = arith.constant 64 : index
    %c0_40 = arith.constant 0 : index
    %35 = vector.load %arg2[%c0_38, %c64_39, %c0_40] : memref<1x128x32xbf16, #tpu.memory_space<vmem>>, vector<1x64x32xbf16>
    %36 = vector.shape_cast %35 : vector<1x64x32xbf16> to vector<64x32xbf16>
    %c0_41 = arith.constant 0 : index
    %c128 = arith.constant 128 : index
    %c0_42 = arith.constant 0 : index
    %37 = vector.load %arg3[%c0_41, %c128, %c0_42] : memref<1x160x16xbf16, #tpu.memory_space<vmem>>, vector<1x32x16xbf16>
    %38 = vector.shape_cast %37 : vector<1x32x16xbf16> to vector<32x16xbf16>
    %c0_43 = arith.constant 0 : index
    %c0_44 = arith.constant 0 : index
    %39 = vector.load %arg6[%c0_43, %c0_44] : memref<64x16xf32, #tpu.memory_space<vmem>>, vector<64x16xf32>
    %cst_45 = arith.constant dense<0.000000e+00> : vector<64x16xf32>
    %40 = tpu.matmul %36, %38, %cst_45 {dimension_numbers = #tpu.dot_dimension_numbers<[1], [0], [0], [1], [0, 0, 1, 1], [], []>} : vector<64x32xbf16>, vector<32x16xbf16>, vector<64x16xf32> -> vector<64x16xf32>
    %41 = arith.addf %39, %40 : vector<64x16xf32>
    %c0_46 = arith.constant 0 : index
    %c0_47 = arith.constant 0 : index
    %42 = vector.load %arg6[%c0_46, %c0_47] : memref<64x16xf32, #tpu.memory_space<vmem>>, vector<64x16xf32>
    tpu.vector_store %arg6[%c0_46, %c0_47], %41 {strides = array<i32>} : memref<64x16xf32, #tpu.memory_space<vmem>>, vector<64x16xf32>,
    %c4_i32 = arith.constant 4 : i32
    %43 = arith.cmpi eq, %arg1, %c4_i32 : i32
    %44 = arith.extui %43 : i1 to i32
    %c0_i32_48 = arith.constant 0 : i32
    %45 = arith.cmpi ne, %44, %c0_i32_48 : i32
    scf.if %45 {
      %c0_49 = arith.constant 0 : index
      %c0_50 = arith.constant 0 : index
      %46 = vector.load %arg6[%c0_49, %c0_50] : memref<64x16xf32, #tpu.memory_space<vmem>>, vector<64x16xf32>
      %47 = arith.truncf %46 : vector<64x16xf32> to vector<64x16xbf16>
      %c0_51 = arith.constant 0 : index
      %c0_52 = arith.constant 0 : index
      %c0_53 = arith.constant 0 : index
      %48 = vector.load %arg4[%c0_51, %c0_52, %c0_53] : memref<1x64x16xbf16, #tpu.memory_space<vmem>>, vector<1x64x16xbf16>
      %49 = vector.shape_cast %48 : vector<1x64x16xbf16> to vector<64x16xbf16>
      %50 = vector.shape_cast %47 : vector<64x16xbf16> to vector<1x64x16xbf16>
      tpu.vector_store %arg4[%c0_51, %c0_52, %c0_53], %50 {strides = array<i32>} : memref<1x64x16xbf16, #tpu.memory_space<vmem>>, vector<1x64x16xbf16>,
      %cst_54 = arith.constant dense<0.000000e+00> : vector<16xf32>
      %51 = vector.multi_reduction <add>, %46, %cst_54 [0] : vector<64x16xf32> to vector<16xf32>
      %52 = vector.shape_cast %51 : vector<16xf32> to vector<1x16xf32>
      %53 = arith.mulf %46, %46 : vector<64x16xf32>
      %cst_55 = arith.constant dense<0.000000e+00> : vector<16xf32>
      %54 = vector.multi_reduction <add>, %53, %cst_55 [0] : vector<64x16xf32> to vector<16xf32>
      %55 = vector.shape_cast %54 : vector<16xf32> to vector<1x16xf32>
      %56 = tpu.concatenate %52, %55 in 0 : vector<1x16xf32>, vector<1x16xf32> -> vector<2x16xf32>
      %c0_56 = arith.constant 0 : index
      %c0_57 = arith.constant 0 : index
      %c0_58 = arith.constant 0 : index
      %57 = vector.load %arg5[%c0_56, %c0_57, %c0_58] : memref<1x2x16xf32, #tpu.memory_space<vmem>>, vector<1x2x16xf32>
      %58 = vector.shape_cast %57 : vector<1x2x16xf32> to vector<2x16xf32>
      %59 = vector.shape_cast %56 : vector<2x16xf32> to vector<1x2x16xf32>
      tpu.vector_store %arg5[%c0_56, %c0_57, %c0_58], %59 {strides = array<i32>} : memref<1x2x16xf32, #tpu.memory_space<vmem>>, vector<1x2x16xf32>,
    } else {
    }
    return
  }
  func.func @transform_0(%arg0: i32, %arg1: i32) -> (i32, i32, i32) {
    %c5_i32 = arith.constant 5 : i32
    %0 = arith.muli %arg0, %c5_i32 : i32
    %1 = arith.addi %0, %arg1 : i32
    %c0_i32 = arith.constant 0 : i32
    %c0_i32_0 = arith.constant 0 : i32
    %c0_i32_1 = arith.constant 0 : i32
    return %1, %c0_i32, %c0_i32_0 : i32, i32, i32
  }
  func.func @transform_1(%arg0: i32, %arg1: i32) -> (i32, i32, i32) {
    %c0_i32 = arith.constant 0 : i32
    %c0_i32_0 = arith.constant 0 : i32
    %c0_i32_1 = arith.constant 0 : i32
    return %arg1, %c0_i32, %c0_i32_0 : i32, i32, i32
  }
  func.func @transform_2(%arg0: i32, %arg1: i32) -> (i32, i32, i32) {
    %c0_i32 = arith.constant 0 : i32
    %c0_i32_0 = arith.constant 0 : i32
    %c0_i32_1 = arith.constant 0 : i32
    return %arg0, %c0_i32, %c0_i32_0 : i32, i32, i32
  }
  func.func @transform_3(%arg0: i32, %arg1: i32) -> (i32, i32, i32) {
    %c0_i32 = arith.constant 0 : i32
    %c0_i32_0 = arith.constant 0 : i32
    %c0_i32_1 = arith.constant 0 : i32
    return %arg0, %c0_i32, %c0_i32_0 : i32, i32, i32
  }
}

module attributes {stable_mosaic.version = 11 : i64} {
  func.func @_spatial_softmax_kernel(%arg0: i32, %arg1: memref<1x16x20xbf16, #tpu.memory_space<vmem>>, %arg2: memref<1x1x20xf32, #tpu.memory_space<vmem>>, %arg3: memref<1x1x20xf32, #tpu.memory_space<vmem>>, %arg4: memref<1x16x20xf32, #tpu.memory_space<vmem>>, %arg5: memref<1x1x16xf32, #tpu.memory_space<vmem>>, %arg6: memref<1x1x16xf32, #tpu.memory_space<vmem>>) attributes {dimension_semantics = [#tpu.dimension_semantics<parallel>], iteration_bounds = array<i64: 2>, scalar_prefetch = 0 : i64, scratch_operands = 0 : i64, tpu.core_type = #tpu.core_type<tc>, window_params = [{transform_indices = @transform_0, window_bounds = array<i64: 1, 16, 20>}, {pipeline_mode = #tpu.pipeline_mode<synchronous>, transform_indices = @transform_1, window_bounds = array<i64: 1, 1, 20>}, {pipeline_mode = #tpu.pipeline_mode<synchronous>, transform_indices = @transform_2, window_bounds = array<i64: 1, 1, 20>}, {transform_indices = @transform_3, window_bounds = array<i64: 1, 16, 20>}, {transform_indices = @transform_4, window_bounds = array<i64: 1, 1, 16>}, {transform_indices = @transform_5, window_bounds = array<i64: 1, 1, 16>}]} {
    %c0 = arith.constant 0 : index
    %c0_0 = arith.constant 0 : index
    %c0_1 = arith.constant 0 : index
    %0 = vector.load %arg1[%c0, %c0_0, %c0_1] : memref<1x16x20xbf16, #tpu.memory_space<vmem>>, vector<1x16x20xbf16>
    %1 = arith.extf %0 : vector<1x16x20xbf16> to vector<1x16x20xf32>
    %cst = arith.constant dense<0xFF800000> : vector<1x16xf32>
    %2 = vector.multi_reduction <maximumf>, %1, %cst [2] : vector<1x16x20xf32> to vector<1x16xf32>
    %3 = vector.shape_cast %2 : vector<1x16xf32> to vector<1x16x1xf32>
    %4 = vector.broadcast %3 : vector<1x16x1xf32> to vector<1x16x20xf32>
    %5 = arith.subf %1, %4 : vector<1x16x20xf32>
    %6 = math.exp %5 : vector<1x16x20xf32>
    %cst_2 = arith.constant dense<0.000000e+00> : vector<1x16xf32>
    %7 = vector.multi_reduction <add>, %6, %cst_2 [2] : vector<1x16x20xf32> to vector<1x16xf32>
    %8 = vector.shape_cast %7 : vector<1x16xf32> to vector<1x16x1xf32>
    %9 = tpu.reciprocal %8 : vector<1x16x1xf32> -> vector<1x16x1xf32>
    %10 = vector.broadcast %9 : vector<1x16x1xf32> to vector<1x16x20xf32>
    %11 = arith.mulf %6, %10 : vector<1x16x20xf32>
    %c0_3 = arith.constant 0 : index
    %c0_4 = arith.constant 0 : index
    %c0_5 = arith.constant 0 : index
    %12 = vector.load %arg4[%c0_3, %c0_4, %c0_5] : memref<1x16x20xf32, #tpu.memory_space<vmem>>, vector<1x16x20xf32>
    tpu.vector_store %arg4[%c0_3, %c0_4, %c0_5], %11 {strides = array<i32>} : memref<1x16x20xf32, #tpu.memory_space<vmem>>, vector<1x16x20xf32>,
    %c0_6 = arith.constant 0 : index
    %c0_7 = arith.constant 0 : index
    %c0_8 = arith.constant 0 : index
    %13 = vector.load %arg2[%c0_6, %c0_7, %c0_8] : memref<1x1x20xf32, #tpu.memory_space<vmem>>, vector<1x1x20xf32>
    %14 = vector.broadcast %13 : vector<1x1x20xf32> to vector<1x16x20xf32>
    %15 = arith.mulf %11, %14 : vector<1x16x20xf32>
    %cst_9 = arith.constant dense<0.000000e+00> : vector<1x16xf32>
    %16 = vector.multi_reduction <add>, %15, %cst_9 [2] : vector<1x16x20xf32> to vector<1x16xf32>
    %17 = vector.shape_cast %16 : vector<1x16xf32> to vector<1x1x16xf32>
    %c0_10 = arith.constant 0 : index
    %c0_11 = arith.constant 0 : index
    %c0_12 = arith.constant 0 : index
    %18 = vector.load %arg5[%c0_10, %c0_11, %c0_12] : memref<1x1x16xf32, #tpu.memory_space<vmem>>, vector<1x1x16xf32>
    tpu.vector_store %arg5[%c0_10, %c0_11, %c0_12], %17 {strides = array<i32>} : memref<1x1x16xf32, #tpu.memory_space<vmem>>, vector<1x1x16xf32>,
    %c0_13 = arith.constant 0 : index
    %c0_14 = arith.constant 0 : index
    %c0_15 = arith.constant 0 : index
    %19 = vector.load %arg3[%c0_13, %c0_14, %c0_15] : memref<1x1x20xf32, #tpu.memory_space<vmem>>, vector<1x1x20xf32>
    %20 = vector.broadcast %19 : vector<1x1x20xf32> to vector<1x16x20xf32>
    %21 = arith.mulf %11, %20 : vector<1x16x20xf32>
    %cst_16 = arith.constant dense<0.000000e+00> : vector<1x16xf32>
    %22 = vector.multi_reduction <add>, %21, %cst_16 [2] : vector<1x16x20xf32> to vector<1x16xf32>
    %23 = vector.shape_cast %22 : vector<1x16xf32> to vector<1x1x16xf32>
    %c0_17 = arith.constant 0 : index
    %c0_18 = arith.constant 0 : index
    %c0_19 = arith.constant 0 : index
    %24 = vector.load %arg6[%c0_17, %c0_18, %c0_19] : memref<1x1x16xf32, #tpu.memory_space<vmem>>, vector<1x1x16xf32>
    tpu.vector_store %arg6[%c0_17, %c0_18, %c0_19], %23 {strides = array<i32>} : memref<1x1x16xf32, #tpu.memory_space<vmem>>, vector<1x1x16xf32>,
    return
  }
  func.func @transform_0(%arg0: i32) -> (i32, i32, i32) {
    %c0_i32 = arith.constant 0 : i32
    %c0_i32_0 = arith.constant 0 : i32
    %c0_i32_1 = arith.constant 0 : i32
    return %arg0, %c0_i32, %c0_i32_0 : i32, i32, i32
  }
  func.func @transform_1(%arg0: i32) -> (i32, i32, i32) {
    %c0_i32 = arith.constant 0 : i32
    %c0_i32_0 = arith.constant 0 : i32
    %c0_i32_1 = arith.constant 0 : i32
    %c0_i32_2 = arith.constant 0 : i32
    return %c0_i32, %c0_i32_0, %c0_i32_1 : i32, i32, i32
  }
  func.func @transform_2(%arg0: i32) -> (i32, i32, i32) {
    %c0_i32 = arith.constant 0 : i32
    %c0_i32_0 = arith.constant 0 : i32
    %c0_i32_1 = arith.constant 0 : i32
    %c0_i32_2 = arith.constant 0 : i32
    return %c0_i32, %c0_i32_0, %c0_i32_1 : i32, i32, i32
  }
  func.func @transform_3(%arg0: i32) -> (i32, i32, i32) {
    %c0_i32 = arith.constant 0 : i32
    %c0_i32_0 = arith.constant 0 : i32
    %c0_i32_1 = arith.constant 0 : i32
    return %arg0, %c0_i32, %c0_i32_0 : i32, i32, i32
  }
  func.func @transform_4(%arg0: i32) -> (i32, i32, i32) {
    %c0_i32 = arith.constant 0 : i32
    %c0_i32_0 = arith.constant 0 : i32
    %c0_i32_1 = arith.constant 0 : i32
    return %arg0, %c0_i32, %c0_i32_0 : i32, i32, i32
  }
  func.func @transform_5(%arg0: i32) -> (i32, i32, i32) {
    %c0_i32 = arith.constant 0 : i32
    %c0_i32_0 = arith.constant 0 : i32
    %c0_i32_1 = arith.constant 0 : i32
    return %arg0, %c0_i32, %c0_i32_0 : i32, i32, i32
  }
}

</mosaic_0001>

<bundles_post_ra>
// kernel: _lambda_.8
= control target key start
LH: loop header
LB: loop body
LE: loop exit
PB: predicated region body
PF: predicated region fallthrough
CT: control target
= control target key end

     0   :  { %s581_s12 = smov 0   ;;  %s709_s0 = inlined_call_operand.vmem [shape: bf16[320,64], index: 0, kind: input, shape index: {}]   ;;  %s710_s1 = inlined_call_operand.vmem [shape: f32[1,64], index: 1, kind: input, shape index: {}]   ;;  %s711_s2 = inlined_call_operand.vmem [shape: f32[1,64], index: 2, kind: input, shape index: {}]   ;;  %s712_s3 = inlined_call_operand.vmem [shape: bf16[320,64], index: 3, kind: output, shape index: {}]  }
   0x1 LB: > { %s445_s13 = sadd.s32 4294967295, %s559_s12   ;;  %p449_p0 = scmp.ge.s32.totalorder %s559_s12, 1  ;;  %s559_s12 = sphi %s581_s12, %s13_s12  }
   0x2   : > { %p138_p1 = scmp.lt.s32.totalorder %s559_s12, 3 }
   0x4   : > { %p139_p2 = pnand %p449_p0, %p138_p1 }
   0x5   : > { %s162_s14 = smul.u32 (!%p139_p2), 20, %s445_s13 }
   0x6   : > { %142 = sbr.rel (%p139_p2) target bundleno = 46 (0x2e), region = 32 }
   0x7   : > { %p163_p3 = scmp.lt.s32.totalorder (!%p139_p2), %s162_s14, 39 }
   0xb   : > { %s714_s14 = smov (!%p163_p3, %s162_s14), 39  ;;  %v602_v0 = vld [vmem:[%s710_s1] ss:$0 sm:$0xff]  ;;  %vm368_vm0 = vcmask 519168  }
   0xc   : > { %s450_s15 = sshll.u32 %s714_s14, 2  ;;  %v611_v9 = vld [vmem:[%s711_s2] ss:$0 sm:$0xff] }
   0xd   : > { %s597_s18 = scalar_lea.vmem %s709_s0, %s450_s15  ;;  %s634_s25 = scalar_lea.vmem %s712_s3, %s450_s15 }
   0xe   : > { %v497_v1 = vld [vmem:[%s597_s18] sm:$0xff]   ;;  %v536_v2 = vld [vmem:[%s597_s18 + $0x8] sm:$0xff]   ;;  %v537_v3 = vld [vmem:[%s597_s18 + $0x10] sm:$0xff]  }
   0xf   : > { %v498_v4 = vunpack.c.l.bf16 %v497_v1  ;;  %v499_v5 = vunpack.c.h.bf16 %v497_v1  ;;  %v502_v6 = vunpack.c.l.bf16 %v536_v2  ;;  %v503_v7 = vunpack.c.h.bf16 %v536_v2  ;;  %v538_v8 = vld [vmem:[%s597_s18 + $0x18] sm:$0xff]   ;;  %v539_v38 = vld [vmem:[%s597_s18 + $0x20] sm:$0xff]   ;;  %v540_v39 = vld [vmem:[%s597_s18 + $0x28] sm:$0xff]  }
  0x10   : > { %v506_v10 = vunpack.c.l.bf16 %v537_v3  ;;  %v507_v11 = vunpack.c.h.bf16 %v537_v3  ;;  %v510_v12 = vunpack.c.l.bf16 %v538_v8  ;;  %v511_v13 = vunpack.c.h.bf16 %v538_v8  ;;  %v541_v44 = vld [vmem:[%s597_s18 + $0x30] sm:$0xff]   ;;  %v542_v45 = vld [vmem:[%s597_s18 + $0x38] sm:$0xff]  }
  0x11   : > { %v221_v14 = vmul.f32 %v498_v4, %v602_v0  ;;  %v222_v15 = vmul.f32 %v499_v5, %v602_v0  ;;  %v223_v16 = vmul.f32 %v502_v6, %v602_v0  ;;  %v224_v17 = vmul.f32 %v503_v7, %v602_v0 }
  0x12   : > { %v225_v18 = vmul.f32 %v506_v10, %v602_v0  ;;  %v226_v19 = vmul.f32 %v507_v11, %v602_v0  ;;  %v227_v20 = vmul.f32 %v510_v12, %v602_v0  ;;  %v228_v21 = vmul.f32 %v511_v13, %v602_v0 }
  0x13   : > { %v248_v22 = vadd.f32 %v611_v9, %v221_v14  ;;  %v249_v23 = vadd.f32 %v611_v9, %v222_v15  ;;  %v250_v24 = vadd.f32 %v611_v9, %v223_v16  ;;  %v251_v25 = vadd.f32 %v611_v9, %v224_v17 }
  0x14   : > { %v252_v26 = vadd.f32 %v611_v9, %v225_v18  ;;  %v253_v27 = vadd.f32 %v611_v9, %v226_v19  ;;  %v254_v28 = vadd.f32 %v611_v9, %v227_v20  ;;  %v255_v29 = vadd.f32 %v611_v9, %v228_v21  ;;  %v543_v20 = vld [vmem:[%s597_s18 + $0x40] sm:$0xff]   ;;  %v544_v21 = vld [vmem:[%s597_s18 + $0x48] sm:$0xff]  }
  0x15   : > { %v268_v30 = vmax.f32 %v248_v22, 0.0  ;;  %v269_v31 = vmax.f32 %v249_v23, 0.0  ;;  %v270_v32 = vmax.f32 %v250_v24, 0.0  ;;  %v271_v33 = vmax.f32 %v251_v25, 0.0 }
  0x16   : > { %v272_v34 = vmax.f32 %v252_v26, 0.0  ;;  %v273_v35 = vmax.f32 %v253_v27, 0.0  ;;  %v274_v36 = vmax.f32 %v254_v28, 0.0  ;;  %v275_v37 = vmax.f32 %v255_v29, 0.0 }
  0x17   : > { %v476_v40 = vpack.c.bf16 %v268_v30, %v268_v30  ;;  %v477_v41 = vpack.c.bf16 %v269_v31, %v269_v31  ;;  %v478_v42 = vpack.c.bf16 %v270_v32, %v270_v32  ;;  %v479_v43 = vpack.c.bf16 %v271_v33, %v271_v33 }
  0x18   : > { %v480_v46 = vpack.c.bf16 %v272_v34, %v272_v34  ;;  %v481_v47 = vpack.c.bf16 %v273_v35, %v273_v35  ;;  %v482_v48 = vpack.c.bf16 %v274_v36, %v274_v36  ;;  %v483_v49 = vpack.c.bf16 %v275_v37, %v275_v37 }
  0x19   : > { %369 = vst.msk [vmem:[%s634_s25] sm:$0xf] %vm368_vm0, %v476_v40  ;;  %370 = vst.msk [vmem:[%s634_s25 + $0x4] sm:$0xf] %vm368_vm0, %v477_v41  ;;  %v514_v50 = vunpack.c.l.bf16 %v539_v38  ;;  %v515_v51 = vunpack.c.h.bf16 %v539_v38  ;;  %v518_v52 = vunpack.c.l.bf16 %v540_v39  ;;  %v519_v53 = vunpack.c.h.bf16 %v540_v39 }
  0x1a   : > { %371 = vst.msk [vmem:[%s634_s25 + $0x8] sm:$0xf] %vm368_vm0, %v478_v42  ;;  %372 = vst.msk [vmem:[%s634_s25 + $0xc] sm:$0xf] %vm368_vm0, %v479_v43  ;;  %v522_v54 = vunpack.c.l.bf16 %v541_v44  ;;  %v523_v55 = vunpack.c.h.bf16 %v541_v44  ;;  %v526_v56 = vunpack.c.l.bf16 %v542_v45  ;;  %v527_v57 = vunpack.c.h.bf16 %v542_v45 }
  0x1b   : > { %373 = vst.msk [vmem:[%s634_s25 + $0x10] sm:$0xf] %vm368_vm0, %v480_v46  ;;  %374 = vst.msk [vmem:[%s634_s25 + $0x14] sm:$0xf] %vm368_vm0, %v481_v47  ;;  %v229_v58 = vmul.f32 %v514_v50, %v602_v0  ;;  %v230_v59 = vmul.f32 %v515_v51, %v602_v0  ;;  %v231_v60 = vmul.f32 %v518_v52, %v602_v0  ;;  %v530_v30 = vunpack.c.l.bf16 %v543_v20 }
  0x1c   : > { %375 = vst.msk [vmem:[%s634_s25 + $0x18] sm:$0xf] %vm368_vm0, %v482_v48  ;;  %376 = vst.msk [vmem:[%s634_s25 + $0x1c] sm:$0xf] %vm368_vm0, %v483_v49  ;;  %v232_v61 = vmul.f32 %v519_v53, %v602_v0  ;;  %v233_v62 = vmul.f32 %v522_v54, %v602_v0  ;;  %v234_v63 = vmul.f32 %v523_v55, %v602_v0  ;;  %v531_v31 = vunpack.c.h.bf16 %v543_v20 }
  0x1d   : > { %v235_v1 = vmul.f32 %v526_v56, %v602_v0  ;;  %v236_v2 = vmul.f32 %v527_v57, %v602_v0  ;;  %v256_v3 = vadd.f32 %v611_v9, %v229_v58  ;;  %v257_v4 = vadd.f32 %v611_v9, %v230_v59 }
  0x1e   : > { %v258_v5 = vadd.f32 %v611_v9, %v231_v60  ;;  %v259_v6 = vadd.f32 %v611_v9, %v232_v61  ;;  %v260_v7 = vadd.f32 %v611_v9, %v233_v62  ;;  %v261_v8 = vadd.f32 %v611_v9, %v234_v63 }
  0x1f   : > { %v262_v10 = vadd.f32 %v611_v9, %v235_v1  ;;  %v263_v11 = vadd.f32 %v611_v9, %v236_v2  ;;  %v276_v12 = vmax.f32 %v256_v3, 0.0  ;;  %v277_v13 = vmax.f32 %v257_v4, 0.0 }
  0x20   : > { %v278_v14 = vmax.f32 %v258_v5, 0.0  ;;  %v279_v15 = vmax.f32 %v259_v6, 0.0  ;;  %v280_v16 = vmax.f32 %v260_v7, 0.0  ;;  %v281_v17 = vmax.f32 %v261_v8, 0.0 }
  0x21   : > { %v282_v18 = vmax.f32 %v262_v10, 0.0  ;;  %v283_v19 = vmax.f32 %v263_v11, 0.0  ;;  %v484_v22 = vpack.c.bf16 %v276_v12, %v276_v12  ;;  %v485_v23 = vpack.c.bf16 %v277_v13, %v277_v13 }
  0x22   : > { %v486_v24 = vpack.c.bf16 %v278_v14, %v278_v14  ;;  %v487_v25 = vpack.c.bf16 %v279_v15, %v279_v15  ;;  %v488_v26 = vpack.c.bf16 %v280_v16, %v280_v16  ;;  %v489_v27 = vpack.c.bf16 %v281_v17, %v281_v17 }
  0x23   : > { %v490_v28 = vpack.c.bf16 %v282_v18, %v282_v18  ;;  %v491_v29 = vpack.c.bf16 %v283_v19, %v283_v19  ;;  %377 = vst.msk [vmem:[%s634_s25 + $0x20] sm:$0xf] %vm368_vm0, %v484_v22  ;;  %378 = vst.msk [vmem:[%s634_s25 + $0x24] sm:$0xf] %vm368_vm0, %v485_v23  ;;  %v534_v32 = vunpack.c.l.bf16 %v544_v21  ;;  %v535_v33 = vunpack.c.h.bf16 %v544_v21 }
  0x24   : > { %379 = vst.msk [vmem:[%s634_s25 + $0x28] sm:$0xf] %vm368_vm0, %v486_v24  ;;  %380 = vst.msk [vmem:[%s634_s25 + $0x2c] sm:$0xf] %vm368_vm0, %v487_v25  ;;  %v237_v34 = vmul.f32 %v530_v30, %v602_v0  ;;  %v238_v35 = vmul.f32 %v531_v31, %v602_v0 }
  0x25   : > { %381 = vst.msk [vmem:[%s634_s25 + $0x30] sm:$0xf] %vm368_vm0, %v488_v26  ;;  %382 = vst.msk [vmem:[%s634_s25 + $0x34] sm:$0xf] %vm368_vm0, %v489_v27  ;;  %v239_v36 = vmul.f32 %v534_v32, %v602_v0  ;;  %v240_v37 = vmul.f32 %v535_v33, %v602_v0 }
  0x26   : > { %383 = vst.msk [vmem:[%s634_s25 + $0x38] sm:$0xf] %vm368_vm0, %v490_v28  ;;  %384 = vst.msk [vmem:[%s634_s25 + $0x3c] sm:$0xf] %vm368_vm0, %v491_v29  ;;  %v264_v38 = vadd.f32 %v611_v9, %v237_v34  ;;  %v265_v39 = vadd.f32 %v611_v9, %v238_v35 }
  0x27   : > { %v266_v40 = vadd.f32 %v611_v9, %v239_v36  ;;  %v267_v41 = vadd.f32 %v611_v9, %v240_v37 }
  0x28   : > { %v284_v42 = vmax.f32 %v264_v38, 0.0  ;;  %v285_v43 = vmax.f32 %v265_v39, 0.0 }
  0x29   : > { %v286_v44 = vmax.f32 %v266_v40, 0.0  ;;  %v287_v45 = vmax.f32 %v267_v41, 0.0 }
  0x2a   : > { %v492_v46 = vpack.c.bf16 %v284_v42, %v284_v42  ;;  %v493_v47 = vpack.c.bf16 %v285_v43, %v285_v43 }
  0x2b   : > { %v494_v48 = vpack.c.bf16 %v286_v44, %v286_v44  ;;  %v495_v49 = vpack.c.bf16 %v287_v45, %v287_v45 }
  0x2c   : > { %385 = vst.msk [vmem:[%s634_s25 + $0x40] sm:$0xf] %vm368_vm0, %v492_v46  ;;  %386 = vst.msk [vmem:[%s634_s25 + $0x44] sm:$0xf] %vm368_vm0, %v493_v47 }
  0x2d   : > { %387 = vst.msk [vmem:[%s634_s25 + $0x48] sm:$0xf] %vm368_vm0, %v494_v48  ;;  %388 = vst.msk [vmem:[%s634_s25 + $0x4c] sm:$0xf] %vm368_vm0, %v495_v49 }
  0x2e PF: > { %s13_s12 = sadd.s32 1, %s559_s12  }
  0x2f   : > { %p10_p4 = scmp.ge.s32.totalorder %s13_s12, 4  }
  0x31   :  { %12 = sbr.rel (!%p10_p4) target bundleno = 1 (0x1), region = 62 }

// kernel: _lambda_.7
= control target key start
LH: loop header
LB: loop body
LE: loop exit
PB: predicated region body
PF: predicated region fallthrough
CT: control target
= control target key end

     0   :  { %s1020_s12 = smov 0   ;;  %s1258_s0 = inlined_call_operand.vmem [shape: bf16[320,147], index: 0, kind: input, shape index: {}]   ;;  %s1259_s1 = inlined_call_operand.vmem [shape: bf16[147,64], index: 1, kind: input, shape index: {}]   ;;  %s1260_s2 = inlined_call_operand.vmem [shape: bf16[320,64], index: 2, kind: output, shape index: {0}]   ;;  %s1261_s3 = inlined_call_operand.vmem [shape: f32[2,2,64], index: 3, kind: output, shape index: {1}]  }
   0x1 LB: > { %s1026_s13 = sadd.s32 4294967295, %s996_s12   ;;  %p832_p0 = scmp.ge.s32.totalorder %s996_s12, 1  ;;  %s996_s12 = sphi %s1020_s12, %s14_s12  }
   0x2   : > { %p142_p1 = scmp.lt.s32.totalorder %s996_s12, 3 }
   0x4   : > { %p143_p2 = pnand %p832_p0, %p142_p1 }
   0x5   : > { %s171_s20 = smul.u32 (!%p143_p2), 20, %s1026_s13  ;;  %p184_p4 = scmp.lt.s32.totalorder (!%p143_p2), %s1026_s13, 1 }
   0x6   : > { %146 = sbr.rel (%p143_p2) target bundleno = 320 (0x140), region = 28 }
   0x7   : > { %p172_p3 = scmp.lt.s32.totalorder (!%p143_p2), %s171_s20, 39 }
   0xb   : > { %v950_v0 = vld [vmem:[%s1259_s1 + $0x38] sm:$0xff]   ;;  %v998_v1 = vmov 0   ;;  %v951_v2 = vld [vmem:[%s1259_s1 + $0x30] sm:$0xff]   ;;  %v952_v3 = vld [vmem:[%s1259_s1 + $0x28] sm:$0xff]   ;;  %s1263_s20 = smov (!%p172_p3, %s171_s20), 39  ;;  %vm375_vm0 = vcmask 154624  }
   0xc   : > { %413 = vmatprep.subr.bf16.mxu0 %v998_v1  ;;  %920 = vmatprep.subr.bf16.mxu1 %v998_v1  ;;  %v953_v4 = vld [vmem:[%s1259_s1 + $0x20] sm:$0xff]   ;;  %s899_s23 = sshll.u32 %s1263_s20, 3  ;;  %v954_v5 = vld [vmem:[%s1259_s1 + $0x18] sm:$0xff]   ;;  %v955_v7 = vld [vmem:[%s1259_s1 + $0x10] sm:$0xff]   ;;  %vm406_vm1 = vcmask 1040384   ;;  %vm407_vm2 = vcmask 1041408  }
   0xd   : > { %414 = vmatpush1.bf16.msra.mxu0 %v950_v0  ;;  %930 = vmatpush1.bf16.msra.mxu1 %v950_v0  ;;  %s1052_s28 = scalar_lea.vmem %s1258_s0, %s899_s23  ;;  %v956_v9 = vld [vmem:[%s1259_s1 + $0x8] sm:$0xff]   ;;  %v999_v10 = vmov 65535   ;;  %v957_v12 = vld [vmem:[%s1259_s1] sm:$0xff]   ;;  %s835_s14 = sshll.u32 %s1263_s20, 2  ;;  %vm606_vm3 = vcmask 519168   ;;  %vm627_vm4 = vcmask 523264  }
   0xe   : > { %415 = vmatprep.subr.bf16.mxu0 %v998_v1  ;;  %921 = vmatprep.subr.bf16.mxu1 %v998_v1  ;;  %v962_v6 = vld [vmem:[%s1052_s28 + $0x4] ss:$8 sps:$4 sm:$0xff]   ;;  %v968_v8 = vld [vmem:[%s1052_s28 + $0x54] ss:$8 sps:$4 sm:$0xff]   ;;  %v408_v11 = vsel %vm406_vm1, 4294967295, %v999_v10  ;;  %s1104_s17 = scalar_lea.vmem %s1260_s2, %s835_s14  ;;  %s1265_s13 = smov (!%p184_p4, %s1026_s13), 1 }
   0xf   : > { %867 = vmatprep.mubr.msk.bf16.mxu0 %vm375_vm0, %v962_v6  ;;  %872 = vmatprep.mubr.msk.bf16.mxu1 %vm375_vm0, %v968_v8  ;;  %v958_v13 = vld [vmem:[%s1259_s1 + $0x48] ss:$0 sps:$4 sm:$0x33]   ;;  %v409_v14 = vsel %vm407_vm2, %v408_v11, 0  ;;  %v959_v16 = vld [vmem:[%s1259_s1 + $0x40] sm:$0xff]   ;;  %s836_s18 = sshll.u32 %s1265_s13, 1 }
  0x10   : > { %v411_v15 = vand.u32 %v958_v13, %v409_v14  ;;  %v960_v17 = vld [vmem:[%s1052_s28] ss:$8 sps:$4 sm:$0xff]   ;;  %v966_v18 = vld [vmem:[%s1052_s28 + $0x50] ss:$8 sps:$4 sm:$0xff]   ;;  %v963_v19 = vld [vmem:[%s1052_s28 + $0x14] ss:$8 sps:$4 sm:$0xff]   ;;  %s187_s21 = scalar_lea.vmem %s1261_s3, %s836_s18 }
  0x11   : > { %416 = vmatpush1.bf16.msra.mxu0 %v951_v2  ;;  %931 = vmatpush1.bf16.msra.mxu1 %v951_v2  ;;  %v972_v20 = vld [vmem:[%s1052_s28 + $0x64] ss:$8 sps:$4 sm:$0xff]   ;;  %v965_v21 = vld [vmem:[%s1052_s28 + $0x10] ss:$8 sps:$4 sm:$0xff]   ;;  %v974_v22 = vld [vmem:[%s1052_s28 + $0x60] ss:$8 sps:$4 sm:$0xff]  }
  0x12   : > { %417 = vmatprep.subr.bf16.mxu0 %v998_v1  ;;  %922 = vmatprep.subr.bf16.mxu1 %v998_v1  ;;  %v969_v23 = vld [vmem:[%s1052_s28 + $0x24] ss:$8 sps:$4 sm:$0xff]   ;;  %v978_v24 = vld [vmem:[%s1052_s28 + $0x74] ss:$8 sps:$4 sm:$0xff]   ;;  %v971_v25 = vld [vmem:[%s1052_s28 + $0x20] ss:$8 sps:$4 sm:$0xff]  }
  0x13   : > { %v980_v26 = vld [vmem:[%s1052_s28 + $0x70] ss:$8 sps:$4 sm:$0xff]   ;;  %v975_v27 = vld [vmem:[%s1052_s28 + $0x34] ss:$8 sps:$4 sm:$0xff]   ;;  %v984_v28 = vld [vmem:[%s1052_s28 + $0x84] ss:$8 sps:$4 sm:$0xff]  }
  0x14   : > { %v977_v29 = vld [vmem:[%s1052_s28 + $0x30] ss:$8 sps:$4 sm:$0xff]   ;;  %v986_v30 = vld [vmem:[%s1052_s28 + $0x80] ss:$8 sps:$4 sm:$0xff]   ;;  %v981_v31 = vld [vmem:[%s1052_s28 + $0x44] ss:$8 sps:$4 sm:$0xff]  }
  0x15   : > { %418 = vmatpush1.bf16.msra.mxu0 %v952_v3  ;;  %932 = vmatpush1.bf16.msra.mxu1 %v952_v3  ;;  %v987_v32 = vld [vmem:[%s1052_s28 + $0x94] ss:$8 sps:$4 sm:$0xff]   ;;  %v983_v33 = vld [vmem:[%s1052_s28 + $0x40] ss:$8 sps:$4 sm:$0xff]   ;;  %v989_v34 = vld [vmem:[%s1052_s28 + $0x90] ss:$8 sps:$4 sm:$0xff]  }
  0x16   : > { %419 = vmatprep.subr.bf16.mxu0 %v998_v1  ;;  %923 = vmatprep.subr.bf16.mxu1 %v998_v1  ;;  %vm739_vm5 = vcmask 517120  }
  0x19   : > { %420 = vmatpush1.bf16.msra.mxu0 %v953_v4  ;;  %933 = vmatpush1.bf16.msra.mxu1 %v953_v4 }
  0x1a   : > { %421 = vmatprep.subr.bf16.mxu0 %v998_v1  ;;  %924 = vmatprep.subr.bf16.mxu1 %v998_v1 }
  0x1d   : > { %422 = vmatpush1.bf16.msra.mxu0 %v954_v5  ;;  %934 = vmatpush1.bf16.msra.mxu1 %v954_v5 }
  0x1e   : > { %423 = vmatprep.subr.bf16.mxu0 %v998_v1  ;;  %925 = vmatprep.subr.bf16.mxu1 %v998_v1 }
  0x21   : > { %424 = vmatpush1.bf16.msra.mxu0 %v955_v7  ;;  %935 = vmatpush1.bf16.msra.mxu1 %v955_v7 }
  0x22   : > { %425 = vmatprep.subr.bf16.mxu0 %v998_v1  ;;  %926 = vmatprep.subr.bf16.mxu1 %v998_v1 }
  0x25   : > { %426 = vmatpush1.bf16.msra.mxu0 %v956_v9  ;;  %936 = vmatpush1.bf16.msra.mxu1 %v956_v9 }
  0x26   : > { %427 = vmatprep.subr.bf16.mxu0 %v998_v1  ;;  %927 = vmatprep.subr.bf16.mxu1 %v998_v1 }
  0x29   : > { %428 = vmatpush1.bf16.msra.mxu0 %v957_v12  ;;  %937 = vmatpush1.bf16.msra.mxu1 %v957_v12 }
  0x2a   : > { %441 = vmatprep.subr.bf16.mxu0 %v998_v1  ;;  %928 = vmatprep.subr.bf16.mxu1 %v998_v1 }
  0x2d   : > { %442 = vmatpush2.bf16.msra.mxu0 %v411_v15  ;;  %938 = vmatpush2.bf16.msra.mxu1 %v411_v15 }
  0x2e   : > { %443 = vmatprep.subr.bf16.mxu0 %v998_v1  ;;  %929 = vmatprep.subr.bf16.mxu1 %v998_v1 }
  0x31   : > { %444 = vmatpush2.bf16.msra.mxu0 %v959_v16  ;;  %939 = vmatpush2.bf16.msra.mxu1 %v959_v16 }
  0x34   : > { %446 = vmatmul.mubr.bf16.vlgmr.msra.gmra.mxu0 %v960_v17  ;;  %486 = vmatmul.mubr.bf16.vlgmr.msra.gmra.mxu1 %v966_v18 }
  0x35   : > { %868 = vmatprep.mubr.msk.bf16.mxu0 %vm375_vm0, %v963_v19  ;;  %873 = vmatprep.mubr.msk.bf16.mxu1 %vm375_vm0, %v972_v20 }
  0x3c   : > { %454 = vmatmul.mubr.bf16.gmra.mxu0 %v965_v21  ;;  %494 = vmatmul.mubr.bf16.gmra.mxu1 %v974_v22 }
  0x3d   : > { %869 = vmatprep.mubr.msk.bf16.mxu0 %vm375_vm0, %v969_v23  ;;  %874 = vmatprep.mubr.msk.bf16.mxu1 %vm375_vm0, %v978_v24 }
  0x44   : > { %462 = vmatmul.mubr.bf16.gmra.mxu0 %v971_v25  ;;  %502 = vmatmul.mubr.bf16.gmra.mxu1 %v980_v26 }
  0x45   : > { %870 = vmatprep.mubr.msk.bf16.mxu0 %vm375_vm0, %v975_v27  ;;  %875 = vmatprep.mubr.msk.bf16.mxu1 %vm375_vm0, %v984_v28 }
  0x4c   : > { %470 = vmatmul.mubr.bf16.gmra.mxu0 %v977_v29  ;;  %510 = vmatmul.mubr.bf16.gmra.mxu1 %v986_v30 }
  0x4d   : > { %871 = vmatprep.mubr.msk.bf16.mxu0 %vm375_vm0, %v981_v31  ;;  %876 = vmatprep.mubr.msk.bf16.mxu1 %vm375_vm0, %v987_v32 }
  0x54   : > { %478 = vmatmul.mubr.bf16.gmra.mxu0 %v983_v33  ;;  %518 = vmatmul.mubr.bf16.gmra.mxu1 %v989_v34 }
  0xf4   : > { %v447_v35 = vpop.f32.mrf.mxu0  ;;  %v1106_v36 = vpop.f32.mrf.mxu1 }
  0xf5   : > { %v900_v37 = vpack.c.bf16 %v447_v35, %v447_v35  ;;  %v910_v38 = vpack.c.bf16 %v1106_v36, %v1106_v36  ;;  %v673_v2 = vmul.f32 %v447_v35, %v447_v35  ;;  %v628_v5 = vsel %vm627_vm4, %v447_v35, 0.0 }
  0xf6   : > { %v449_v39 = vpop.f32.mrf.mxu0  ;;  %v489_v40 = vpop.f32.mrf.mxu1 }
  0xf7   : > { %607 = vst.msk [vmem:[%s1104_s17] sm:$0xf] %vm606_vm3, %v900_v37  ;;  %617 = vst.msk [vmem:[%s1104_s17 + $0x28] sm:$0xf] %vm606_vm3, %v910_v38  ;;  %v693_v16 = vsel %vm627_vm4, %v673_v2, 0.0 }
  0xf8   : > { %v450_v41 = vpop.f32.mrf.mxu0  ;;  %v1114_v42 = vpop.f32.mrf.mxu1 }
  0xf9   : > { %v901_v43 = vpack.c.bf16 %v450_v41, %v450_v41  ;;  %v911_v44 = vpack.c.bf16 %v1114_v42, %v1114_v42  ;;  %v674_v59 = vmul.f32 %v450_v41, %v450_v41  ;;  %v629_v3 = vsel %vm627_vm4, %v450_v41, 0.0 }
  0xfa   : > { %v452_v45 = vpop.f32.mrf.mxu0  ;;  %v492_v46 = vpop.f32.mrf.mxu1  ;;  %v630_v13 = vadd.f32 %v629_v3, %v628_v5 }
  0xfb   : > { %608 = vst.msk [vmem:[%s1104_s17 + $0x4] sm:$0xf] %vm606_vm3, %v901_v43  ;;  %618 = vst.msk [vmem:[%s1104_s17 + $0x2c] sm:$0xf] %vm606_vm3, %v911_v44  ;;  %v694_v6 = vsel %vm627_vm4, %v674_v59, 0.0 }
  0xfc   : > { %v455_v47 = vpop.f32.mrf.mxu0  ;;  %v1122_v48 = vpop.f32.mrf.mxu1  ;;  %v695_v20 = vadd.f32 %v694_v6, %v693_v16  ;;  %v683_v6 = vmul.f32 %v1106_v36, %v1106_v36 }
  0xfd   : > { %v902_v49 = vpack.c.bf16 %v455_v47, %v455_v47  ;;  %v912_v50 = vpack.c.bf16 %v1122_v48, %v1122_v48  ;;  %v675_v4 = vmul.f32 %v455_v47, %v455_v47  ;;  %v631_v9 = vsel %vm627_vm4, %v455_v47, 0.0 }
  0xfe   : > { %v457_v51 = vpop.f32.mrf.mxu0  ;;  %v497_v52 = vpop.f32.mrf.mxu1  ;;  %v632_v21 = vadd.f32 %v631_v9, %v630_v13 }
  0xff   : > { %609 = vst.msk [vmem:[%s1104_s17 + $0x8] sm:$0xf] %vm606_vm3, %v902_v49  ;;  %619 = vst.msk [vmem:[%s1104_s17 + $0x30] sm:$0xf] %vm606_vm3, %v912_v50  ;;  %v696_v17 = vsel %vm627_vm4, %v675_v4, 0.0 }
 0x100   : > { %v458_v53 = vpop.f32.mrf.mxu0  ;;  %v1130_v54 = vpop.f32.mrf.mxu1  ;;  %v697_v29 = vadd.f32 %v696_v17, %v695_v20  ;;  %v647_v20 = vsel %vm627_vm4, %v1106_v36, 0.0 }
 0x101   : > { %v903_v55 = vpack.c.bf16 %v458_v53, %v458_v53  ;;  %v913_v56 = vpack.c.bf16 %v1130_v54, %v1130_v54  ;;  %v676_v10 = vmul.f32 %v458_v53, %v458_v53  ;;  %v633_v18 = vsel %vm627_vm4, %v458_v53, 0.0 }
 0x102   : > { %v460_v57 = vpop.f32.mrf.mxu0  ;;  %v500_v58 = vpop.f32.mrf.mxu1  ;;  %v634_v30 = vadd.f32 %v633_v18, %v632_v21  ;;  %v684_v21 = vmul.f32 %v1114_v42, %v1114_v42 }
 0x103   : > { %610 = vst.msk [vmem:[%s1104_s17 + $0xc] sm:$0xf] %vm606_vm3, %v903_v55  ;;  %620 = vst.msk [vmem:[%s1104_s17 + $0x34] sm:$0xf] %vm606_vm3, %v913_v56  ;;  %v698_v25 = vsel %vm627_vm4, %v676_v10, 0.0 }
 0x104   : > { %v463_v60 = vpop.f32.mrf.mxu0  ;;  %v1138_v61 = vpop.f32.mrf.mxu1  ;;  %v699_v37 = vadd.f32 %v698_v25, %v697_v29 }
 0x105   : > { %v904_v62 = vpack.c.bf16 %v463_v60, %v463_v60  ;;  %v914_v63 = vpack.c.bf16 %v1138_v61, %v1138_v61  ;;  %v677_v19 = vmul.f32 %v463_v60, %v463_v60  ;;  %v635_v26 = vsel %vm627_vm4, %v463_v60, 0.0 }
 0x106   : > { %v465_v0 = vpop.f32.mrf.mxu0  ;;  %v505_v1 = vpop.f32.mrf.mxu1  ;;  %v636_v38 = vadd.f32 %v635_v26, %v634_v30  ;;  %v712_v26 = vsel %vm627_vm4, %v683_v6, 0.0  ;;  %v714_v30 = vsel %vm627_vm4, %v684_v21, 0.0 }
 0x107   : > { %611 = vst.msk [vmem:[%s1104_s17 + $0x10] sm:$0xf] %vm606_vm3, %v904_v62  ;;  %621 = vst.msk [vmem:[%s1104_s17 + $0x38] sm:$0xf] %vm606_vm3, %v914_v63  ;;  %v700_v33 = vsel %vm627_vm4, %v677_v19, 0.0 }
 0x108   : > { %v466_v7 = vpop.f32.mrf.mxu0  ;;  %v1149_v8 = vpop.f32.mrf.mxu1  ;;  %v701_v47 = vadd.f32 %v700_v33, %v699_v37  ;;  %v687_v37 = vmul.f32 %v1138_v61, %v1138_v61 }
 0x109   : > { %v905_v11 = vpack.c.bf16 %v466_v7, %v466_v7  ;;  %v915_v12 = vpack.c.bf16 %v1149_v8, %v1149_v8  ;;  %v678_v22 = vmul.f32 %v466_v7, %v466_v7  ;;  %v637_v34 = vsel %vm627_vm4, %v466_v7, 0.0 }
 0x10a   : > { %v468_v14 = vpop.f32.mrf.mxu0  ;;  %v508_v15 = vpop.f32.mrf.mxu1  ;;  %v638_v49 = vadd.f32 %v637_v34, %v636_v38 }
 0x10b   : > { %612 = vst.msk [vmem:[%s1104_s17 + $0x14] sm:$0xf] %vm606_vm3, %v905_v11  ;;  %622 = vst.msk [vmem:[%s1104_s17 + $0x3c] sm:$0xf] %vm606_vm3, %v915_v12  ;;  %v702_v39 = vsel %vm627_vm4, %v678_v22, 0.0 }
 0x10c   : > { %v471_v23 = vpop.f32.mrf.mxu0  ;;  %v1161_v24 = vpop.f32.mrf.mxu1  ;;  %v703_v55 = vadd.f32 %v702_v39, %v701_v47 }
 0x10d   : > { %v906_v27 = vpack.c.bf16 %v471_v23, %v471_v23  ;;  %v916_v28 = vpack.c.bf16 %v1161_v24, %v1161_v24  ;;  %v679_v35 = vmul.f32 %v471_v23, %v471_v23  ;;  %v639_v43 = vsel %vm627_vm4, %v471_v23, 0.0 }
 0x10e   : > { %v473_v31 = vpop.f32.mrf.mxu0  ;;  %v513_v32 = vpop.f32.mrf.mxu1  ;;  %v640_v56 = vadd.f32 %v639_v43, %v638_v49  ;;  %v688_v43 = vmul.f32 %v1149_v8, %v1149_v8  ;;  %v689_v47 = vmul.f32 %v1161_v24, %v1161_v24 }
 0x10f   : > { %613 = vst.msk [vmem:[%s1104_s17 + $0x18] sm:$0xf] %vm606_vm3, %v906_v27  ;;  %623 = vst.msk [vmem:[%s1104_s17 + $0x40] sm:$0xf] %vm606_vm3, %v916_v28  ;;  %v704_v52 = vsel %vm627_vm4, %v679_v35, 0.0  ;;  %v649_v27 = vsel %vm627_vm4, %v1114_v42, 0.0  ;;  %v685_v28 = vmul.f32 %v1122_v48, %v1122_v48  ;;  %v686_v32 = vmul.f32 %v1130_v54, %v1130_v54 }
 0x110   : > { %v474_v40 = vpop.f32.mrf.mxu0  ;;  %v1174_v41 = vpop.f32.mrf.mxu1  ;;  %v705_v1 = vadd.f32 %v704_v52, %v703_v55  ;;  %v651_v31 = vsel %vm627_vm4, %v1122_v48, 0.0  ;;  %v653_v42 = vsel %vm627_vm4, %v1130_v54, 0.0  ;;  %v655_v48 = vsel %vm627_vm4, %v1138_v61, 0.0 }
 0x111   : > { %v907_v44 = vpack.c.bf16 %v474_v40, %v474_v40  ;;  %v680_v45 = vmul.f32 %v474_v40, %v474_v40  ;;  %v917_v46 = vpack.c.bf16 %v1174_v41, %v1174_v41  ;;  %v641_v53 = vsel %vm627_vm4, %v474_v40, 0.0 }
 0x112   : > { %v476_v50 = vpop.f32.mrf.mxu0  ;;  %v516_v51 = vpop.f32.mrf.mxu1  ;;  %v642_v2 = vadd.f32 %v641_v53, %v640_v56  ;;  %v716_v35 = vsel %vm627_vm4, %v685_v28, 0.0  ;;  %v718_v40 = vsel %vm627_vm4, %v686_v32, 0.0  ;;  %v657_v54 = vsel %vm627_vm4, %v1149_v8, 0.0 }
 0x113   : > { %614 = vst.msk [vmem:[%s1104_s17 + $0x1c] sm:$0xf] %vm606_vm3, %v907_v44  ;;  %624 = vst.msk [vmem:[%s1104_s17 + $0x44] sm:$0xf] %vm606_vm3, %v917_v46  ;;  %v706_v57 = vsel %vm627_vm4, %v680_v45, 0.0  ;;  %v720_v46 = vsel %vm627_vm4, %v687_v37, 0.0  ;;  %v690_v52 = vmul.f32 %v1174_v41, %v1174_v41 }
 0x114   : > { %v479_v58 = vpop.f32.mrf.mxu0  ;;  %v1186_v59 = vpop.f32.mrf.mxu1  ;;  %v707_v7 = vadd.f32 %v706_v57, %v705_v1  ;;  %v722_v51 = vsel %vm627_vm4, %v688_v43, 0.0  ;;  %v659_v61 = vsel %vm627_vm4, %v1161_v24, 0.0  ;;  %v724_v56 = vsel %vm627_vm4, %v689_v47, 0.0 }
 0x115   : > { %v908_v60 = vpack.c.bf16 %v479_v58, %v479_v58  ;;  %v643_v62 = vsel %vm627_vm4, %v479_v58, 0.0  ;;  %v681_v63 = vmul.f32 %v479_v58, %v479_v58  ;;  %v918_v0 = vpack.c.bf16 %v1186_v59, %v1186_v59 }
 0x116   : > { %v481_v3 = vpop.f32.mrf.mxu0  ;;  %v521_v4 = vpop.f32.mrf.mxu1  ;;  %v644_v9 = vadd.f32 %v643_v62, %v642_v2  ;;  %v661_v8 = vsel %vm627_vm4, %v1174_v41, 0.0  ;;  %v691_v57 = vmul.f32 %v1186_v59, %v1186_v59  ;;  %v726_v62 = vsel %vm627_vm4, %v690_v52, 0.0 }
 0x117   : > { %615 = vst.msk [vmem:[%s1104_s17 + $0x20] sm:$0xf] %vm606_vm3, %v908_v60  ;;  %v708_v5 = vsel %vm627_vm4, %v681_v63, 0.0  ;;  %625 = vst.msk [vmem:[%s1104_s17 + $0x48] sm:$0xf] %vm606_vm3, %v918_v0  ;;  %v663_v24 = vsel %vm627_vm4, %v1186_v59, 0.0 }
 0x118   : > { %v482_v10 = vpop.f32.mrf.mxu0  ;;  %v522_v11 = vpop.f32.mrf.mxu1  ;;  %v709_v16 = vadd.f32 %v708_v5, %v707_v7  ;;  %v728_v2 = vsel %vm627_vm4, %v691_v57, 0.0 }
 0x119   : > { %v909_v12 = vpack.c.bf16 %v482_v10, %v482_v10  ;;  %v645_v13 = vsel %vm627_vm4, %v482_v10, 0.0  ;;  %v682_v14 = vmul.f32 %v482_v10, %v482_v10  ;;  %v919_v15 = vpack.c.bf16 %v522_v11, %v522_v11 }
 0x11a   : > { %v646_v17 = vadd.f32 %v645_v13, %v644_v9  ;;  %v484_v18 = vpop.f32.mrf.mxu0  ;;  %v524_v19 = vpop.f32.mrf.mxu1  ;;  %v692_v63 = vmul.f32 %v522_v11, %v522_v11  ;;  %v665_v3 = vsel %vm627_vm4, %v522_v11, 0.0 }
 0x11b   : > { %616 = vst.msk [vmem:[%s1104_s17 + $0x24] sm:$0xf] %vm606_vm3, %v909_v12  ;;  %v710_v22 = vsel %vm627_vm4, %v682_v14, 0.0  ;;  %626 = vst.msk [vmem:[%s1104_s17 + $0x4c] sm:$0xf] %vm606_vm3, %v919_v15 }
 0x11c   : > { %v648_v23 = vadd.f32 %v647_v20, %v646_v17  ;;  %v711_v25 = vadd.f32 %v710_v22, %v709_v16  ;;  %v730_v5 = vsel %vm627_vm4, %v692_v63, 0.0 }
 0x11e   : > { %v650_v36 = vadd.f32 %v649_v27, %v648_v23  ;;  %v713_v29 = vadd.f32 %v712_v26, %v711_v25 }
 0x120   : > { %v652_v33 = vadd.f32 %v651_v31, %v650_v36  ;;  %v715_v34 = vadd.f32 %v714_v30, %v713_v29 }
 0x122   : > { %v717_v38 = vadd.f32 %v716_v35, %v715_v34  ;;  %v654_v39 = vadd.f32 %v653_v42, %v652_v33 }
 0x124   : > { %v656_v44 = vadd.f32 %v655_v48, %v654_v39  ;;  %v719_v45 = vadd.f32 %v718_v40, %v717_v38 }
 0x126   : > { %v658_v49 = vadd.f32 %v657_v54, %v656_v44  ;;  %v721_v50 = vadd.f32 %v720_v46, %v719_v45 }
 0x128   : > { %v660_v53 = vadd.f32 %v659_v61, %v658_v49  ;;  %v723_v55 = vadd.f32 %v722_v51, %v721_v50 }
 0x12a   : > { %v725_v58 = vadd.f32 %v724_v56, %v723_v55  ;;  %v662_v60 = vadd.f32 %v661_v8, %v660_v53 }
 0x12c   : > { %v727_v0 = vadd.f32 %v726_v62, %v725_v58  ;;  %v664_v1 = vadd.f32 %v663_v24, %v662_v60 }
 0x12e   : > { %v729_v41 = vadd.f32 %v728_v2, %v727_v0  ;;  %v666_v4 = vadd.f32 %v665_v3, %v664_v1 }
 0x130   : > { %v667_v6 = vrot.slane %v666_v4, 4  ;;  %v731_v7 = vadd.f32 %v730_v5, %v729_v41 }
 0x132   : > { %v668_v9 = vadd.f32 %v667_v6, %v666_v4  ;;  %v732_v10 = vrot.slane %v731_v7, 4 }
 0x134   : > { %v669_v12 = vrot.slane %v668_v9, 2  ;;  %v733_v13 = vadd.f32 %v732_v10, %v731_v7 }
 0x136   : > { %v670_v59 = vadd.f32 %v669_v12, %v668_v9  ;;  %v734_v14 = vrot.slane %v733_v13, 2 }
 0x138   : > { %v671_v15 = vrot.slane %v670_v59, 1  ;;  %v735_v16 = vadd.f32 %v734_v14, %v733_v13 }
 0x13a   : > { %v736_v17 = vrot.slane %v735_v16, 1  ;;  %v672_v11 = vadd.f32 %v671_v15, %v670_v59 }
 0x13c   : > { %v737_v18 = vadd.f32 %v736_v17, %v735_v16 }
 0x13e   : > { %v738_v19 = vsel %vm406_vm1, %v672_v11, %v737_v18 }
 0x13f   : > { %740 = vst.msk [vmem:[%s187_s21] sm:$0x3] %vm739_vm5, %v738_v19 }
 0x140 PF: > { %s14_s12 = sadd.s32 1, %s996_s12  }
 0x141   : > { %p11_p5 = scmp.ge.s32.totalorder %s14_s12, 4  }
 0x143   :  { %13 = sbr.rel (!%p11_p5) target bundleno = 1 (0x1), region = 70 }

// kernel: _lambda_.10
= control target key start
LH: loop header
LB: loop body
LE: loop exit
PB: predicated region body
PF: predicated region fallthrough
CT: control target
= control target key end

     0   :  { %s503_s12 = smov 0   ;;  %s632_s0 = inlined_call_operand.vmem [shape: bf16[2,8,16,32], index: 0, kind: input, shape index: {}]   ;;  %s633_s1 = inlined_call_operand.vmem [shape: f32[1,32], index: 1, kind: input, shape index: {}]   ;;  %s634_s2 = inlined_call_operand.vmem [shape: f32[1,32], index: 2, kind: input, shape index: {}]   ;;  %s635_s3 = inlined_call_operand.vmem [shape: bf16[2,8,9,32], index: 3, kind: output, shape index: {}]  }
   0x1 LB: > { %s420_s13 = sadd.s32 4294967295, %s481_s12   ;;  %p424_p0 = scmp.ge.s32.totalorder %s481_s12, 1  ;;  %s481_s12 = sphi %s503_s12, %s13_s12  }
   0x2   : > { %p137_p1 = scmp.lt.s32.totalorder %s481_s12, 3 }
   0x4   : > { %p138_p2 = pnand %p424_p0, %p137_p1 }
   0x5   : > { %p161_p3 = scmp.lt.s32.totalorder (!%p138_p2), %s420_s13, 1 }
   0x6   : > { %141 = sbr.rel (%p138_p2) target bundleno = 41 (0x29), region = 32 }
   0xb   : > { %s639_s13 = smov (!%p161_p3, %s420_s13), 1  ;;  %v519_v0 = vld [vmem:[%s633_s1] ss:$0 sm:$0xff]  ;;  %vm329_vm0 = vcmask 257024   ;;  %vm331_vm1 = vcmask 253952  }
   0xc   : > { %s449_s14 = sshll.u32 %s639_s13, 6  ;;  %v525_v2 = vld [vmem:[%s634_s2] ss:$0 sm:$0xff]  ;;  %vm332_vm2 = vsmask.f32 256 }
   0xd   : > { %s514_s17 = scalar_lea.vmem %s632_s0, %s449_s14  ;;  %s535_s24 = scalar_lea.vmem %s635_s3, %s449_s14  ;;  %vm556_vm3 = vmand %vm331_vm1, %vm332_vm2 }
   0xe   : > { %v171_v1 = vld [vmem:[%s514_s17] ss:$8 sps:$4 sm:$0xff]   ;;  %v172_v3 = vld [vmem:[%s514_s17 + $0x4] sm:$0x1]  ;;  %v174_v7 = vld [vmem:[%s514_s17 + $0xc] sm:$0x1] }
   0xf   : > { %v187_v4 = vunpack.c.l.bf16 %v171_v1  ;;  %v188_v5 = vunpack.c.l.bf16 %v172_v3  ;;  %v189_v6 = vunpack.c.h.bf16 %v171_v1  ;;  %v175_v8 = vld [vmem:[%s514_s17 + $0x10] ss:$8 sps:$4 sm:$0xff]   ;;  %v190_v9 = vunpack.c.l.bf16 %v174_v7  ;;  %v176_v11 = vld [vmem:[%s514_s17 + $0x14] sm:$0x1]  ;;  %v178_v13 = vld [vmem:[%s514_s17 + $0x1c] sm:$0x1] }
  0x10   : > { %v191_v10 = vunpack.c.l.bf16 %v175_v8  ;;  %v193_v12 = vunpack.c.h.bf16 %v175_v8  ;;  %v192_v17 = vunpack.c.l.bf16 %v176_v11  ;;  %v194_v21 = vunpack.c.l.bf16 %v178_v13  ;;  %v334_v26 = vld [vmem:[%s535_s24 + $0x4] sm:$0x1]  ;;  %v179_v35 = vld [vmem:[%s514_s17 + $0x20] ss:$8 sps:$4 sm:$0xff]   ;;  %v338_v45 = vld [vmem:[%s535_s24 + $0xc] sm:$0x1] }
  0x11   : > { %v210_v14 = vmul.f32 %v519_v0, %v187_v4  ;;  %v211_v15 = vmul.f32 %v519_v0, %v188_v5  ;;  %v212_v16 = vmul.f32 %v519_v0, %v189_v6  ;;  %v213_v18 = vmul.f32 %v519_v0, %v190_v9  ;;  %v180_v41 = vld [vmem:[%s514_s17 + $0x24] sm:$0x1]  ;;  %v182_v47 = vld [vmem:[%s514_s17 + $0x2c] sm:$0x1]  ;;  %v342_v50 = vld [vmem:[%s535_s24 + $0x14] sm:$0x1] }
  0x12   : > { %v214_v19 = vmul.f32 %v519_v0, %v191_v10  ;;  %v216_v20 = vmul.f32 %v519_v0, %v193_v12  ;;  %v215_v25 = vmul.f32 %v519_v0, %v192_v17  ;;  %v217_v30 = vmul.f32 %v519_v0, %v194_v21  ;;  %v183_v53 = vld [vmem:[%s514_s17 + $0x30] ss:$8 sps:$4 sm:$0xff]   ;;  %v346_v56 = vld [vmem:[%s535_s24 + $0x1c] sm:$0x1]  ;;  %v184_v59 = vld [vmem:[%s514_s17 + $0x34] sm:$0x1] }
  0x13   : > { %v233_v22 = vadd.f32 %v525_v2, %v210_v14  ;;  %v234_v23 = vadd.f32 %v525_v2, %v211_v15  ;;  %v235_v24 = vadd.f32 %v525_v2, %v212_v16  ;;  %v236_v27 = vadd.f32 %v525_v2, %v213_v18  ;;  %v186_v6 = vld [vmem:[%s514_s17 + $0x3c] sm:$0x1] }
  0x14   : > { %v237_v28 = vadd.f32 %v525_v2, %v214_v19  ;;  %v239_v29 = vadd.f32 %v525_v2, %v216_v20  ;;  %v238_v34 = vadd.f32 %v525_v2, %v215_v25  ;;  %v240_v40 = vadd.f32 %v525_v2, %v217_v30  ;;  %v354_v30 = vld [vmem:[%s535_s24 + $0x2c] sm:$0x1] }
  0x15   : > { %v249_v31 = vmax.f32 %v233_v22, 0.0  ;;  %v250_v32 = vmax.f32 %v234_v23, 0.0  ;;  %v251_v33 = vmax.f32 %v235_v24, 0.0  ;;  %v252_v37 = vmax.f32 %v236_v27, 0.0  ;;  %v350_v23 = vld [vmem:[%s535_s24 + $0x24] sm:$0x1] }
  0x16   : > { %v253_v38 = vmax.f32 %v237_v28, 0.0  ;;  %v255_v39 = vmax.f32 %v239_v29, 0.0  ;;  %v254_v46 = vmax.f32 %v238_v34, 0.0  ;;  %v256_v52 = vmax.f32 %v240_v40, 0.0 }
  0x17   : > { %v451_v42 = vpack.c.bf16 %v249_v31, %v249_v31  ;;  %v452_v43 = vpack.c.bf16 %v250_v32, %v250_v32  ;;  %v453_v44 = vpack.c.bf16 %v251_v33, %v251_v33  ;;  %v454_v48 = vpack.c.bf16 %v252_v37, %v252_v37 }
  0x18   : > { %v455_v49 = vpack.c.bf16 %v253_v38, %v253_v38  ;;  %v457_v51 = vpack.c.bf16 %v255_v39, %v255_v39  ;;  %v456_v55 = vpack.c.bf16 %v254_v46, %v254_v46  ;;  %v195_v57 = vunpack.c.l.bf16 %v179_v35  ;;  %v358_v39 = vld [vmem:[%s535_s24 + $0x34] sm:$0x1] }
  0x19   : > { %330 = vst.msk [vmem:[%s535_s24] sm:$0xf] %vm329_vm0, %v451_v42  ;;  %v335_v54 = vsel %vm556_vm3, %v452_v43, %v334_v26  ;;  %337 = vst.msk [vmem:[%s535_s24 + $0x8] sm:$0xf] %vm329_vm0, %v453_v44  ;;  %v196_v58 = vunpack.c.l.bf16 %v180_v41  ;;  %v339_v60 = vsel %vm556_vm3, %v454_v48, %v338_v45  ;;  %v458_v61 = vpack.c.bf16 %v256_v52, %v256_v52  ;;  %v362_v44 = vld [vmem:[%s535_s24 + $0x3c] sm:$0x1] }
  0x1a   : > { %336 = vst [vmem:[%s535_s24 + $0x4] sm:$0x1] %v335_v54  ;;  %341 = vst.msk [vmem:[%s535_s24 + $0x10] sm:$0xf] %vm329_vm0, %v455_v49  ;;  %v197_v62 = vunpack.c.h.bf16 %v179_v35  ;;  %v198_v63 = vunpack.c.l.bf16 %v182_v47  ;;  %v343_v1 = vsel %vm556_vm3, %v456_v55, %v342_v50  ;;  %v218_v3 = vmul.f32 %v519_v0, %v195_v57 }
  0x1b   : > { %345 = vst.msk [vmem:[%s535_s24 + $0x18] sm:$0xf] %vm329_vm0, %v457_v51  ;;  %340 = vst [vmem:[%s535_s24 + $0xc] sm:$0x1] %v339_v60  ;;  %v219_v4 = vmul.f32 %v519_v0, %v196_v58  ;;  %v199_v5 = vunpack.c.l.bf16 %v183_v53  ;;  %v347_v7 = vsel %vm556_vm3, %v458_v61, %v346_v56  ;;  %v200_v10 = vunpack.c.l.bf16 %v184_v59 }
  0x1c   : > { %344 = vst [vmem:[%s535_s24 + $0x14] sm:$0x1] %v343_v1  ;;  %v220_v8 = vmul.f32 %v519_v0, %v197_v62  ;;  %v221_v9 = vmul.f32 %v519_v0, %v198_v63  ;;  %348 = vst [vmem:[%s535_s24 + $0x1c] sm:$0x1] %v347_v7  ;;  %v241_v11 = vadd.f32 %v525_v2, %v218_v3  ;;  %v201_v14 = vunpack.c.h.bf16 %v183_v53 }
  0x1d   : > { %v242_v12 = vadd.f32 %v525_v2, %v219_v4  ;;  %v222_v13 = vmul.f32 %v519_v0, %v199_v5  ;;  %v223_v17 = vmul.f32 %v519_v0, %v200_v10  ;;  %v202_v18 = vunpack.c.l.bf16 %v186_v6 }
  0x1e   : > { %v243_v15 = vadd.f32 %v525_v2, %v220_v8  ;;  %v244_v16 = vadd.f32 %v525_v2, %v221_v9  ;;  %v257_v19 = vmax.f32 %v241_v11, 0.0  ;;  %v224_v22 = vmul.f32 %v519_v0, %v201_v14 }
  0x1f   : > { %v258_v20 = vmax.f32 %v242_v12, 0.0  ;;  %v245_v21 = vadd.f32 %v525_v2, %v222_v13  ;;  %v246_v26 = vadd.f32 %v525_v2, %v223_v17  ;;  %v225_v27 = vmul.f32 %v519_v0, %v202_v18 }
  0x20   : > { %v259_v24 = vmax.f32 %v243_v15, 0.0  ;;  %v260_v25 = vmax.f32 %v244_v16, 0.0  ;;  %v459_v28 = vpack.c.bf16 %v257_v19, %v257_v19  ;;  %v247_v32 = vadd.f32 %v525_v2, %v224_v22 }
  0x21   : > { %v460_v29 = vpack.c.bf16 %v258_v20, %v258_v20  ;;  %v261_v31 = vmax.f32 %v245_v21, 0.0  ;;  %v262_v35 = vmax.f32 %v246_v26, 0.0  ;;  %v248_v37 = vadd.f32 %v525_v2, %v225_v27 }
  0x22   : > { %v461_v33 = vpack.c.bf16 %v259_v24, %v259_v24  ;;  %v462_v34 = vpack.c.bf16 %v260_v25, %v260_v25  ;;  %349 = vst.msk [vmem:[%s535_s24 + $0x20] sm:$0xf] %vm329_vm0, %v459_v28  ;;  %v263_v40 = vmax.f32 %v247_v32, 0.0 }
  0x23   : > { %v351_v0 = vsel %vm556_vm3, %v460_v29, %v350_v23  ;;  %v463_v38 = vpack.c.bf16 %v261_v31, %v261_v31  ;;  %v464_v42 = vpack.c.bf16 %v262_v35, %v262_v35  ;;  %v264_v43 = vmax.f32 %v248_v37, 0.0 }
  0x24   : > { %352 = vst [vmem:[%s535_s24 + $0x24] sm:$0x1] %v351_v0  ;;  %353 = vst.msk [vmem:[%s535_s24 + $0x28] sm:$0xf] %vm329_vm0, %v461_v33  ;;  %v355_v41 = vsel %vm556_vm3, %v462_v34, %v354_v30  ;;  %v465_v2 = vpack.c.bf16 %v263_v40, %v263_v40 }
  0x25   : > { %356 = vst [vmem:[%s535_s24 + $0x2c] sm:$0x1] %v355_v41  ;;  %357 = vst.msk [vmem:[%s535_s24 + $0x30] sm:$0xf] %vm329_vm0, %v463_v38  ;;  %v359_v45 = vsel %vm556_vm3, %v464_v42, %v358_v39  ;;  %v466_v46 = vpack.c.bf16 %v264_v43, %v264_v43 }
  0x26   : > { %360 = vst [vmem:[%s535_s24 + $0x34] sm:$0x1] %v359_v45  ;;  %361 = vst.msk [vmem:[%s535_s24 + $0x38] sm:$0xf] %vm329_vm0, %v465_v2 }
  0x27   : > { %v363_v47 = vsel %vm556_vm3, %v466_v46, %v362_v44 }
  0x28   : > { %364 = vst [vmem:[%s535_s24 + $0x3c] sm:$0x1] %v363_v47 }
  0x29 PF: > { %s13_s12 = sadd.s32 1, %s481_s12  }
  0x2a   : > { %p10_p4 = scmp.ge.s32.totalorder %s13_s12, 4  }
  0x2c   :  { %12 = sbr.rel (!%p10_p4) target bundleno = 1 (0x1), region = 62 }

// kernel: _lambda_.9
= control target key start
LH: loop header
LB: loop body
LE: loop exit
PB: predicated region body
PF: predicated region fallthrough
CT: control target
= control target key end

     0   :  { %s2340_s12 = smov 0   ;;  %s2342_s13 = smov 0   ;;  %s2673_s0 = inlined_call_operand.vmem [shape: bf16[10,192,64], index: 0, kind: input, shape index: {}]   ;;  %s2674_s1 = inlined_call_operand.vmem [shape: bf16[5,320,32], index: 1, kind: input, shape index: {}]   ;;  %s2675_s2 = inlined_call_operand.vmem [shape: bf16[2,128,32], index: 2, kind: output, shape index: {0}]   ;;  %s2676_s3 = inlined_call_operand.vmem [shape: f32[2,2,32], index: 3, kind: output, shape index: {1}]  }
   0x1   :  { %s2344_s14 = smov 0   ;;  %s2346_s15 = smov 0  }
   0x2   :  { %s2348_s16 = smov 0  }
   0x3 LB: > { %s23_s17 = sadd.s32 1, %s2309_s14  ;;  %s26_s18 = sadd.s32 1, %s2313_s15  ;;  %s2317_s16 = sphi %s2348_s16, %s14_s16   ;;  %s2313_s15 = sphi %s2346_s15, %s2680_s15   ;;  %s2309_s14 = sphi %s2344_s14, %s2679_s14   ;;  %s2305_s13 = sphi %s2342_s13, %s2678_s13   ;;  %s2301_s12 = sphi %s2340_s12, %s2677_s12  }
   0x4   : > { %p24_p0 = scmp.ge.s32.totalorder %s23_s17, 5  ;;  %p1845_p1 = scmp.ge.s32.totalorder %s2317_s16, 1 }
   0x5   : > { %p170_p2 = scmp.lt.s32.totalorder %s2317_s16, 11 }
   0x6   : > { %s2682_s17 = smov (%p24_p0, %s23_s17), 0  ;;  %s2684_s18 = smov (!%p24_p0, %s26_s18), %s2313_s15 }
   0x7   : > { %p171_p3 = pnand %p1845_p1, %p170_p2  ;;  %p28_p4 = scmp.ge.s32.totalorder %s2684_s18, 2 }
   0x8   : > { %s205_s19 = smul.u32 (!%p171_p3), 5, %s2305_s13  ;;  %p214_p5 = scmp.lt.s32.totalorder (!%p171_p3), %s2301_s12, 4 }
   0x9   : > { %s2686_s18 = smov (%p28_p4, %s2684_s18), 0  ;;  %174 = sbr.rel (%p171_p3) target bundleno = 384 (0x180), region = 28 }
   0xa   : > { %s206_s20 = sadd.s32 (!%p171_p3), %s2301_s12, %s205_s19  ;;  %p219_p7 = scmp.lt.s32.totalorder (!%p171_p3), %s2305_s13, 1 }
   0xb   : > { %p207_p6 = scmp.lt.s32.totalorder (!%p171_p3), %s206_s20, 9  ;;  %p1851_p8 = scmp.ne.s32.totalorder (!%p171_p3), %s2301_s12, 0 }
   0xe   : > { %s215_s21 = scalar_select %p214_p5, %s2301_s12, 4 }
   0xf   : > { %s2688_s20 = smov (!%p207_p6, %s206_s20), 9  ;;  %s2690_s13 = smov (!%p219_p7, %s2305_s13), 1 }
  0x10   : > { %s2177_s22 = smul.u32 160, %s215_s21  ;;  %s1971_s30 = sshll.u32 %s2690_s13, 6 }
  0x11   : > { %s2176_s23 = smul.u32 96, %s2688_s20  ;;  %s1850_s4 = sshll.u32 %s2690_s13, 1 }
  0x12   : > { %s2378_s26 = scalar_lea.vmem %s2674_s1, %s2177_s22  ;;  %s2388_s7 = scalar_lea.vmem %s2675_s2, %s1971_s30 }
  0x13   : > { %s2383_s29 = scalar_lea.vmem %s2673_s0, %s2176_s23  ;;  %s2393_s10 = scalar_lea.vmem %s2676_s3, %s1850_s4 }
  0x14   : > { %232 = sbr.rel (%p1851_p8) target bundleno = 34 (0x22), region = 32 }
  0x19   : > { %vm233_vm0 = vcmask 261120   ;;  %v2319_v0 = vmov 0.0  }
  0x1a   : > { %234 = vst.msk [vmem:[#allocation2] sm:$0xff] %vm233_vm0, %v2319_v0  ;;  %235 = vst.msk [vmem:[#allocation2 + $0x8] sm:$0xff] %vm233_vm0, %v2319_v0 }
  0x1b   : > { %236 = vst.msk [vmem:[#allocation2 + $0x10] sm:$0xff] %vm233_vm0, %v2319_v0  ;;  %237 = vst.msk [vmem:[#allocation2 + $0x18] sm:$0xff] %vm233_vm0, %v2319_v0 }
  0x1c   : > { %238 = vst.msk [vmem:[#allocation2 + $0x20] sm:$0xff] %vm233_vm0, %v2319_v0  ;;  %239 = vst.msk [vmem:[#allocation2 + $0x28] sm:$0xff] %vm233_vm0, %v2319_v0 }
  0x1d   : > { %240 = vst.msk [vmem:[#allocation2 + $0x30] sm:$0xff] %vm233_vm0, %v2319_v0  ;;  %241 = vst.msk [vmem:[#allocation2 + $0x38] sm:$0xff] %vm233_vm0, %v2319_v0 }
  0x1e   : > { %242 = vst.msk [vmem:[#allocation2 + $0x40] sm:$0xff] %vm233_vm0, %v2319_v0  ;;  %243 = vst.msk [vmem:[#allocation2 + $0x48] sm:$0xff] %vm233_vm0, %v2319_v0 }
  0x1f   : > { %244 = vst.msk [vmem:[#allocation2 + $0x50] sm:$0xff] %vm233_vm0, %v2319_v0  ;;  %245 = vst.msk [vmem:[#allocation2 + $0x58] sm:$0xff] %vm233_vm0, %v2319_v0 }
  0x20   : > { %246 = vst.msk [vmem:[#allocation2 + $0x60] sm:$0xff] %vm233_vm0, %v2319_v0  ;;  %247 = vst.msk [vmem:[#allocation2 + $0x68] sm:$0xff] %vm233_vm0, %v2319_v0 }
  0x21   : > { %248 = vst.msk [vmem:[#allocation2 + $0x70] sm:$0xff] %vm233_vm0, %v2319_v0  ;;  %249 = vst.msk [vmem:[#allocation2 + $0x78] sm:$0xff] %vm233_vm0, %v2319_v0 }
  0x22 PF: > { %v2219_v1 = vld [vmem:[%s2378_s26 + $0x18] sm:$0xff]   ;;  %v2220_v2 = vld [vmem:[%s2378_s26 + $0x10] sm:$0xff]   ;;  %v2221_v3 = vld [vmem:[%s2378_s26 + $0x8] sm:$0xff]   ;;  %vm354_vm1 = vcmask 523264   ;;  %vm492_vm2 = vcmask 261120   ;;  %p1952_p9 = scmp.ne.s32.totalorder %s2301_s12, 4 }
  0x23   : > { %2168 = vmatprep.subr.bf16.mxu1 %v2219_v1  ;;  %2048 = vmatprep.subr.bf16.mxu0 %v2219_v1  ;;  %v2223_v4 = vld [vmem:[%s2383_s29 + $0x20] sm:$0xff]   ;;  %v2225_v7 = vld [vmem:[%s2378_s26 + $0x38] sm:$0xff]   ;;  %v2224_v9 = vld [vmem:[%s2383_s29 + $0x28] sm:$0xff]  }
  0x24   : > { %2172 = vmatpush3.bf16.msra.mxu1 %v2219_v1  ;;  %2049 = vmatpush3.bf16.msra.mxu0 %v2219_v1  ;;  %v2226_v5 = vld [vmem:[%s2383_s29] sm:$0xff]   ;;  %v2229_v8 = vld [vmem:[%s2378_s26 + $0x58] sm:$0xff]   ;;  %v2227_v10 = vld [vmem:[%s2378_s26 + $0x30] sm:$0xff]  }
  0x25   : > { %2169 = vmatprep.subr.bf16.mxu1 %v2220_v2  ;;  %2050 = vmatprep.subr.bf16.mxu0 %v2220_v2  ;;  %v2222_v6 = vld [vmem:[%s2378_s26] sm:$0xff]   ;;  %v2228_v11 = vld [vmem:[%s2383_s29 + $0x8] sm:$0xff]   ;;  %v2230_v12 = vld [vmem:[%s2383_s29 + $0x30] sm:$0xff]  }
  0x26   : > { %2064 = vmatprep.mubr.msk.bf16.mxu1 %vm354_vm1, %v2223_v4  ;;  %2056 = vmatprep.mubr.msk.bf16.mxu0 %vm354_vm1, %v2226_v5  ;;  %v2233_v13 = vld [vmem:[%s2378_s26 + $0x50] sm:$0xff]   ;;  %v2232_v15 = vld [vmem:[%s2378_s26 + $0x28] sm:$0xff]   ;;  %v2231_v17 = vld [vmem:[%s2383_s29 + $0x38] sm:$0xff]  }
  0x27   : > { %v2234_v14 = vld [vmem:[%s2383_s29 + $0x10] sm:$0xff]   ;;  %v2237_v16 = vld [vmem:[%s2378_s26 + $0x48] sm:$0xff]   ;;  %v2235_v18 = vld [vmem:[%s2378_s26 + $0x20] sm:$0xff]  }
  0x28   : > { %2173 = vmatpush3.bf16.msra.mxu1 %v2220_v2  ;;  %2051 = vmatpush3.bf16.msra.mxu0 %v2220_v2  ;;  %v2236_v19 = vld [vmem:[%s2383_s29 + $0x18] sm:$0xff]   ;;  %v2238_v20 = vld [vmem:[%s2383_s29 + $0x8] sm:$0xff]   ;;  %v2241_v21 = vld [vmem:[%s2378_s26 + $0x40] sm:$0xff]  }
  0x29   : > { %2170 = vmatprep.subr.bf16.mxu1 %v2221_v3  ;;  %2052 = vmatprep.subr.bf16.mxu0 %v2221_v3  ;;  %v2242_v22 = vld [vmem:[%s2383_s29 + $0x10] sm:$0xff]   ;;  %v2240_v23 = vld [vmem:[%s2378_s26 + $0x78] sm:$0xff]   ;;  %v2248_v29 = vld [vmem:[%s2383_s29 + $0x20] sm:$0xff]  }
  0x2a   : > { %v2247_v24 = vld [vmem:[%s2378_s26 + $0x98] sm:$0xff]   ;;  %v2239_v25 = vld [vmem:[%s2383_s29 + $0x10] sm:$0xff]   ;;  %v2245_v31 = vld [vmem:[%s2383_s29 + $0x20] sm:$0xff]  }
  0x2b   : > { %v2243_v26 = vld [vmem:[%s2383_s29 + $0x18] sm:$0xff]   ;;  %v2246_v28 = vld [vmem:[%s2378_s26 + $0x70] sm:$0xff]   ;;  %v2252_v32 = vld [vmem:[%s2378_s26 + $0x68] sm:$0xff]  }
  0x2c   : > { %2174 = vmatpush3.bf16.msra.mxu1 %v2221_v3  ;;  %2053 = vmatpush3.bf16.msra.mxu0 %v2221_v3  ;;  %v2244_v27 = vld [vmem:[%s2383_s29 + $0x18] sm:$0xff]   ;;  %v2253_v30 = vld [vmem:[%s2378_s26 + $0x90] sm:$0xff]   ;;  %v2249_v33 = vld [vmem:[%s2383_s29 + $0x28] sm:$0xff]  }
  0x2d   : > { %2171 = vmatprep.subr.bf16.mxu1 %v2222_v6  ;;  %2054 = vmatprep.subr.bf16.mxu0 %v2222_v6  ;;  %v2250_v34 = vld [vmem:[%s2383_s29 + $0x28] sm:$0xff]   ;;  %v2254_v35 = vld [vmem:[%s2383_s29 + $0x30] sm:$0xff]   ;;  %v2258_v36 = vld [vmem:[%s2378_s26 + $0x60] sm:$0xff]  }
  0x2e   : > { %v2259_v37 = vld [vmem:[%s2378_s26 + $0x88] sm:$0xff]   ;;  %v2251_v38 = vld [vmem:[%s2383_s29 + $0x30] sm:$0xff]   ;;  %v2255_v39 = vld [vmem:[%s2383_s29 + $0x38] sm:$0xff]  }
  0x2f   : > { %v2264_v40 = vld [vmem:[%s2378_s26 + $0x80] sm:$0xff]   ;;  %v2256_v41 = vld [vmem:[%s2383_s29 + $0x38] sm:$0xff]   ;;  %v2261_v44 = vld [vmem:[%s2383_s29 + $0x48] sm:$0xff]  }
  0x30   : > { %2175 = vmatpush3.bf16.msra.mxu1 %v2222_v6  ;;  %2055 = vmatpush3.bf16.msra.mxu0 %v2222_v6  ;;  %v2260_v42 = vld [vmem:[%s2383_s29 + $0x40] sm:$0xff]   ;;  %v2262_v45 = vld [vmem:[%s2383_s29 + $0x18] sm:$0xff]   ;;  %v2266_v48 = vld [vmem:[%s2383_s29 + $0x28] sm:$0xff]  }
  0x31   : > { %2072 = vmatprep.subr.bf16.mxu1 %v2225_v7  ;;  %2096 = vmatprep.subr.bf16.mxu0 %v2229_v8  ;;  %v2257_v43 = vld [vmem:[%s2383_s29 + $0x40] sm:$0xff]   ;;  %v2267_v49 = vld [vmem:[%s2383_s29 + $0x28] sm:$0xff]   ;;  %v2269_v50 = vld [vmem:[%s2383_s29 + $0x30] sm:$0xff]  }
  0x32   : > { %v2265_v46 = vld [vmem:[%s2383_s29 + $0x20] sm:$0xff]   ;;  %v2268_v51 = vld [vmem:[%s2383_s29 + $0x30] sm:$0xff]   ;;  %v2270_v52 = vld [vmem:[%s2383_s29 + $0x38] sm:$0xff]  }
  0x33   : > { %2065 = vmatmul.mubr.msk.bf16.vlgmr.msra.gmra.mxu1 %vm354_vm1, %v2224_v9  ;;  %2057 = vmatmul.mubr.msk.bf16.vlgmr.msra.gmra.mxu0 %vm354_vm1, %v2228_v11  ;;  %v2263_v47 = vld [vmem:[%s2383_s29 + $0x20] sm:$0xff]   ;;  %v2271_v53 = vld [vmem:[%s2383_s29 + $0x38] sm:$0xff]   ;;  %v2274_v56 = vld [vmem:[%s2383_s29 + $0x48] sm:$0xff]  }
  0x34   : > { %2073 = vmatpush3.bf16.msra.mxu1 %v2225_v7  ;;  %2097 = vmatpush3.bf16.msra.mxu0 %v2229_v8  ;;  %v2273_v54 = vld [vmem:[%s2383_s29 + $0x40] sm:$0xff]   ;;  %v2275_v57 = vld [vmem:[%s2383_s29 + $0x48] sm:$0xff]   ;;  %v2277_v58 = vld [vmem:[%s2383_s29 + $0x50] sm:$0xff]  }
  0x35   : > { %2074 = vmatprep.subr.bf16.mxu1 %v2227_v10  ;;  %2068 = vmatprep.mubr.msk.bf16.mxu1 %vm354_vm1, %v2230_v12  ;;  %v2272_v55 = vld [vmem:[%s2383_s29 + $0x40] sm:$0xff]   ;;  %v2276_v59 = vld [vmem:[%s2383_s29 + $0x50] sm:$0xff]   ;;  %v2278_v60 = vld [vmem:[%s2383_s29 + $0x58] sm:$0xff]  }
  0x36   : > { %2098 = vmatprep.subr.bf16.mxu0 %v2233_v13  ;;  %2060 = vmatprep.mubr.msk.bf16.mxu0 %vm354_vm1, %v2234_v14  ;;  %v284_v61 = vld [vmem:[#allocation2 + $0x50] sm:$0xff]  ;;  %v282_v0 = vld [vmem:[#allocation2 + $0x40] sm:$0xff]  ;;  %v285_v6 = vld [vmem:[#allocation2 + $0x58] sm:$0xff] }
  0x37   : > { %v276_v62 = vld [vmem:[#allocation2 + $0x10] sm:$0xff]  ;;  %v274_v2 = vld [vmem:[#allocation2] sm:$0xff]  ;;  %v277_v8 = vld [vmem:[#allocation2 + $0x18] sm:$0xff] }
  0x38   : > { %2075 = vmatpush3.bf16.msra.mxu1 %v2227_v10  ;;  %2099 = vmatpush3.bf16.msra.mxu0 %v2233_v13  ;;  %v283_v12 = vld [vmem:[#allocation2 + $0x48] sm:$0xff] }
  0x39   : > { %2076 = vmatprep.subr.bf16.mxu1 %v2232_v15  ;;  %2100 = vmatprep.subr.bf16.mxu0 %v2237_v16  ;;  %v275_v14 = vld [vmem:[#allocation2 + $0x8] sm:$0xff] }
  0x3b   : > { %2069 = vmatmul.mubr.msk.bf16.gmra.mxu1 %vm354_vm1, %v2231_v17  ;;  %2061 = vmatmul.mubr.msk.bf16.gmra.mxu0 %vm354_vm1, %v2236_v19 }
  0x3c   : > { %2077 = vmatpush3.bf16.msra.mxu1 %v2232_v15  ;;  %2101 = vmatpush3.bf16.msra.mxu0 %v2237_v16 }
  0x3d   : > { %2078 = vmatprep.subr.bf16.mxu1 %v2235_v18  ;;  %2080 = vmatprep.mubr.msk.bf16.mxu1 %vm354_vm1, %v2238_v20  ;;  %v280_v20 = vld [vmem:[#allocation2 + $0x30] sm:$0xff] }
  0x3e   : > { %2102 = vmatprep.subr.bf16.mxu0 %v2241_v21  ;;  %2104 = vmatprep.mubr.msk.bf16.mxu0 %vm354_vm1, %v2242_v22 }
  0x40   : > { %2079 = vmatpush3.bf16.msra.mxu1 %v2235_v18  ;;  %2103 = vmatpush3.bf16.msra.mxu0 %v2241_v21  ;;  %v288_v18 = vld [vmem:[#allocation2 + $0x70] sm:$0xff] }
  0x41   : > { %2120 = vmatprep.subr.bf16.mxu1 %v2240_v23  ;;  %2144 = vmatprep.subr.bf16.mxu0 %v2247_v24 }
  0x43   : > { %2081 = vmatmul.mubr.msk.bf16.vlgmr.msra.gmra.mxu1 %vm354_vm1, %v2239_v25  ;;  %2105 = vmatmul.mubr.msk.bf16.vlgmr.msra.gmra.mxu0 %vm354_vm1, %v2243_v26  ;;  %v278_v26 = vld [vmem:[#allocation2 + $0x20] sm:$0xff] }
  0x44   : > { %2121 = vmatpush3.bf16.msra.mxu1 %v2240_v23  ;;  %2084 = vmatprep.mubr.msk.bf16.mxu1 %vm354_vm1, %v2244_v27 }
  0x45   : > { %2122 = vmatprep.subr.bf16.mxu1 %v2246_v28  ;;  %2145 = vmatpush3.bf16.msra.mxu0 %v2247_v24  ;;  %v286_v24 = vld [vmem:[#allocation2 + $0x60] sm:$0xff] }
  0x46   : > { %2108 = vmatprep.mubr.msk.bf16.mxu0 %vm354_vm1, %v2248_v29  ;;  %2146 = vmatprep.subr.bf16.mxu0 %v2253_v30 }
  0x48   : > { %2123 = vmatpush3.bf16.msra.mxu1 %v2246_v28 }
  0x49   : > { %2124 = vmatprep.subr.bf16.mxu1 %v2252_v32  ;;  %2147 = vmatpush3.bf16.msra.mxu0 %v2253_v30  ;;  %v289_v30 = vld [vmem:[#allocation2 + $0x78] sm:$0xff] }
  0x4a   : > { %2148 = vmatprep.subr.bf16.mxu0 %v2259_v37 }
  0x4b   : > { %2085 = vmatmul.mubr.msk.bf16.gmra.mxu1 %vm354_vm1, %v2245_v31  ;;  %2109 = vmatmul.mubr.msk.bf16.gmra.mxu0 %vm354_vm1, %v2249_v33 }
  0x4c   : > { %2088 = vmatprep.mubr.msk.bf16.mxu1 %vm354_vm1, %v2250_v34  ;;  %2125 = vmatpush3.bf16.msra.mxu1 %v2252_v32  ;;  %v281_v32 = vld [vmem:[#allocation2 + $0x38] sm:$0xff] }
  0x4d   : > { %2112 = vmatprep.mubr.msk.bf16.mxu0 %vm354_vm1, %v2254_v35  ;;  %2126 = vmatprep.subr.bf16.mxu1 %v2258_v36 }
  0x4e   : > { %2149 = vmatpush3.bf16.msra.mxu0 %v2259_v37 }
  0x4f   : > { %2150 = vmatprep.subr.bf16.mxu0 %v2264_v40 }
  0x50   : > { %2127 = vmatpush3.bf16.msra.mxu1 %v2258_v36  ;;  %v287_v36 = vld [vmem:[#allocation2 + $0x68] sm:$0xff] }
  0x52   : > { %2151 = vmatpush3.bf16.msra.mxu0 %v2264_v40 }
  0x53   : > { %2089 = vmatmul.mubr.msk.bf16.gmra.mxu1 %vm354_vm1, %v2251_v38  ;;  %2113 = vmatmul.mubr.msk.bf16.gmra.mxu0 %vm354_vm1, %v2255_v39  ;;  %v279_v38 = vld [vmem:[#allocation2 + $0x28] sm:$0xff] }
  0x54   : > { %2092 = vmatprep.mubr.msk.bf16.mxu1 %vm354_vm1, %v2256_v41  ;;  %2116 = vmatprep.mubr.msk.bf16.mxu0 %vm354_vm1, %v2260_v42 }
  0x5b   : > { %2093 = vmatmul.mubr.msk.bf16.gmra.mxu1 %vm354_vm1, %v2257_v43  ;;  %2117 = vmatmul.mubr.msk.bf16.gmra.mxu0 %vm354_vm1, %v2261_v44 }
  0x5c   : > { %2128 = vmatprep.mubr.msk.bf16.mxu1 %vm354_vm1, %v2262_v45  ;;  %2152 = vmatprep.mubr.msk.bf16.mxu0 %vm354_vm1, %v2265_v46 }
  0x63   : > { %2129 = vmatmul.mubr.msk.bf16.vlgmr.msra.gmra.mxu1 %vm354_vm1, %v2263_v47  ;;  %2153 = vmatmul.mubr.msk.bf16.vlgmr.msra.gmra.mxu0 %vm354_vm1, %v2266_v48 }
  0x64   : > { %2132 = vmatprep.mubr.msk.bf16.mxu1 %vm354_vm1, %v2267_v49  ;;  %2156 = vmatprep.mubr.msk.bf16.mxu0 %vm354_vm1, %v2269_v50 }
  0x6b   : > { %2133 = vmatmul.mubr.msk.bf16.gmra.mxu1 %vm354_vm1, %v2268_v51  ;;  %2157 = vmatmul.mubr.msk.bf16.gmra.mxu0 %vm354_vm1, %v2270_v52 }
  0x6c   : > { %2136 = vmatprep.mubr.msk.bf16.mxu1 %vm354_vm1, %v2271_v53  ;;  %2160 = vmatprep.mubr.msk.bf16.mxu0 %vm354_vm1, %v2273_v54 }
  0x73   : > { %2137 = vmatmul.mubr.msk.bf16.gmra.mxu1 %vm354_vm1, %v2272_v55  ;;  %2161 = vmatmul.mubr.msk.bf16.gmra.mxu0 %vm354_vm1, %v2274_v56 }
  0x74   : > { %2140 = vmatprep.mubr.msk.bf16.mxu1 %vm354_vm1, %v2275_v57  ;;  %2164 = vmatprep.mubr.msk.bf16.mxu0 %vm354_vm1, %v2277_v58 }
  0x7b   : > { %2141 = vmatmul.mubr.msk.bf16.gmra.mxu1 %vm354_vm1, %v2276_v59  ;;  %2165 = vmatmul.mubr.msk.bf16.gmra.mxu0 %vm354_vm1, %v2278_v60 }
  0xf3   : > { %v2066_v63 = vpop.f32.mrf.mxu1  ;;  %v2058_v1 = vpop.f32.mrf.mxu0 }
  0xf4   : > { %v486_v3 = vadd.f32 %v2066_v63, %v284_v61  ;;  %v478_v4 = vadd.f32 %v2058_v1, %v276_v62 }
  0xf5   : > { %v445_v5 = vpop.f32.mrf.mxu1  ;;  %v413_v7 = vpop.f32.mrf.mxu0 }
  0xf6   : > { %503 = vst.msk [vmem:[#allocation2 + $0x50] sm:$0xff] %vm492_vm2, %v486_v3  ;;  %v484_v9 = vadd.f32 %v445_v5, %v282_v0  ;;  %495 = vst.msk [vmem:[#allocation2 + $0x10] sm:$0xff] %vm492_vm2, %v478_v4  ;;  %v476_v10 = vadd.f32 %v413_v7, %v274_v2 }
  0xf7   : > { %v2067_v11 = vpop.f32.mrf.mxu1  ;;  %v2059_v13 = vpop.f32.mrf.mxu0 }
  0xf8   : > { %501 = vst.msk [vmem:[#allocation2 + $0x40] sm:$0xff] %vm492_vm2, %v484_v9  ;;  %v487_v15 = vadd.f32 %v2067_v11, %v285_v6  ;;  %493 = vst.msk [vmem:[#allocation2] sm:$0xff] %vm492_vm2, %v476_v10  ;;  %v479_v16 = vadd.f32 %v2059_v13, %v277_v8 }
  0xf9   : > { %v448_v17 = vpop.f32.mrf.mxu1  ;;  %v416_v19 = vpop.f32.mrf.mxu0 }
  0xfa   : > { %504 = vst.msk [vmem:[#allocation2 + $0x58] sm:$0xff] %vm492_vm2, %v487_v15  ;;  %v485_v21 = vadd.f32 %v448_v17, %v283_v12  ;;  %496 = vst.msk [vmem:[#allocation2 + $0x18] sm:$0xff] %vm492_vm2, %v479_v16  ;;  %v477_v22 = vadd.f32 %v416_v19, %v275_v14 }
  0xfb   : > { %v2070_v23 = vpop.f32.mrf.mxu1  ;;  %v2062_v25 = vpop.f32.mrf.mxu0 }
  0xfc   : > { %502 = vst.msk [vmem:[#allocation2 + $0x48] sm:$0xff] %vm492_vm2, %v485_v21  ;;  %v490_v27 = vadd.f32 %v2070_v23, %v288_v18  ;;  %494 = vst.msk [vmem:[#allocation2 + $0x8] sm:$0xff] %vm492_vm2, %v477_v22  ;;  %v482_v28 = vadd.f32 %v2062_v25, %v280_v20 }
  0xfd   : > { %v461_v29 = vpop.f32.mrf.mxu1  ;;  %v429_v31 = vpop.f32.mrf.mxu0  ;;  %v535_v42 = vld [vmem:[#allocation2 + $0x10] sm:$0xff] }
  0xfe   : > { %507 = vst.msk [vmem:[#allocation2 + $0x70] sm:$0xff] %vm492_vm2, %v490_v27  ;;  %v488_v33 = vadd.f32 %v461_v29, %v286_v24  ;;  %499 = vst.msk [vmem:[#allocation2 + $0x30] sm:$0xff] %vm492_vm2, %v482_v28  ;;  %v480_v34 = vadd.f32 %v429_v31, %v278_v26  ;;  %v543_v20 = vld [vmem:[#allocation2 + $0x50] sm:$0xff] }
  0xff   : > { %v2071_v35 = vpop.f32.mrf.mxu1  ;;  %v2063_v37 = vpop.f32.mrf.mxu0  ;;  %v533_v47 = vld [vmem:[#allocation2] sm:$0xff] }
 0x100   : > { %505 = vst.msk [vmem:[#allocation2 + $0x60] sm:$0xff] %vm492_vm2, %v488_v33  ;;  %v491_v39 = vadd.f32 %v2071_v35, %v289_v30  ;;  %497 = vst.msk [vmem:[#allocation2 + $0x20] sm:$0xff] %vm492_vm2, %v480_v34  ;;  %v483_v40 = vadd.f32 %v2063_v37, %v281_v32  ;;  %v541_v26 = vld [vmem:[#allocation2 + $0x40] sm:$0xff] }
 0x101   : > { %v464_v41 = vpop.f32.mrf.mxu1  ;;  %v432_v43 = vpop.f32.mrf.mxu0  ;;  %v536_v51 = vld [vmem:[#allocation2 + $0x18] sm:$0xff] }
 0x102   : > { %508 = vst.msk [vmem:[#allocation2 + $0x78] sm:$0xff] %vm492_vm2, %v491_v39  ;;  %v489_v44 = vadd.f32 %v464_v41, %v287_v36  ;;  %500 = vst.msk [vmem:[#allocation2 + $0x38] sm:$0xff] %vm492_vm2, %v483_v40  ;;  %v481_v45 = vadd.f32 %v432_v43, %v279_v38  ;;  %v544_v32 = vld [vmem:[#allocation2 + $0x58] sm:$0xff] }
 0x103   : > { %v2082_v46 = vpop.f32.mrf.mxu1  ;;  %v2106_v48 = vpop.f32.mrf.mxu0  ;;  %v534_v57 = vld [vmem:[#allocation2 + $0x8] sm:$0xff] }
 0x104   : > { %506 = vst.msk [vmem:[#allocation2 + $0x68] sm:$0xff] %vm492_vm2, %v489_v44  ;;  %v736_v49 = vadd.f32 %v2082_v46, %v535_v42  ;;  %498 = vst.msk [vmem:[#allocation2 + $0x28] sm:$0xff] %vm492_vm2, %v481_v45  ;;  %v542_v38 = vld [vmem:[#allocation2 + $0x48] sm:$0xff] }
 0x105   : > { %v671_v50 = vpop.f32.mrf.mxu1  ;;  %v928_v52 = vpop.f32.mrf.mxu0  ;;  %v539_v59 = vld [vmem:[#allocation2 + $0x30] sm:$0xff] }
 0x106   : > { %752 = vst.msk [vmem:[#allocation2 + $0x10] sm:$0xff] %vm492_vm2, %v736_v49  ;;  %v734_v53 = vadd.f32 %v671_v50, %v533_v47  ;;  %v547_v44 = vld [vmem:[#allocation2 + $0x70] sm:$0xff] }
 0x107   : > { %v2083_v54 = vpop.f32.mrf.mxu1  ;;  %v2107_v55 = vpop.f32.mrf.mxu0  ;;  %v537_v63 = vld [vmem:[#allocation2 + $0x20] sm:$0xff] }
 0x108   : > { %750 = vst.msk [vmem:[#allocation2] sm:$0xff] %vm492_vm2, %v734_v53  ;;  %v737_v56 = vadd.f32 %v2083_v54, %v536_v51  ;;  %v545_v50 = vld [vmem:[#allocation2 + $0x60] sm:$0xff] }
 0x109   : > { %v674_v58 = vpop.f32.mrf.mxu1  ;;  %v931_v60 = vpop.f32.mrf.mxu0  ;;  %v540_v4 = vld [vmem:[#allocation2 + $0x38] sm:$0xff] }
 0x10a   : > { %753 = vst.msk [vmem:[#allocation2 + $0x18] sm:$0xff] %vm492_vm2, %v737_v56  ;;  %v735_v61 = vadd.f32 %v674_v58, %v534_v57  ;;  %v548_v56 = vld [vmem:[#allocation2 + $0x78] sm:$0xff] }
 0x10b   : > { %v2086_v62 = vpop.f32.mrf.mxu1  ;;  %v2110_v0 = vpop.f32.mrf.mxu0  ;;  %v538_v14 = vld [vmem:[#allocation2 + $0x28] sm:$0xff] }
 0x10c   : > { %751 = vst.msk [vmem:[#allocation2 + $0x8] sm:$0xff] %vm492_vm2, %v735_v61  ;;  %v740_v1 = vadd.f32 %v2086_v62, %v539_v59  ;;  %v546_v62 = vld [vmem:[#allocation2 + $0x68] sm:$0xff] }
 0x10d   : > { %v792_v2 = vld [vmem:[#allocation2 + $0x10] sm:$0xff]  ;;  %v687_v3 = vpop.f32.mrf.mxu1  ;;  %v944_v5 = vpop.f32.mrf.mxu0 }
 0x10e   : > { %v993_v6 = vadd.f32 %v2106_v48, %v792_v2  ;;  %756 = vst.msk [vmem:[#allocation2 + $0x30] sm:$0xff] %vm492_vm2, %v740_v1  ;;  %v738_v7 = vadd.f32 %v687_v3, %v537_v63 }
 0x10f   : > { %v790_v8 = vld [vmem:[#allocation2] sm:$0xff]  ;;  %v2087_v9 = vpop.f32.mrf.mxu1  ;;  %v2111_v10 = vpop.f32.mrf.mxu0 }
 0x110   : > { %1009 = vst.msk [vmem:[#allocation2 + $0x10] sm:$0xff] %vm492_vm2, %v993_v6  ;;  %v991_v11 = vadd.f32 %v928_v52, %v790_v8  ;;  %754 = vst.msk [vmem:[#allocation2 + $0x20] sm:$0xff] %vm492_vm2, %v738_v7  ;;  %v741_v12 = vadd.f32 %v2087_v9, %v540_v4 }
 0x111   : > { %v793_v13 = vld [vmem:[#allocation2 + $0x18] sm:$0xff]  ;;  %v690_v15 = vpop.f32.mrf.mxu1  ;;  %v947_v16 = vpop.f32.mrf.mxu0 }
 0x112   : > { %1007 = vst.msk [vmem:[#allocation2] sm:$0xff] %vm492_vm2, %v991_v11  ;;  %v994_v17 = vadd.f32 %v2107_v55, %v793_v13  ;;  %757 = vst.msk [vmem:[#allocation2 + $0x38] sm:$0xff] %vm492_vm2, %v741_v12  ;;  %v739_v18 = vadd.f32 %v690_v15, %v538_v14 }
 0x113   : > { %v791_v19 = vld [vmem:[#allocation2 + $0x8] sm:$0xff]  ;;  %v2090_v21 = vpop.f32.mrf.mxu1  ;;  %v2114_v22 = vpop.f32.mrf.mxu0 }
 0x114   : > { %1010 = vst.msk [vmem:[#allocation2 + $0x18] sm:$0xff] %vm492_vm2, %v994_v17  ;;  %v992_v23 = vadd.f32 %v931_v60, %v791_v19  ;;  %755 = vst.msk [vmem:[#allocation2 + $0x28] sm:$0xff] %vm492_vm2, %v739_v18  ;;  %v744_v24 = vadd.f32 %v2090_v21, %v543_v20 }
 0x115   : > { %v796_v25 = vld [vmem:[#allocation2 + $0x30] sm:$0xff]  ;;  %v703_v27 = vpop.f32.mrf.mxu1  ;;  %v960_v28 = vpop.f32.mrf.mxu0 }
 0x116   : > { %1008 = vst.msk [vmem:[#allocation2 + $0x8] sm:$0xff] %vm492_vm2, %v992_v23  ;;  %v997_v29 = vadd.f32 %v2110_v0, %v796_v25  ;;  %760 = vst.msk [vmem:[#allocation2 + $0x50] sm:$0xff] %vm492_vm2, %v744_v24  ;;  %v742_v30 = vadd.f32 %v703_v27, %v541_v26 }
 0x117   : > { %v794_v31 = vld [vmem:[#allocation2 + $0x20] sm:$0xff]  ;;  %v2091_v33 = vpop.f32.mrf.mxu1  ;;  %v2115_v34 = vpop.f32.mrf.mxu0  ;;  %v1049_v4 = vld [vmem:[#allocation2 + $0x10] sm:$0xff] }
 0x118   : > { %1013 = vst.msk [vmem:[#allocation2 + $0x30] sm:$0xff] %vm492_vm2, %v997_v29  ;;  %v995_v35 = vadd.f32 %v944_v5, %v794_v31  ;;  %758 = vst.msk [vmem:[#allocation2 + $0x40] sm:$0xff] %vm492_vm2, %v742_v30  ;;  %v745_v36 = vadd.f32 %v2091_v33, %v544_v32 }
 0x119   : > { %v797_v37 = vld [vmem:[#allocation2 + $0x38] sm:$0xff]  ;;  %v706_v39 = vpop.f32.mrf.mxu1  ;;  %v963_v40 = vpop.f32.mrf.mxu0 }
 0x11a   : > { %1011 = vst.msk [vmem:[#allocation2 + $0x20] sm:$0xff] %vm492_vm2, %v995_v35  ;;  %v998_v41 = vadd.f32 %v2111_v10, %v797_v37  ;;  %761 = vst.msk [vmem:[#allocation2 + $0x58] sm:$0xff] %vm492_vm2, %v745_v36  ;;  %v743_v42 = vadd.f32 %v706_v39, %v542_v38  ;;  %v1047_v10 = vld [vmem:[#allocation2] sm:$0xff] }
 0x11b   : > { %v795_v43 = vld [vmem:[#allocation2 + $0x28] sm:$0xff]  ;;  %v2094_v45 = vpop.f32.mrf.mxu1  ;;  %v2118_v46 = vpop.f32.mrf.mxu0 }
 0x11c   : > { %1014 = vst.msk [vmem:[#allocation2 + $0x38] sm:$0xff] %vm492_vm2, %v998_v41  ;;  %v996_v47 = vadd.f32 %v947_v16, %v795_v43  ;;  %759 = vst.msk [vmem:[#allocation2 + $0x48] sm:$0xff] %vm492_vm2, %v743_v42  ;;  %v748_v48 = vadd.f32 %v2094_v45, %v547_v44  ;;  %v1050_v16 = vld [vmem:[#allocation2 + $0x18] sm:$0xff] }
 0x11d   : > { %v800_v49 = vld [vmem:[#allocation2 + $0x50] sm:$0xff]  ;;  %v719_v51 = vpop.f32.mrf.mxu1  ;;  %v976_v52 = vpop.f32.mrf.mxu0 }
 0x11e   : > { %1012 = vst.msk [vmem:[#allocation2 + $0x28] sm:$0xff] %vm492_vm2, %v996_v47  ;;  %v1001_v53 = vadd.f32 %v2114_v22, %v800_v49  ;;  %764 = vst.msk [vmem:[#allocation2 + $0x70] sm:$0xff] %vm492_vm2, %v748_v48  ;;  %v746_v54 = vadd.f32 %v719_v51, %v545_v50  ;;  %v1048_v22 = vld [vmem:[#allocation2 + $0x8] sm:$0xff] }
 0x11f   : > { %v798_v55 = vld [vmem:[#allocation2 + $0x40] sm:$0xff]  ;;  %v2095_v57 = vpop.f32.mrf.mxu1  ;;  %v2119_v58 = vpop.f32.mrf.mxu0 }
 0x120   : > { %1017 = vst.msk [vmem:[#allocation2 + $0x50] sm:$0xff] %vm492_vm2, %v1001_v53  ;;  %v999_v59 = vadd.f32 %v960_v28, %v798_v55  ;;  %762 = vst.msk [vmem:[#allocation2 + $0x60] sm:$0xff] %vm492_vm2, %v746_v54  ;;  %v749_v60 = vadd.f32 %v2095_v57, %v548_v56  ;;  %v1053_v28 = vld [vmem:[#allocation2 + $0x30] sm:$0xff] }
 0x121   : > { %v801_v61 = vld [vmem:[#allocation2 + $0x58] sm:$0xff]  ;;  %v722_v63 = vpop.f32.mrf.mxu1  ;;  %v979_v0 = vpop.f32.mrf.mxu0 }
 0x122   : > { %1015 = vst.msk [vmem:[#allocation2 + $0x40] sm:$0xff] %vm492_vm2, %v999_v59  ;;  %v1002_v1 = vadd.f32 %v2115_v34, %v801_v61  ;;  %765 = vst.msk [vmem:[#allocation2 + $0x78] sm:$0xff] %vm492_vm2, %v749_v60  ;;  %v747_v2 = vadd.f32 %v722_v63, %v546_v62  ;;  %v1051_v34 = vld [vmem:[#allocation2 + $0x20] sm:$0xff] }
 0x123   : > { %v799_v3 = vld [vmem:[#allocation2 + $0x48] sm:$0xff]  ;;  %v2130_v5 = vpop.f32.mrf.mxu1  ;;  %v2154_v6 = vpop.f32.mrf.mxu0 }
 0x124   : > { %1018 = vst.msk [vmem:[#allocation2 + $0x58] sm:$0xff] %vm492_vm2, %v1002_v1  ;;  %v1000_v7 = vadd.f32 %v963_v40, %v799_v3  ;;  %763 = vst.msk [vmem:[#allocation2 + $0x68] sm:$0xff] %vm492_vm2, %v747_v2  ;;  %v1250_v8 = vadd.f32 %v2130_v5, %v1049_v4  ;;  %v1054_v40 = vld [vmem:[#allocation2 + $0x38] sm:$0xff] }
 0x125   : > { %v804_v9 = vld [vmem:[#allocation2 + $0x70] sm:$0xff]  ;;  %v1185_v11 = vpop.f32.mrf.mxu1  ;;  %v1442_v12 = vpop.f32.mrf.mxu0 }
 0x126   : > { %1016 = vst.msk [vmem:[#allocation2 + $0x48] sm:$0xff] %vm492_vm2, %v1000_v7  ;;  %v1005_v13 = vadd.f32 %v2118_v46, %v804_v9  ;;  %1266 = vst.msk [vmem:[#allocation2 + $0x10] sm:$0xff] %vm492_vm2, %v1250_v8  ;;  %v1248_v14 = vadd.f32 %v1185_v11, %v1047_v10  ;;  %v1052_v46 = vld [vmem:[#allocation2 + $0x28] sm:$0xff] }
 0x127   : > { %v802_v15 = vld [vmem:[#allocation2 + $0x60] sm:$0xff]  ;;  %v2131_v17 = vpop.f32.mrf.mxu1  ;;  %v2155_v18 = vpop.f32.mrf.mxu0 }
 0x128   : > { %1021 = vst.msk [vmem:[#allocation2 + $0x70] sm:$0xff] %vm492_vm2, %v1005_v13  ;;  %v1003_v19 = vadd.f32 %v976_v52, %v802_v15  ;;  %1264 = vst.msk [vmem:[#allocation2] sm:$0xff] %vm492_vm2, %v1248_v14  ;;  %v1251_v20 = vadd.f32 %v2131_v17, %v1050_v16  ;;  %v1057_v52 = vld [vmem:[#allocation2 + $0x50] sm:$0xff] }
 0x129   : > { %v805_v21 = vld [vmem:[#allocation2 + $0x78] sm:$0xff]  ;;  %v1188_v23 = vpop.f32.mrf.mxu1  ;;  %v1445_v24 = vpop.f32.mrf.mxu0 }
 0x12a   : > { %1019 = vst.msk [vmem:[#allocation2 + $0x60] sm:$0xff] %vm492_vm2, %v1003_v19  ;;  %v1006_v25 = vadd.f32 %v2119_v58, %v805_v21  ;;  %1267 = vst.msk [vmem:[#allocation2 + $0x18] sm:$0xff] %vm492_vm2, %v1251_v20  ;;  %v1249_v26 = vadd.f32 %v1188_v23, %v1048_v22  ;;  %v1055_v58 = vld [vmem:[#allocation2 + $0x40] sm:$0xff] }
 0x12b   : > { %v803_v27 = vld [vmem:[#allocation2 + $0x68] sm:$0xff]  ;;  %v2134_v29 = vpop.f32.mrf.mxu1  ;;  %v2158_v30 = vpop.f32.mrf.mxu0 }
 0x12c   : > { %1022 = vst.msk [vmem:[#allocation2 + $0x78] sm:$0xff] %vm492_vm2, %v1006_v25  ;;  %v1004_v31 = vadd.f32 %v979_v0, %v803_v27  ;;  %1265 = vst.msk [vmem:[#allocation2 + $0x8] sm:$0xff] %vm492_vm2, %v1249_v26  ;;  %v1254_v32 = vadd.f32 %v2134_v29, %v1053_v28  ;;  %v1058_v0 = vld [vmem:[#allocation2 + $0x58] sm:$0xff] }
 0x12d   : > { %v1306_v33 = vld [vmem:[#allocation2 + $0x10] sm:$0xff]  ;;  %v1201_v35 = vpop.f32.mrf.mxu1  ;;  %v1458_v36 = vpop.f32.mrf.mxu0 }
 0x12e   : > { %1020 = vst.msk [vmem:[#allocation2 + $0x68] sm:$0xff] %vm492_vm2, %v1004_v31  ;;  %v1507_v37 = vadd.f32 %v2154_v6, %v1306_v33  ;;  %1270 = vst.msk [vmem:[#allocation2 + $0x30] sm:$0xff] %vm492_vm2, %v1254_v32  ;;  %v1252_v38 = vadd.f32 %v1201_v35, %v1051_v34  ;;  %v1056_v6 = vld [vmem:[#allocation2 + $0x48] sm:$0xff] }
 0x12f   : > { %v1304_v39 = vld [vmem:[#allocation2] sm:$0xff]  ;;  %v2135_v41 = vpop.f32.mrf.mxu1  ;;  %v2159_v42 = vpop.f32.mrf.mxu0  ;;  %v1061_v11 = vld [vmem:[#allocation2 + $0x70] sm:$0xff] }
 0x130   : > { %1523 = vst.msk [vmem:[#allocation2 + $0x10] sm:$0xff] %vm492_vm2, %v1507_v37  ;;  %v1505_v43 = vadd.f32 %v1442_v12, %v1304_v39  ;;  %1268 = vst.msk [vmem:[#allocation2 + $0x20] sm:$0xff] %vm492_vm2, %v1252_v38  ;;  %v1255_v44 = vadd.f32 %v2135_v41, %v1054_v40 }
 0x131   : > { %v1307_v45 = vld [vmem:[#allocation2 + $0x18] sm:$0xff]  ;;  %v1204_v47 = vpop.f32.mrf.mxu1  ;;  %v1461_v48 = vpop.f32.mrf.mxu0  ;;  %v1059_v17 = vld [vmem:[#allocation2 + $0x60] sm:$0xff] }
 0x132   : > { %1521 = vst.msk [vmem:[#allocation2] sm:$0xff] %vm492_vm2, %v1505_v43  ;;  %v1508_v49 = vadd.f32 %v2155_v18, %v1307_v45  ;;  %1271 = vst.msk [vmem:[#allocation2 + $0x38] sm:$0xff] %vm492_vm2, %v1255_v44  ;;  %v1253_v50 = vadd.f32 %v1204_v47, %v1052_v46 }
 0x133   : > { %v1305_v51 = vld [vmem:[#allocation2 + $0x8] sm:$0xff]  ;;  %v2138_v53 = vpop.f32.mrf.mxu1  ;;  %v2162_v54 = vpop.f32.mrf.mxu0  ;;  %v1062_v22 = vld [vmem:[#allocation2 + $0x78] sm:$0xff] }
 0x134   : > { %1524 = vst.msk [vmem:[#allocation2 + $0x18] sm:$0xff] %vm492_vm2, %v1508_v49  ;;  %v1506_v55 = vadd.f32 %v1445_v24, %v1305_v51  ;;  %1269 = vst.msk [vmem:[#allocation2 + $0x28] sm:$0xff] %vm492_vm2, %v1253_v50  ;;  %v1258_v56 = vadd.f32 %v2138_v53, %v1057_v52 }
 0x135   : > { %v1310_v57 = vld [vmem:[#allocation2 + $0x30] sm:$0xff]  ;;  %v1217_v59 = vpop.f32.mrf.mxu1  ;;  %v1474_v60 = vpop.f32.mrf.mxu0  ;;  %v1060_v28 = vld [vmem:[#allocation2 + $0x68] sm:$0xff] }
 0x136   : > { %1522 = vst.msk [vmem:[#allocation2 + $0x8] sm:$0xff] %vm492_vm2, %v1506_v55  ;;  %v1511_v61 = vadd.f32 %v2158_v30, %v1310_v57  ;;  %1274 = vst.msk [vmem:[#allocation2 + $0x50] sm:$0xff] %vm492_vm2, %v1258_v56  ;;  %v1256_v62 = vadd.f32 %v1217_v59, %v1055_v58 }
 0x137   : > { %v1308_v63 = vld [vmem:[#allocation2 + $0x20] sm:$0xff]  ;;  %v2139_v1 = vpop.f32.mrf.mxu1  ;;  %v2163_v2 = vpop.f32.mrf.mxu0 }
 0x138   : > { %1527 = vst.msk [vmem:[#allocation2 + $0x30] sm:$0xff] %vm492_vm2, %v1511_v61  ;;  %v1509_v3 = vadd.f32 %v1458_v36, %v1308_v63  ;;  %1272 = vst.msk [vmem:[#allocation2 + $0x40] sm:$0xff] %vm492_vm2, %v1256_v62  ;;  %v1259_v4 = vadd.f32 %v2139_v1, %v1058_v0 }
 0x139   : > { %v1311_v5 = vld [vmem:[#allocation2 + $0x38] sm:$0xff]  ;;  %v1220_v7 = vpop.f32.mrf.mxu1  ;;  %v1477_v13 = vpop.f32.mrf.mxu0 }
 0x13a   : > { %1525 = vst.msk [vmem:[#allocation2 + $0x20] sm:$0xff] %vm492_vm2, %v1509_v3  ;;  %v1512_v8 = vadd.f32 %v2159_v42, %v1311_v5  ;;  %1275 = vst.msk [vmem:[#allocation2 + $0x58] sm:$0xff] %vm492_vm2, %v1259_v4  ;;  %v1257_v9 = vadd.f32 %v1220_v7, %v1056_v6 }
 0x13b   : > { %v1309_v10 = vld [vmem:[#allocation2 + $0x28] sm:$0xff]  ;;  %v2142_v12 = vpop.f32.mrf.mxu1  ;;  %v2166_v24 = vpop.f32.mrf.mxu0 }
 0x13c   : > { %1528 = vst.msk [vmem:[#allocation2 + $0x38] sm:$0xff] %vm492_vm2, %v1512_v8  ;;  %v1510_v14 = vadd.f32 %v1461_v48, %v1309_v10  ;;  %1273 = vst.msk [vmem:[#allocation2 + $0x48] sm:$0xff] %vm492_vm2, %v1257_v9  ;;  %v1262_v15 = vadd.f32 %v2142_v12, %v1061_v11 }
 0x13d   : > { %v1314_v16 = vld [vmem:[#allocation2 + $0x50] sm:$0xff]  ;;  %v1233_v18 = vpop.f32.mrf.mxu1  ;;  %v1490_v33 = vpop.f32.mrf.mxu0 }
 0x13e   : > { %1526 = vst.msk [vmem:[#allocation2 + $0x28] sm:$0xff] %vm492_vm2, %v1510_v14  ;;  %v1515_v19 = vadd.f32 %v2162_v54, %v1314_v16  ;;  %1278 = vst.msk [vmem:[#allocation2 + $0x70] sm:$0xff] %vm492_vm2, %v1262_v15  ;;  %v1260_v20 = vadd.f32 %v1233_v18, %v1059_v17 }
 0x13f   : > { %v1312_v21 = vld [vmem:[#allocation2 + $0x40] sm:$0xff]  ;;  %v2143_v23 = vpop.f32.mrf.mxu1  ;;  %v2167_v38 = vpop.f32.mrf.mxu0 }
 0x140   : > { %1531 = vst.msk [vmem:[#allocation2 + $0x50] sm:$0xff] %vm492_vm2, %v1515_v19  ;;  %v1513_v25 = vadd.f32 %v1474_v60, %v1312_v21  ;;  %1276 = vst.msk [vmem:[#allocation2 + $0x60] sm:$0xff] %vm492_vm2, %v1260_v20  ;;  %v1263_v26 = vadd.f32 %v2143_v23, %v1062_v22 }
 0x141   : > { %v1315_v27 = vld [vmem:[#allocation2 + $0x58] sm:$0xff]  ;;  %v1236_v29 = vpop.f32.mrf.mxu1  ;;  %v1493_v43 = vpop.f32.mrf.mxu0 }
 0x142   : > { %1529 = vst.msk [vmem:[#allocation2 + $0x40] sm:$0xff] %vm492_vm2, %v1513_v25  ;;  %v1516_v30 = vadd.f32 %v2163_v2, %v1315_v27  ;;  %1279 = vst.msk [vmem:[#allocation2 + $0x78] sm:$0xff] %vm492_vm2, %v1263_v26  ;;  %v1261_v31 = vadd.f32 %v1236_v29, %v1060_v28 }
 0x143   : > { %v1313_v32 = vld [vmem:[#allocation2 + $0x48] sm:$0xff] }
 0x144   : > { %1532 = vst.msk [vmem:[#allocation2 + $0x58] sm:$0xff] %vm492_vm2, %v1516_v30  ;;  %v1514_v34 = vadd.f32 %v1477_v13, %v1313_v32  ;;  %1277 = vst.msk [vmem:[#allocation2 + $0x68] sm:$0xff] %vm492_vm2, %v1261_v31 }
 0x145   : > { %v1318_v35 = vld [vmem:[#allocation2 + $0x70] sm:$0xff] }
 0x146   : > { %1530 = vst.msk [vmem:[#allocation2 + $0x48] sm:$0xff] %vm492_vm2, %v1514_v34  ;;  %v1519_v36 = vadd.f32 %v2166_v24, %v1318_v35 }
 0x147   : > { %v1316_v37 = vld [vmem:[#allocation2 + $0x60] sm:$0xff] }
 0x148   : > { %1535 = vst.msk [vmem:[#allocation2 + $0x70] sm:$0xff] %vm492_vm2, %v1519_v36  ;;  %v1517_v39 = vadd.f32 %v1490_v33, %v1316_v37 }
 0x149   : > { %v1319_v40 = vld [vmem:[#allocation2 + $0x78] sm:$0xff] }
 0x14a   : > { %1533 = vst.msk [vmem:[#allocation2 + $0x60] sm:$0xff] %vm492_vm2, %v1517_v39  ;;  %v1520_v41 = vadd.f32 %v2167_v38, %v1319_v40  ;;  %1540 = sbr.rel (%p1952_p9) target bundleno = 384 (0x180), region = 36 }
 0x14b   : > { %v1317_v42 = vld [vmem:[#allocation2 + $0x68] sm:$0xff] }
 0x14c   : > { %1536 = vst.msk [vmem:[#allocation2 + $0x78] sm:$0xff] %vm492_vm2, %v1520_v41  ;;  %v1518_v44 = vadd.f32 %v1493_v43, %v1317_v42 }
 0x14e   : > { %1534 = vst.msk [vmem:[#allocation2 + $0x68] sm:$0xff] %vm492_vm2, %v1518_v44 }
 0x14f   : > { %v1541_v45 = vld [vmem:[#allocation2] sm:$0xff]  ;;  %vm1621_vm3 = vcmask 257024   ;;  %v1542_v46 = vld [vmem:[#allocation2 + $0x8] sm:$0xff]  ;;  %v1543_v47 = vld [vmem:[#allocation2 + $0x10] sm:$0xff]  ;;  %vm1728_vm4 = vcmask 1040384   ;;  %vm1730_vm5 = vcmask 254976  }
 0x150   : > { %v1972_v48 = vpack.c.bf16 %v1541_v45, %v1541_v45  ;;  %v1638_v49 = vsel %vm492_vm2, %v1541_v45, 0.0  ;;  %v1675_v50 = vmul.f32 %v1541_v45, %v1541_v45  ;;  %v1973_v51 = vpack.c.bf16 %v1542_v46, %v1542_v46  ;;  %v1544_v52 = vld [vmem:[#allocation2 + $0x18] sm:$0xff]  ;;  %v1545_v61 = vld [vmem:[#allocation2 + $0x20] sm:$0xff]  ;;  %v1546_v2 = vld [vmem:[#allocation2 + $0x28] sm:$0xff] }
 0x151   : > { %v1639_v53 = vsel %vm492_vm2, %v1542_v46, 0.0  ;;  %v1676_v54 = vmul.f32 %v1542_v46, %v1542_v46  ;;  %v1974_v55 = vpack.c.bf16 %v1543_v47, %v1543_v47  ;;  %v1641_v56 = vsel %vm492_vm2, %v1543_v47, 0.0  ;;  %v1547_v6 = vld [vmem:[#allocation2 + $0x30] sm:$0xff]  ;;  %v1548_v15 = vld [vmem:[#allocation2 + $0x38] sm:$0xff]  ;;  %v1549_v22 = vld [vmem:[#allocation2 + $0x40] sm:$0xff] }
 0x152   : > { %1622 = vst.msk [vmem:[%s2388_s7] sm:$0xf] %vm1621_vm3, %v1972_v48  ;;  %v1691_v57 = vsel %vm492_vm2, %v1675_v50, 0.0  ;;  %1623 = vst.msk [vmem:[%s2388_s7 + $0x4] sm:$0xf] %vm1621_vm3, %v1973_v51  ;;  %v1640_v58 = vadd.f32 %v1639_v53, %v1638_v49  ;;  %v1677_v59 = vmul.f32 %v1543_v47, %v1543_v47  ;;  %v1975_v60 = vpack.c.bf16 %v1544_v52, %v1544_v52  ;;  %v1550_v27 = vld [vmem:[#allocation2 + $0x48] sm:$0xff] }
 0x153   : > { %v1692_v62 = vsel %vm492_vm2, %v1676_v54, 0.0  ;;  %1624 = vst.msk [vmem:[%s2388_s7 + $0x8] sm:$0xf] %vm1621_vm3, %v1974_v55  ;;  %v1643_v63 = vsel %vm492_vm2, %v1544_v52, 0.0  ;;  %v1678_v0 = vmul.f32 %v1544_v52, %v1544_v52  ;;  %v1976_v1 = vpack.c.bf16 %v1545_v61, %v1545_v61  ;;  %v1551_v31 = vld [vmem:[#allocation2 + $0x50] sm:$0xff]  ;;  %v1552_v38 = vld [vmem:[#allocation2 + $0x58] sm:$0xff] }
 0x154   : > { %v1693_v3 = vadd.f32 %v1692_v62, %v1691_v57  ;;  %v1642_v4 = vadd.f32 %v1641_v56, %v1640_v58  ;;  %v1694_v5 = vsel %vm492_vm2, %v1677_v59, 0.0  ;;  %1625 = vst.msk [vmem:[%s2388_s7 + $0xc] sm:$0xf] %vm1621_vm3, %v1975_v60  ;;  %v1645_v8 = vsel %vm492_vm2, %v1545_v61, 0.0  ;;  %v1553_v43 = vld [vmem:[#allocation2 + $0x60] sm:$0xff]  ;;  %v1555_v54 = vld [vmem:[#allocation2 + $0x70] sm:$0xff] }
 0x155   : > { %v1696_v7 = vsel %vm492_vm2, %v1678_v0, 0.0  ;;  %1626 = vst.msk [vmem:[%s2388_s7 + $0x10] sm:$0xf] %vm1621_vm3, %v1976_v1  ;;  %v1679_v9 = vmul.f32 %v1545_v61, %v1545_v61  ;;  %v1977_v10 = vpack.c.bf16 %v1546_v2, %v1546_v2  ;;  %v1680_v13 = vmul.f32 %v1546_v2, %v1546_v2  ;;  %v1554_v47 = vld [vmem:[#allocation2 + $0x68] sm:$0xff]  ;;  %v1556_v59 = vld [vmem:[#allocation2 + $0x78] sm:$0xff] }
 0x156   : > { %v1695_v11 = vadd.f32 %v1694_v5, %v1693_v3  ;;  %v1644_v12 = vadd.f32 %v1643_v63, %v1642_v4  ;;  %v1978_v14 = vpack.c.bf16 %v1547_v6, %v1547_v6  ;;  %v1647_v17 = vsel %vm492_vm2, %v1546_v2, 0.0 }
 0x157   : > { %v1698_v16 = vsel %vm492_vm2, %v1679_v9, 0.0  ;;  %1627 = vst.msk [vmem:[%s2388_s7 + $0x14] sm:$0xf] %vm1621_vm3, %v1977_v10  ;;  %v1681_v18 = vmul.f32 %v1547_v6, %v1547_v6  ;;  %v1979_v19 = vpack.c.bf16 %v1548_v15, %v1548_v15  ;;  %v1700_v23 = vsel %vm492_vm2, %v1680_v13, 0.0 }
 0x158   : > { %v1697_v20 = vadd.f32 %v1696_v7, %v1695_v11  ;;  %v1646_v21 = vadd.f32 %v1645_v8, %v1644_v12  ;;  %1628 = vst.msk [vmem:[%s2388_s7 + $0x18] sm:$0xf] %vm1621_vm3, %v1978_v14  ;;  %v1649_v24 = vsel %vm492_vm2, %v1547_v6, 0.0  ;;  %v1682_v25 = vmul.f32 %v1548_v15, %v1548_v15 }
 0x159   : > { %1629 = vst.msk [vmem:[%s2388_s7 + $0x1c] sm:$0xf] %vm1621_vm3, %v1979_v19  ;;  %v1980_v26 = vpack.c.bf16 %v1549_v22, %v1549_v22  ;;  %v1981_v30 = vpack.c.bf16 %v1550_v27, %v1550_v27  ;;  %v1702_v32 = vsel %vm492_vm2, %v1681_v18, 0.0  ;;  %v1651_v33 = vsel %vm492_vm2, %v1548_v15, 0.0 }
 0x15a   : > { %v1699_v28 = vadd.f32 %v1698_v16, %v1697_v20  ;;  %v1648_v29 = vadd.f32 %v1647_v17, %v1646_v21  ;;  %v1683_v34 = vmul.f32 %v1549_v22, %v1549_v22  ;;  %v1982_v35 = vpack.c.bf16 %v1551_v31, %v1551_v31 }
 0x15b   : > { %1630 = vst.msk [vmem:[%s2388_s7 + $0x20] sm:$0xf] %vm1621_vm3, %v1980_v26  ;;  %1631 = vst.msk [vmem:[%s2388_s7 + $0x24] sm:$0xf] %vm1621_vm3, %v1981_v30  ;;  %v1704_v39 = vsel %vm492_vm2, %v1682_v25, 0.0  ;;  %v1653_v40 = vsel %vm492_vm2, %v1549_v22, 0.0  ;;  %v1684_v41 = vmul.f32 %v1550_v27, %v1550_v27  ;;  %v1983_v42 = vpack.c.bf16 %v1552_v38, %v1552_v38 }
 0x15c   : > { %v1701_v36 = vadd.f32 %v1700_v23, %v1699_v28  ;;  %v1650_v37 = vadd.f32 %v1649_v24, %v1648_v29  ;;  %1632 = vst.msk [vmem:[%s2388_s7 + $0x28] sm:$0xf] %vm1621_vm3, %v1982_v35  ;;  %v1984_v46 = vpack.c.bf16 %v1553_v43, %v1553_v43  ;;  %v1706_v48 = vsel %vm492_vm2, %v1683_v34, 0.0 }
 0x15d   : > { %v1655_v49 = vsel %vm492_vm2, %v1550_v27, 0.0  ;;  %v1685_v50 = vmul.f32 %v1551_v31, %v1551_v31  ;;  %1633 = vst.msk [vmem:[%s2388_s7 + $0x2c] sm:$0xf] %vm1621_vm3, %v1983_v42  ;;  %v1985_v51 = vpack.c.bf16 %v1554_v47, %v1554_v47  ;;  %v1708_v55 = vsel %vm492_vm2, %v1684_v41, 0.0 }
 0x15e   : > { %v1703_v44 = vadd.f32 %v1702_v32, %v1701_v36  ;;  %v1652_v45 = vadd.f32 %v1651_v33, %v1650_v37  ;;  %1634 = vst.msk [vmem:[%s2388_s7 + $0x30] sm:$0xf] %vm1621_vm3, %v1984_v46  ;;  %v1657_v56 = vsel %vm492_vm2, %v1551_v31, 0.0  ;;  %v1686_v57 = vmul.f32 %v1552_v38, %v1552_v38 }
 0x15f   : > { %1635 = vst.msk [vmem:[%s2388_s7 + $0x34] sm:$0xf] %vm1621_vm3, %v1985_v51  ;;  %v1986_v58 = vpack.c.bf16 %v1555_v54, %v1555_v54  ;;  %v1987_v62 = vpack.c.bf16 %v1556_v59, %v1556_v59  ;;  %v1710_v63 = vsel %vm492_vm2, %v1685_v50, 0.0  ;;  %v1659_v0 = vsel %vm492_vm2, %v1552_v38, 0.0 }
 0x160   : > { %v1705_v52 = vadd.f32 %v1704_v39, %v1703_v44  ;;  %v1654_v53 = vadd.f32 %v1653_v40, %v1652_v45  ;;  %v1687_v1 = vmul.f32 %v1553_v43, %v1553_v43  ;;  %v1712_v4 = vsel %vm492_vm2, %v1686_v57, 0.0 }
 0x161   : > { %1636 = vst.msk [vmem:[%s2388_s7 + $0x38] sm:$0xf] %vm1621_vm3, %v1986_v58  ;;  %1637 = vst.msk [vmem:[%s2388_s7 + $0x3c] sm:$0xf] %vm1621_vm3, %v1987_v62  ;;  %v1661_v5 = vsel %vm492_vm2, %v1553_v43, 0.0  ;;  %v1688_v6 = vmul.f32 %v1554_v47, %v1554_v47  ;;  %v1663_v10 = vsel %vm492_vm2, %v1554_v47, 0.0  ;;  %v1689_v11 = vmul.f32 %v1555_v54, %v1555_v54 }
 0x162   : > { %v1707_v60 = vadd.f32 %v1706_v48, %v1705_v52  ;;  %v1656_v61 = vadd.f32 %v1655_v49, %v1654_v53  ;;  %v1714_v9 = vsel %vm492_vm2, %v1687_v1, 0.0  ;;  %v1665_v15 = vsel %vm492_vm2, %v1555_v54, 0.0 }
 0x163   : > { %v1716_v14 = vsel %vm492_vm2, %v1688_v6, 0.0  ;;  %v1690_v16 = vmul.f32 %v1556_v59, %v1556_v59  ;;  %v1718_v19 = vsel %vm492_vm2, %v1689_v11, 0.0  ;;  %v1667_v20 = vsel %vm492_vm2, %v1556_v59, 0.0 }
 0x164   : > { %v1709_v2 = vadd.f32 %v1708_v55, %v1707_v60  ;;  %v1658_v3 = vadd.f32 %v1657_v56, %v1656_v61 }
 0x165   : > { %v1720_v23 = vsel %vm492_vm2, %v1690_v16, 0.0 }
 0x166   : > { %v1711_v7 = vadd.f32 %v1710_v63, %v1709_v2  ;;  %v1660_v8 = vadd.f32 %v1659_v0, %v1658_v3 }
 0x168   : > { %v1713_v12 = vadd.f32 %v1712_v4, %v1711_v7  ;;  %v1662_v13 = vadd.f32 %v1661_v5, %v1660_v8 }
 0x16a   : > { %v1715_v17 = vadd.f32 %v1714_v9, %v1713_v12  ;;  %v1664_v18 = vadd.f32 %v1663_v10, %v1662_v13 }
 0x16c   : > { %v1717_v21 = vadd.f32 %v1716_v14, %v1715_v17  ;;  %v1666_v22 = vadd.f32 %v1665_v15, %v1664_v18 }
 0x16e   : > { %v1719_v24 = vadd.f32 %v1718_v19, %v1717_v21  ;;  %v1668_v25 = vadd.f32 %v1667_v20, %v1666_v22 }
 0x170   : > { %v1669_v26 = vrot.slane %v1668_v25, 4  ;;  %v1721_v27 = vadd.f32 %v1720_v23, %v1719_v24 }
 0x172   : > { %v1722_v28 = vrot.slane %v1721_v27, 4  ;;  %v1670_v29 = vadd.f32 %v1669_v26, %v1668_v25 }
 0x174   : > { %v1671_v30 = vrot.slane %v1670_v29, 2  ;;  %v1723_v31 = vadd.f32 %v1722_v28, %v1721_v27 }
 0x176   : > { %v1672_v32 = vadd.f32 %v1671_v30, %v1670_v29  ;;  %v1724_v33 = vrot.slane %v1723_v31, 2 }
 0x178   : > { %v1673_v34 = vrot.slane %v1672_v32, 1  ;;  %v1725_v35 = vadd.f32 %v1724_v33, %v1723_v31 }
 0x17a   : > { %v1674_v36 = vadd.f32 %v1673_v34, %v1672_v32  ;;  %v1726_v37 = vrot.slane %v1725_v35, 1 }
 0x17c   : > { %v1727_v38 = vadd.f32 %v1726_v37, %v1725_v35 }
 0x17e   : > { %v1729_v39 = vsel %vm1728_vm4, %v1674_v36, %v1727_v38 }
 0x17f   : > { %1731 = vst.msk [vmem:[%s2393_s10] sm:$0x3] %vm1730_vm5, %v1729_v39 }
 0x180 PF: > { %s14_s16 = sadd.s32 1, %s2317_s16   ;;  %s2677_s12 = smov %s2309_s14 }
 0x181   : > { %p11_p10 = scmp.ge.s32.totalorder %s14_s16, 12   ;;  %s2678_s13 = smov %s2313_s15 }
 0x182   : > { %s2679_s14 = smov %s2682_s17  ;;  %s2680_s15 = smov %s2686_s18 }
 0x183   :  { %13 = sbr.rel (!%p11_p10) target bundleno = 3 (0x3), region = 81 }

// kernel: _lambda_.12
= control target key start
LH: loop header
LB: loop body
LE: loop exit
PB: predicated region body
PF: predicated region fallthrough
CT: control target
= control target key end

     0   :  { %s330_s12 = smov 0   ;;  %s365_s0 = inlined_call_operand.vmem [shape: bf16[2,4,16,16], index: 0, kind: input, shape index: {}]   ;;  %s366_s1 = inlined_call_operand.vmem [shape: f32[1,16], index: 1, kind: input, shape index: {}]   ;;  %s367_s2 = inlined_call_operand.vmem [shape: f32[1,16], index: 2, kind: input, shape index: {}]   ;;  %s368_s3 = inlined_call_operand.vmem [shape: bf16[2,4,5,16], index: 3, kind: output, shape index: {}]  }
   0x1 LB: > { %s279_s13 = sadd.s32 4294967295, %s308_s12   ;;  %p283_p0 = scmp.ge.s32.totalorder %s308_s12, 1  ;;  %s308_s12 = sphi %s330_s12, %s13_s12  }
   0x2   : > { %p137_p1 = scmp.lt.s32.totalorder %s308_s12, 3 }
   0x4   : > { %p138_p2 = pnand %p283_p0, %p137_p1 }
   0x5   : > { %p161_p3 = scmp.lt.s32.totalorder (!%p138_p2), %s279_s13, 1 }
   0x6   : > { %141 = sbr.rel (%p138_p2) target bundleno = 28 (0x1c), region = 32 }
   0xb   : > { %s372_s13 = smov (!%p161_p3, %s279_s13), 1  ;;  %v288_v1 = vld [vmem:[%s366_s1] ss:$0 sm:$0xff]  ;;  %vm209_vm0 = vcmask 124928   ;;  %vm210_vm1 = vsmask.f32 2304 }
   0xc   : > { %s292_s14 = sshll.u32 %s372_s13, 5  ;;  %s293_s20 = sshll.u32 %s372_s13, 4  ;;  %v289_v6 = vld [vmem:[%s367_s2] ss:$0 sm:$0xff]  ;;  %vm350_vm2 = vmand %vm209_vm0, %vm210_vm1 }
   0xd   : > { %s165_s17 = scalar_lea.vmem %s365_s0, %s292_s14  ;;  %s170_s25 = scalar_lea.vmem %s368_s3, %s293_s20 }
   0xe   : > { %v171_v0 = vld [vmem:[%s165_s17] sm:$0x7]  ;;  %v172_v2 = vld [vmem:[%s165_s17 + $0x8] sm:$0x7]  ;;  %v173_v5 = vld [vmem:[%s165_s17 + $0x10] sm:$0x7] }
   0xf   : > { %v175_v3 = vunpack.c.l.bf16 %v171_v0  ;;  %v176_v4 = vunpack.c.l.bf16 %v172_v2  ;;  %v177_v7 = vunpack.c.l.bf16 %v173_v5  ;;  %v174_v8 = vld [vmem:[%s165_s17 + $0x18] sm:$0x7]  ;;  %v212_v21 = vld [vmem:[%s170_s25] sm:$0x7]  ;;  %v215_v22 = vld [vmem:[%s170_s25 + $0x4] sm:$0x7] }
  0x10   : > { %v178_v11 = vunpack.c.l.bf16 %v174_v8  ;;  %v218_v26 = vld [vmem:[%s170_s25 + $0x8] sm:$0x7]  ;;  %v221_v29 = vld [vmem:[%s170_s25 + $0xc] sm:$0x7] }
  0x11   : > { %v186_v9 = vmul.f32 %v288_v1, %v175_v3  ;;  %v187_v10 = vmul.f32 %v288_v1, %v176_v4  ;;  %v188_v12 = vmul.f32 %v288_v1, %v177_v7 }
  0x12   : > { %v189_v15 = vmul.f32 %v288_v1, %v178_v11 }
  0x13   : > { %v197_v13 = vadd.f32 %v289_v6, %v186_v9  ;;  %v198_v14 = vadd.f32 %v289_v6, %v187_v10  ;;  %v199_v16 = vadd.f32 %v289_v6, %v188_v12 }
  0x14   : > { %v200_v19 = vadd.f32 %v289_v6, %v189_v15 }
  0x15   : > { %v201_v17 = vmax.f32 %v197_v13, 0.0  ;;  %v202_v18 = vmax.f32 %v198_v14, 0.0  ;;  %v203_v23 = vmax.f32 %v199_v16, 0.0 }
  0x16   : > { %v204_v27 = vmax.f32 %v200_v19, 0.0 }
  0x17   : > { %v205_v24 = vpack.c.bf16 %v201_v17, %v201_v17  ;;  %v206_v25 = vpack.c.bf16 %v202_v18, %v202_v18  ;;  %v207_v28 = vpack.c.bf16 %v203_v23, %v203_v23 }
  0x18   : > { %v208_v32 = vpack.c.bf16 %v204_v27, %v204_v27 }
  0x19   : > { %v213_v30 = vsel %vm350_vm2, %v205_v24, %v212_v21  ;;  %v216_v31 = vsel %vm350_vm2, %v206_v25, %v215_v22  ;;  %v219_v33 = vsel %vm350_vm2, %v207_v28, %v218_v26 }
  0x1a   : > { %214 = vst [vmem:[%s170_s25] sm:$0x7] %v213_v30  ;;  %217 = vst [vmem:[%s170_s25 + $0x4] sm:$0x7] %v216_v31  ;;  %v222_v34 = vsel %vm350_vm2, %v208_v32, %v221_v29 }
  0x1b   : > { %220 = vst [vmem:[%s170_s25 + $0x8] sm:$0x7] %v219_v33  ;;  %223 = vst [vmem:[%s170_s25 + $0xc] sm:$0x7] %v222_v34 }
  0x1c PF: > { %s13_s12 = sadd.s32 1, %s308_s12  }
  0x1d   : > { %p10_p4 = scmp.ge.s32.totalorder %s13_s12, 4  }
  0x1f   :  { %12 = sbr.rel (!%p10_p4) target bundleno = 1 (0x1), region = 62 }

// kernel: _lambda_.11
= control target key start
LH: loop header
LB: loop body
LE: loop exit
PB: predicated region body
PF: predicated region fallthrough
CT: control target
= control target key end

     0   :  { %s1495_s12 = smov 0   ;;  %s1497_s13 = smov 0   ;;  %s1690_s0 = inlined_call_operand.vmem [shape: bf16[10,128,32], index: 0, kind: input, shape index: {}]   ;;  %s1691_s1 = inlined_call_operand.vmem [shape: bf16[5,160,16], index: 1, kind: input, shape index: {}]   ;;  %s1692_s2 = inlined_call_operand.vmem [shape: bf16[2,64,16], index: 2, kind: output, shape index: {0}]   ;;  %s1693_s3 = inlined_call_operand.vmem [shape: f32[2,2,16], index: 3, kind: output, shape index: {1}]  }
   0x1   :  { %s1499_s14 = smov 0   ;;  %s1501_s15 = smov 0  }
   0x2   :  { %s1503_s16 = smov 0  }
   0x3 LB: > { %s23_s17 = sadd.s32 1, %s1464_s14  ;;  %s26_s18 = sadd.s32 1, %s1468_s15  ;;  %s1472_s16 = sphi %s1503_s16, %s14_s16   ;;  %s1468_s15 = sphi %s1501_s15, %s1697_s15   ;;  %s1464_s14 = sphi %s1499_s14, %s1696_s14   ;;  %s1460_s13 = sphi %s1497_s13, %s1695_s13   ;;  %s1456_s12 = sphi %s1495_s12, %s1694_s12  }
   0x4   : > { %p24_p0 = scmp.ge.s32.totalorder %s23_s17, 5  ;;  %p1189_p1 = scmp.ge.s32.totalorder %s1472_s16, 1 }
   0x5   : > { %p170_p2 = scmp.lt.s32.totalorder %s1472_s16, 11 }
   0x6   : > { %s1699_s17 = smov (%p24_p0, %s23_s17), 0  ;;  %s1701_s18 = smov (!%p24_p0, %s26_s18), %s1468_s15 }
   0x7   : > { %p171_p3 = pnand %p1189_p1, %p170_p2  ;;  %p28_p4 = scmp.ge.s32.totalorder %s1701_s18, 2 }
   0x8   : > { %s205_s19 = smul.u32 (!%p171_p3), 5, %s1460_s13  ;;  %p214_p5 = scmp.lt.s32.totalorder (!%p171_p3), %s1456_s12, 4 }
   0x9   : > { %s1703_s18 = smov (%p28_p4, %s1701_s18), 0  ;;  %174 = sbr.rel (%p171_p3) target bundleno = 320 (0x140), region = 28 }
   0xa   : > { %s206_s20 = sadd.s32 (!%p171_p3), %s1456_s12, %s205_s19  ;;  %p219_p7 = scmp.lt.s32.totalorder (!%p171_p3), %s1460_s13, 1 }
   0xb   : > { %p207_p6 = scmp.lt.s32.totalorder (!%p171_p3), %s206_s20, 9  ;;  %p1196_p8 = scmp.ne.s32.totalorder (!%p171_p3), %s1456_s12, 0 }
   0xe   : > { %s215_s21 = scalar_select %p214_p5, %s1456_s12, 4 }
   0xf   : > { %s1705_s20 = smov (!%p207_p6, %s206_s20), 9  ;;  %s1707_s13 = smov (!%p219_p7, %s1460_s13), 1 }
  0x10   : > { %s1362_s22 = smul.u32 80, %s215_s21  ;;  %s1258_s23 = sshll.u32 %s1705_s20, 6 }
  0x11   : > { %s1533_s26 = scalar_lea.vmem %s1690_s0, %s1258_s23  ;;  %s1259_s30 = sshll.u32 %s1707_s13, 5 }
  0x12   : > { %s1538_s29 = scalar_lea.vmem %s1691_s1, %s1362_s22  ;;  %s1195_s4 = sshll.u32 %s1707_s13, 1 }
  0x13   : > { %s1543_s7 = scalar_lea.vmem %s1692_s2, %s1259_s30  ;;  %s1548_s10 = scalar_lea.vmem %s1693_s3, %s1195_s4 }
  0x14   : > { %232 = sbr.rel (%p1196_p8) target bundleno = 30 (0x1e), region = 32 }
  0x19   : > { %vm233_vm0 = vcmask 130048   ;;  %v1474_v0 = vmov 0.0  }
  0x1a   : > { %234 = vst.msk [vmem:[#allocation2] sm:$0xff] %vm233_vm0, %v1474_v0  ;;  %235 = vst.msk [vmem:[#allocation2 + $0x8] sm:$0xff] %vm233_vm0, %v1474_v0 }
  0x1b   : > { %236 = vst.msk [vmem:[#allocation2 + $0x10] sm:$0xff] %vm233_vm0, %v1474_v0  ;;  %237 = vst.msk [vmem:[#allocation2 + $0x18] sm:$0xff] %vm233_vm0, %v1474_v0 }
  0x1c   : > { %238 = vst.msk [vmem:[#allocation2 + $0x20] sm:$0xff] %vm233_vm0, %v1474_v0  ;;  %239 = vst.msk [vmem:[#allocation2 + $0x28] sm:$0xff] %vm233_vm0, %v1474_v0 }
  0x1d   : > { %240 = vst.msk [vmem:[#allocation2 + $0x30] sm:$0xff] %vm233_vm0, %v1474_v0  ;;  %241 = vst.msk [vmem:[#allocation2 + $0x38] sm:$0xff] %vm233_vm0, %v1474_v0 }
  0x1e PF: > { %v1404_v1 = vld [vmem:[%s1538_s29 + $0x8] sm:$0xff]   ;;  %v1405_v2 = vld [vmem:[%s1538_s29] sm:$0xff]   ;;  %vm294_vm1 = vcmask 261120   ;;  %v1407_v4 = vld [vmem:[%s1533_s26 + $0x10] sm:$0xff]   ;;  %vm380_vm2 = vcmask 130048   ;;  %p1247_p9 = scmp.ne.s32.totalorder %s1456_s12, 4 }
  0x1f   : > { %1298 = vmatprep.subr.bf16.mxu0 %v1404_v1  ;;  %1358 = vmatprep.subr.bf16.mxu1 %v1404_v1  ;;  %v1406_v3 = vld [vmem:[%s1533_s26] sm:$0xff]   ;;  %v1408_v5 = vld [vmem:[%s1533_s26 + $0x8] sm:$0xff]   ;;  %v1409_v6 = vld [vmem:[%s1533_s26 + $0x18] sm:$0xff]  }
  0x20   : > { %1299 = vmatpush3.bf16.msra.mxu0 %v1404_v1  ;;  %1360 = vmatpush3.bf16.msra.mxu1 %v1404_v1  ;;  %v1410_v7 = vld [vmem:[%s1538_s29 + $0x18] sm:$0xff]   ;;  %v1411_v8 = vld [vmem:[%s1538_s29 + $0x10] sm:$0xff]   ;;  %v1412_v9 = vld [vmem:[%s1538_s29 + $0x28] sm:$0xff]  }
  0x21   : > { %1300 = vmatprep.subr.bf16.mxu0 %v1405_v2  ;;  %1359 = vmatprep.subr.bf16.mxu1 %v1405_v2  ;;  %v1413_v10 = vld [vmem:[%s1533_s26 + $0x8] sm:$0xff]   ;;  %v1415_v11 = vld [vmem:[%s1538_s29 + $0x20] sm:$0xff]   ;;  %v1416_v12 = vld [vmem:[%s1533_s26 + $0x10] sm:$0xff]  }
  0x22   : > { %1302 = vmatprep.mubr.msk.bf16.mxu0 %vm294_vm1, %v1406_v3  ;;  %1306 = vmatprep.mubr.msk.bf16.mxu1 %vm294_vm1, %v1407_v4  ;;  %v1417_v13 = vld [vmem:[%s1538_s29 + $0x38] sm:$0xff]   ;;  %v1414_v14 = vld [vmem:[%s1533_s26 + $0x10] sm:$0xff]   ;;  %v1421_v17 = vld [vmem:[%s1533_s26 + $0x20] sm:$0xff]  }
  0x23   : > { %v1418_v15 = vld [vmem:[%s1533_s26 + $0x18] sm:$0xff]   ;;  %v1422_v18 = vld [vmem:[%s1538_s29 + $0x30] sm:$0xff]   ;;  %v1420_v19 = vld [vmem:[%s1533_s26 + $0x20] sm:$0xff]  }
  0x24   : > { %1301 = vmatpush3.bf16.msra.mxu0 %v1405_v2  ;;  %1361 = vmatpush3.bf16.msra.mxu1 %v1405_v2  ;;  %v1419_v16 = vld [vmem:[%s1533_s26 + $0x18] sm:$0xff]   ;;  %v1424_v20 = vld [vmem:[%s1538_s29 + $0x48] sm:$0xff]   ;;  %v1427_v23 = vld [vmem:[%s1538_s29 + $0x40] sm:$0xff]  }
  0x25   : > { %1310 = vmatprep.subr.bf16.mxu1 %v1410_v7  ;;  %1322 = vmatprep.subr.bf16.mxu0 %v1412_v9  ;;  %v1423_v21 = vld [vmem:[%s1533_s26 + $0x28] sm:$0xff]   ;;  %v1425_v22 = vld [vmem:[%s1533_s26 + $0x18] sm:$0xff]   ;;  %v1430_v24 = vld [vmem:[%s1533_s26 + $0x20] sm:$0xff]  }
  0x26   : > { %v1426_v25 = vld [vmem:[%s1533_s26 + $0x20] sm:$0xff]   ;;  %v1428_v26 = vld [vmem:[%s1533_s26 + $0x28] sm:$0xff]   ;;  %v1432_v28 = vld [vmem:[%s1533_s26 + $0x30] sm:$0xff]  }
  0x27   : > { %1303 = vmatmul.mubr.msk.bf16.vlgmr.msra.gmra.mxu0 %vm294_vm1, %v1408_v5  ;;  %1307 = vmatmul.mubr.msk.bf16.vlgmr.msra.gmra.mxu1 %vm294_vm1, %v1409_v6  ;;  %v1431_v27 = vld [vmem:[%s1533_s26 + $0x28] sm:$0xff]   ;;  %v1429_v29 = vld [vmem:[%s1533_s26 + $0x30] sm:$0xff]   ;;  %v1433_v30 = vld [vmem:[%s1533_s26 + $0x38] sm:$0xff]  }
  0x28   : > { %1311 = vmatpush3.bf16.msra.mxu1 %v1410_v7  ;;  %1323 = vmatpush3.bf16.msra.mxu0 %v1412_v9  ;;  %v256_v31 = vld [vmem:[#allocation2 + $0x10] sm:$0xff]  ;;  %v254_v35 = vld [vmem:[#allocation2] sm:$0xff]  ;;  %v257_v41 = vld [vmem:[#allocation2 + $0x18] sm:$0xff] }
  0x29   : > { %1312 = vmatprep.subr.bf16.mxu1 %v1411_v8  ;;  %1314 = vmatprep.mubr.msk.bf16.mxu1 %vm294_vm1, %v1413_v10  ;;  %v260_v32 = vld [vmem:[#allocation2 + $0x30] sm:$0xff]  ;;  %v258_v36 = vld [vmem:[#allocation2 + $0x20] sm:$0xff]  ;;  %v261_v42 = vld [vmem:[#allocation2 + $0x38] sm:$0xff] }
  0x2a   : > { %1324 = vmatprep.subr.bf16.mxu0 %v1415_v11  ;;  %1326 = vmatprep.mubr.msk.bf16.mxu0 %vm294_vm1, %v1416_v12  ;;  %v255_v47 = vld [vmem:[#allocation2 + $0x8] sm:$0xff] }
  0x2b   : > { %v259_v48 = vld [vmem:[#allocation2 + $0x28] sm:$0xff] }
  0x2c   : > { %1313 = vmatpush3.bf16.msra.mxu1 %v1411_v8  ;;  %1325 = vmatpush3.bf16.msra.mxu0 %v1415_v11 }
  0x2d   : > { %1334 = vmatprep.subr.bf16.mxu1 %v1417_v13  ;;  %1346 = vmatprep.subr.bf16.mxu0 %v1424_v20 }
  0x2f   : > { %1315 = vmatmul.mubr.msk.bf16.vlgmr.msra.gmra.mxu1 %vm294_vm1, %v1414_v14  ;;  %1327 = vmatmul.mubr.msk.bf16.vlgmr.msra.gmra.mxu0 %vm294_vm1, %v1418_v15 }
  0x30   : > { %1335 = vmatpush3.bf16.msra.mxu1 %v1417_v13  ;;  %1318 = vmatprep.mubr.msk.bf16.mxu1 %vm294_vm1, %v1419_v16 }
  0x31   : > { %1330 = vmatprep.mubr.msk.bf16.mxu0 %vm294_vm1, %v1421_v17  ;;  %1336 = vmatprep.subr.bf16.mxu1 %v1422_v18 }
  0x32   : > { %1347 = vmatpush3.bf16.msra.mxu0 %v1424_v20 }
  0x33   : > { %1348 = vmatprep.subr.bf16.mxu0 %v1427_v23 }
  0x34   : > { %1337 = vmatpush3.bf16.msra.mxu1 %v1422_v18 }
  0x36   : > { %1349 = vmatpush3.bf16.msra.mxu0 %v1427_v23 }
  0x37   : > { %1319 = vmatmul.mubr.msk.bf16.gmra.mxu1 %vm294_vm1, %v1420_v19  ;;  %1331 = vmatmul.mubr.msk.bf16.gmra.mxu0 %vm294_vm1, %v1423_v21 }
  0x38   : > { %1338 = vmatprep.mubr.msk.bf16.mxu1 %vm294_vm1, %v1425_v22  ;;  %1350 = vmatprep.mubr.msk.bf16.mxu0 %vm294_vm1, %v1430_v24 }
  0x3f   : > { %1339 = vmatmul.mubr.msk.bf16.vlgmr.msra.gmra.mxu1 %vm294_vm1, %v1426_v25  ;;  %1351 = vmatmul.mubr.msk.bf16.vlgmr.msra.gmra.mxu0 %vm294_vm1, %v1431_v27 }
  0x40   : > { %1342 = vmatprep.mubr.msk.bf16.mxu1 %vm294_vm1, %v1428_v26  ;;  %1354 = vmatprep.mubr.msk.bf16.mxu0 %vm294_vm1, %v1432_v28 }
  0x47   : > { %1343 = vmatmul.mubr.msk.bf16.gmra.mxu1 %vm294_vm1, %v1429_v29  ;;  %1355 = vmatmul.mubr.msk.bf16.gmra.mxu0 %vm294_vm1, %v1433_v30 }
  0xe7   : > { %v1304_v33 = vpop.f32.mrf.mxu0  ;;  %v1308_v34 = vpop.f32.mrf.mxu1 }
  0xe8   : > { %v374_v37 = vadd.f32 %v1304_v33, %v256_v31  ;;  %v378_v38 = vadd.f32 %v1308_v34, %v260_v32 }
  0xe9   : > { %v341_v39 = vpop.f32.mrf.mxu0  ;;  %v357_v40 = vpop.f32.mrf.mxu1 }
  0xea   : > { %383 = vst.msk [vmem:[#allocation2 + $0x10] sm:$0xff] %vm380_vm2, %v374_v37  ;;  %387 = vst.msk [vmem:[#allocation2 + $0x30] sm:$0xff] %vm380_vm2, %v378_v38  ;;  %v372_v43 = vadd.f32 %v341_v39, %v254_v35  ;;  %v376_v44 = vadd.f32 %v357_v40, %v258_v36 }
  0xeb   : > { %v1305_v45 = vpop.f32.mrf.mxu0  ;;  %v1309_v46 = vpop.f32.mrf.mxu1 }
  0xec   : > { %381 = vst.msk [vmem:[#allocation2] sm:$0xff] %vm380_vm2, %v372_v43  ;;  %385 = vst.msk [vmem:[#allocation2 + $0x20] sm:$0xff] %vm380_vm2, %v376_v44  ;;  %v375_v49 = vadd.f32 %v1305_v45, %v257_v41  ;;  %v379_v50 = vadd.f32 %v1309_v46, %v261_v42 }
  0xed   : > { %v344_v51 = vpop.f32.mrf.mxu0  ;;  %v360_v52 = vpop.f32.mrf.mxu1 }
  0xee   : > { %384 = vst.msk [vmem:[#allocation2 + $0x18] sm:$0xff] %vm380_vm2, %v375_v49  ;;  %388 = vst.msk [vmem:[#allocation2 + $0x38] sm:$0xff] %vm380_vm2, %v379_v50  ;;  %v373_v53 = vadd.f32 %v344_v51, %v255_v47  ;;  %v377_v54 = vadd.f32 %v360_v52, %v259_v48 }
  0xef   : > { %v1316_v55 = vpop.f32.mrf.mxu1  ;;  %v1328_v56 = vpop.f32.mrf.mxu0 }
  0xf0   : > { %382 = vst.msk [vmem:[#allocation2 + $0x8] sm:$0xff] %vm380_vm2, %v373_v53  ;;  %386 = vst.msk [vmem:[#allocation2 + $0x28] sm:$0xff] %vm380_vm2, %v377_v54 }
  0xf1   : > { %v403_v57 = vld [vmem:[#allocation2 + $0x10] sm:$0xff]  ;;  %v487_v58 = vpop.f32.mrf.mxu1  ;;  %v632_v60 = vpop.f32.mrf.mxu0 }
  0xf2   : > { %v520_v59 = vadd.f32 %v1316_v55, %v403_v57  ;;  %v407_v6 = vld [vmem:[#allocation2 + $0x30] sm:$0xff] }
  0xf3   : > { %v401_v61 = vld [vmem:[#allocation2] sm:$0xff]  ;;  %v1317_v62 = vpop.f32.mrf.mxu1  ;;  %v1329_v0 = vpop.f32.mrf.mxu0 }
  0xf4   : > { %528 = vst.msk [vmem:[#allocation2 + $0x10] sm:$0xff] %vm380_vm2, %v520_v59  ;;  %v518_v63 = vadd.f32 %v487_v58, %v401_v61  ;;  %v405_v11 = vld [vmem:[#allocation2 + $0x20] sm:$0xff] }
  0xf5   : > { %v404_v1 = vld [vmem:[#allocation2 + $0x18] sm:$0xff]  ;;  %v490_v2 = vpop.f32.mrf.mxu1  ;;  %v635_v4 = vpop.f32.mrf.mxu0 }
  0xf6   : > { %526 = vst.msk [vmem:[#allocation2] sm:$0xff] %vm380_vm2, %v518_v63  ;;  %v521_v3 = vadd.f32 %v1317_v62, %v404_v1  ;;  %v408_v16 = vld [vmem:[#allocation2 + $0x38] sm:$0xff] }
  0xf7   : > { %v402_v5 = vld [vmem:[#allocation2 + $0x8] sm:$0xff]  ;;  %v1320_v7 = vpop.f32.mrf.mxu1  ;;  %v1332_v10 = vpop.f32.mrf.mxu0 }
  0xf8   : > { %529 = vst.msk [vmem:[#allocation2 + $0x18] sm:$0xff] %vm380_vm2, %v521_v3  ;;  %v519_v8 = vadd.f32 %v490_v2, %v402_v5  ;;  %v524_v9 = vadd.f32 %v1320_v7, %v407_v6  ;;  %v406_v22 = vld [vmem:[#allocation2 + $0x28] sm:$0xff] }
  0xf9   : > { %v503_v12 = vpop.f32.mrf.mxu1  ;;  %v648_v14 = vpop.f32.mrf.mxu0 }
  0xfa   : > { %527 = vst.msk [vmem:[#allocation2 + $0x8] sm:$0xff] %vm380_vm2, %v519_v8  ;;  %532 = vst.msk [vmem:[#allocation2 + $0x30] sm:$0xff] %vm380_vm2, %v524_v9  ;;  %v522_v13 = vadd.f32 %v503_v12, %v405_v11 }
  0xfb   : > { %v548_v15 = vld [vmem:[#allocation2 + $0x10] sm:$0xff]  ;;  %v1321_v17 = vpop.f32.mrf.mxu1  ;;  %v1333_v20 = vpop.f32.mrf.mxu0 }
  0xfc   : > { %v665_v18 = vadd.f32 %v1328_v56, %v548_v15  ;;  %530 = vst.msk [vmem:[#allocation2 + $0x20] sm:$0xff] %vm380_vm2, %v522_v13  ;;  %v525_v19 = vadd.f32 %v1321_v17, %v408_v16 }
  0xfd   : > { %v546_v21 = vld [vmem:[#allocation2] sm:$0xff]  ;;  %v506_v23 = vpop.f32.mrf.mxu1  ;;  %v651_v26 = vpop.f32.mrf.mxu0 }
  0xfe   : > { %673 = vst.msk [vmem:[#allocation2 + $0x10] sm:$0xff] %vm380_vm2, %v665_v18  ;;  %v663_v24 = vadd.f32 %v632_v60, %v546_v21  ;;  %533 = vst.msk [vmem:[#allocation2 + $0x38] sm:$0xff] %vm380_vm2, %v525_v19  ;;  %v523_v25 = vadd.f32 %v506_v23, %v406_v22 }
  0xff   : > { %v549_v27 = vld [vmem:[#allocation2 + $0x18] sm:$0xff]  ;;  %v1340_v28 = vpop.f32.mrf.mxu1  ;;  %v1352_v30 = vpop.f32.mrf.mxu0 }
 0x100   : > { %671 = vst.msk [vmem:[#allocation2] sm:$0xff] %vm380_vm2, %v663_v24  ;;  %v666_v29 = vadd.f32 %v1329_v0, %v549_v27  ;;  %531 = vst.msk [vmem:[#allocation2 + $0x28] sm:$0xff] %vm380_vm2, %v523_v25 }
 0x101   : > { %v547_v31 = vld [vmem:[#allocation2 + $0x8] sm:$0xff]  ;;  %v552_v32 = vld [vmem:[#allocation2 + $0x30] sm:$0xff]  ;;  %v777_v33 = vpop.f32.mrf.mxu1  ;;  %v922_v38 = vpop.f32.mrf.mxu0 }
 0x102   : > { %674 = vst.msk [vmem:[#allocation2 + $0x18] sm:$0xff] %vm380_vm2, %v666_v29  ;;  %v664_v34 = vadd.f32 %v635_v4, %v547_v31  ;;  %v669_v35 = vadd.f32 %v1332_v10, %v552_v32 }
 0x103   : > { %v550_v36 = vld [vmem:[#allocation2 + $0x20] sm:$0xff]  ;;  %v1341_v37 = vpop.f32.mrf.mxu1  ;;  %v1353_v48 = vpop.f32.mrf.mxu0 }
 0x104   : > { %672 = vst.msk [vmem:[#allocation2 + $0x8] sm:$0xff] %vm380_vm2, %v664_v34  ;;  %677 = vst.msk [vmem:[#allocation2 + $0x30] sm:$0xff] %vm380_vm2, %v669_v35  ;;  %v667_v39 = vadd.f32 %v648_v14, %v550_v36 }
 0x105   : > { %v693_v40 = vld [vmem:[#allocation2 + $0x10] sm:$0xff]  ;;  %v553_v41 = vld [vmem:[#allocation2 + $0x38] sm:$0xff]  ;;  %v780_v42 = vpop.f32.mrf.mxu1  ;;  %v925_v56 = vpop.f32.mrf.mxu0 }
 0x106   : > { %675 = vst.msk [vmem:[#allocation2 + $0x20] sm:$0xff] %vm380_vm2, %v667_v39  ;;  %v810_v43 = vadd.f32 %v1340_v28, %v693_v40  ;;  %v670_v44 = vadd.f32 %v1333_v20, %v553_v41 }
 0x107   : > { %v691_v45 = vld [vmem:[#allocation2] sm:$0xff]  ;;  %v551_v46 = vld [vmem:[#allocation2 + $0x28] sm:$0xff]  ;;  %v1344_v47 = vpop.f32.mrf.mxu1  ;;  %v1356_v0 = vpop.f32.mrf.mxu0 }
 0x108   : > { %818 = vst.msk [vmem:[#allocation2 + $0x10] sm:$0xff] %vm380_vm2, %v810_v43  ;;  %678 = vst.msk [vmem:[#allocation2 + $0x38] sm:$0xff] %vm380_vm2, %v670_v44  ;;  %v808_v49 = vadd.f32 %v777_v33, %v691_v45  ;;  %v668_v50 = vadd.f32 %v651_v26, %v551_v46 }
 0x109   : > { %v694_v51 = vld [vmem:[#allocation2 + $0x18] sm:$0xff]  ;;  %v793_v52 = vpop.f32.mrf.mxu1  ;;  %v938_v9 = vpop.f32.mrf.mxu0 }
 0x10a   : > { %816 = vst.msk [vmem:[#allocation2] sm:$0xff] %vm380_vm2, %v808_v49  ;;  %676 = vst.msk [vmem:[#allocation2 + $0x28] sm:$0xff] %vm380_vm2, %v668_v50  ;;  %v811_v53 = vadd.f32 %v1341_v37, %v694_v51 }
 0x10b   : > { %v692_v54 = vld [vmem:[#allocation2 + $0x8] sm:$0xff]  ;;  %v697_v55 = vld [vmem:[#allocation2 + $0x30] sm:$0xff]  ;;  %v1345_v60 = vpop.f32.mrf.mxu1  ;;  %v1357_v16 = vpop.f32.mrf.mxu0 }
 0x10c   : > { %819 = vst.msk [vmem:[#allocation2 + $0x18] sm:$0xff] %vm380_vm2, %v811_v53  ;;  %v809_v57 = vadd.f32 %v780_v42, %v692_v54  ;;  %v814_v58 = vadd.f32 %v1344_v47, %v697_v55 }
 0x10d   : > { %v695_v59 = vld [vmem:[#allocation2 + $0x20] sm:$0xff]  ;;  %v796_v5 = vpop.f32.mrf.mxu1  ;;  %v941_v21 = vpop.f32.mrf.mxu0 }
 0x10e   : > { %817 = vst.msk [vmem:[#allocation2 + $0x8] sm:$0xff] %vm380_vm2, %v809_v57  ;;  %822 = vst.msk [vmem:[#allocation2 + $0x30] sm:$0xff] %vm380_vm2, %v814_v58  ;;  %v812_v61 = vadd.f32 %v793_v52, %v695_v59 }
 0x10f   : > { %v838_v62 = vld [vmem:[#allocation2 + $0x10] sm:$0xff]  ;;  %v698_v63 = vld [vmem:[#allocation2 + $0x38] sm:$0xff] }
 0x110   : > { %v955_v1 = vadd.f32 %v1352_v30, %v838_v62  ;;  %820 = vst.msk [vmem:[#allocation2 + $0x20] sm:$0xff] %vm380_vm2, %v812_v61  ;;  %v815_v2 = vadd.f32 %v1345_v60, %v698_v63 }
 0x111   : > { %v836_v3 = vld [vmem:[#allocation2] sm:$0xff]  ;;  %v696_v4 = vld [vmem:[#allocation2 + $0x28] sm:$0xff] }
 0x112   : > { %963 = vst.msk [vmem:[#allocation2 + $0x10] sm:$0xff] %vm380_vm2, %v955_v1  ;;  %v953_v6 = vadd.f32 %v922_v38, %v836_v3  ;;  %823 = vst.msk [vmem:[#allocation2 + $0x38] sm:$0xff] %vm380_vm2, %v815_v2  ;;  %v813_v7 = vadd.f32 %v796_v5, %v696_v4 }
 0x113   : > { %v839_v8 = vld [vmem:[#allocation2 + $0x18] sm:$0xff] }
 0x114   : > { %961 = vst.msk [vmem:[#allocation2] sm:$0xff] %vm380_vm2, %v953_v6  ;;  %v956_v10 = vadd.f32 %v1353_v48, %v839_v8  ;;  %821 = vst.msk [vmem:[#allocation2 + $0x28] sm:$0xff] %vm380_vm2, %v813_v7 }
 0x115   : > { %v837_v11 = vld [vmem:[#allocation2 + $0x8] sm:$0xff]  ;;  %v842_v12 = vld [vmem:[#allocation2 + $0x30] sm:$0xff] }
 0x116   : > { %964 = vst.msk [vmem:[#allocation2 + $0x18] sm:$0xff] %vm380_vm2, %v956_v10  ;;  %v954_v13 = vadd.f32 %v925_v56, %v837_v11  ;;  %v959_v14 = vadd.f32 %v1356_v0, %v842_v12 }
 0x117   : > { %v840_v15 = vld [vmem:[#allocation2 + $0x20] sm:$0xff] }
 0x118   : > { %962 = vst.msk [vmem:[#allocation2 + $0x8] sm:$0xff] %vm380_vm2, %v954_v13  ;;  %967 = vst.msk [vmem:[#allocation2 + $0x30] sm:$0xff] %vm380_vm2, %v959_v14  ;;  %v957_v17 = vadd.f32 %v938_v9, %v840_v15 }
 0x119   : > { %v843_v18 = vld [vmem:[#allocation2 + $0x38] sm:$0xff] }
 0x11a   : > { %965 = vst.msk [vmem:[#allocation2 + $0x20] sm:$0xff] %vm380_vm2, %v957_v17  ;;  %v960_v19 = vadd.f32 %v1357_v16, %v843_v18  ;;  %972 = sbr.rel (%p1247_p9) target bundleno = 320 (0x140), region = 36 }
 0x11b   : > { %v841_v20 = vld [vmem:[#allocation2 + $0x28] sm:$0xff] }
 0x11c   : > { %968 = vst.msk [vmem:[#allocation2 + $0x38] sm:$0xff] %vm380_vm2, %v960_v19  ;;  %v958_v22 = vadd.f32 %v941_v21, %v841_v20 }
 0x11e   : > { %966 = vst.msk [vmem:[#allocation2 + $0x28] sm:$0xff] %vm380_vm2, %v958_v22 }
 0x11f   : > { %v973_v23 = vld [vmem:[#allocation2] sm:$0xff]  ;;  %vm1013_vm3 = vcmask 125952   ;;  %v974_v24 = vld [vmem:[#allocation2 + $0x8] sm:$0xff]  ;;  %v975_v25 = vld [vmem:[#allocation2 + $0x10] sm:$0xff]  ;;  %vm1072_vm4 = vcmask 1040384   ;;  %vm1074_vm5 = vcmask 123904  }
 0x120   : > { %v1260_v26 = vpack.c.bf16 %v973_v23, %v973_v23  ;;  %v1022_v27 = vsel %vm380_vm2, %v973_v23, 0.0  ;;  %v1043_v28 = vmul.f32 %v973_v23, %v973_v23  ;;  %v1261_v29 = vpack.c.bf16 %v974_v24, %v974_v24  ;;  %v976_v30 = vld [vmem:[#allocation2 + $0x18] sm:$0xff]  ;;  %v979_v48 = vld [vmem:[#allocation2 + $0x30] sm:$0xff] }
 0x121   : > { %v1023_v31 = vsel %vm380_vm2, %v974_v24, 0.0  ;;  %v1044_v32 = vmul.f32 %v974_v24, %v974_v24  ;;  %v1262_v33 = vpack.c.bf16 %v975_v25, %v975_v25  ;;  %v1025_v34 = vsel %vm380_vm2, %v975_v25, 0.0  ;;  %v977_v39 = vld [vmem:[#allocation2 + $0x20] sm:$0xff] }
 0x122   : > { %1014 = vst.msk [vmem:[%s1543_s7] sm:$0xf] %vm1013_vm3, %v1260_v26  ;;  %v1051_v35 = vsel %vm380_vm2, %v1043_v28, 0.0  ;;  %1015 = vst.msk [vmem:[%s1543_s7 + $0x4] sm:$0xf] %vm1013_vm3, %v1261_v29  ;;  %v1024_v36 = vadd.f32 %v1023_v31, %v1022_v27  ;;  %v1045_v37 = vmul.f32 %v975_v25, %v975_v25  ;;  %v1263_v38 = vpack.c.bf16 %v976_v30, %v976_v30 }
 0x123   : > { %v1052_v40 = vsel %vm380_vm2, %v1044_v32, 0.0  ;;  %1016 = vst.msk [vmem:[%s1543_s7 + $0x8] sm:$0xf] %vm1013_vm3, %v1262_v33  ;;  %v1027_v41 = vsel %vm380_vm2, %v976_v30, 0.0  ;;  %v1046_v42 = vmul.f32 %v976_v30, %v976_v30  ;;  %v1264_v43 = vpack.c.bf16 %v977_v39, %v977_v39  ;;  %v980_v57 = vld [vmem:[#allocation2 + $0x38] sm:$0xff] }
 0x124   : > { %v1053_v45 = vadd.f32 %v1052_v40, %v1051_v35  ;;  %v1026_v46 = vadd.f32 %v1025_v34, %v1024_v36  ;;  %v1054_v47 = vsel %vm380_vm2, %v1045_v37, 0.0  ;;  %1017 = vst.msk [vmem:[%s1543_s7 + $0xc] sm:$0xf] %vm1013_vm3, %v1263_v38  ;;  %v1029_v50 = vsel %vm380_vm2, %v977_v39, 0.0 }
 0x125   : > { %v978_v44 = vld [vmem:[#allocation2 + $0x28] sm:$0xff]  ;;  %v1056_v49 = vsel %vm380_vm2, %v1046_v42, 0.0  ;;  %1018 = vst.msk [vmem:[%s1543_s7 + $0x10] sm:$0xf] %vm1013_vm3, %v1264_v43  ;;  %v1047_v51 = vmul.f32 %v977_v39, %v977_v39  ;;  %v1266_v56 = vpack.c.bf16 %v979_v48, %v979_v48  ;;  %v1049_v60 = vmul.f32 %v979_v48, %v979_v48 }
 0x126   : > { %v1265_v52 = vpack.c.bf16 %v978_v44, %v978_v44  ;;  %v1055_v53 = vadd.f32 %v1054_v47, %v1053_v45  ;;  %v1028_v54 = vadd.f32 %v1027_v41, %v1026_v46  ;;  %v1048_v55 = vmul.f32 %v978_v44, %v978_v44 }
 0x127   : > { %v1058_v58 = vsel %vm380_vm2, %v1047_v51, 0.0  ;;  %v1031_v59 = vsel %vm380_vm2, %v978_v44, 0.0  ;;  %v1267_v61 = vpack.c.bf16 %v980_v57, %v980_v57  ;;  %1020 = vst.msk [vmem:[%s1543_s7 + $0x18] sm:$0xf] %vm1013_vm3, %v1266_v56  ;;  %v1033_v1 = vsel %vm380_vm2, %v979_v48, 0.0 }
 0x128   : > { %1019 = vst.msk [vmem:[%s1543_s7 + $0x14] sm:$0xf] %vm1013_vm3, %v1265_v52  ;;  %v1057_v62 = vadd.f32 %v1056_v49, %v1055_v53  ;;  %v1030_v63 = vadd.f32 %v1029_v50, %v1028_v54  ;;  %v1060_v0 = vsel %vm380_vm2, %v1048_v55, 0.0  ;;  %v1050_v2 = vmul.f32 %v980_v57, %v980_v57 }
 0x129   : > { %1021 = vst.msk [vmem:[%s1543_s7 + $0x1c] sm:$0xf] %vm1013_vm3, %v1267_v61  ;;  %v1062_v5 = vsel %vm380_vm2, %v1049_v60, 0.0  ;;  %v1035_v6 = vsel %vm380_vm2, %v980_v57, 0.0 }
 0x12a   : > { %v1059_v3 = vadd.f32 %v1058_v58, %v1057_v62  ;;  %v1032_v4 = vadd.f32 %v1031_v59, %v1030_v63  ;;  %v1064_v9 = vsel %vm380_vm2, %v1050_v2, 0.0 }
 0x12c   : > { %v1061_v7 = vadd.f32 %v1060_v0, %v1059_v3  ;;  %v1034_v8 = vadd.f32 %v1033_v1, %v1032_v4 }
 0x12e   : > { %v1063_v10 = vadd.f32 %v1062_v5, %v1061_v7  ;;  %v1036_v11 = vadd.f32 %v1035_v6, %v1034_v8 }
 0x130   : > { %v1037_v12 = vrot.slane %v1036_v11, 4  ;;  %v1065_v13 = vadd.f32 %v1064_v9, %v1063_v10 }
 0x132   : > { %v1066_v14 = vrot.slane %v1065_v13, 4  ;;  %v1038_v15 = vadd.f32 %v1037_v12, %v1036_v11 }
 0x134   : > { %v1039_v16 = vrot.slane %v1038_v15, 2  ;;  %v1067_v17 = vadd.f32 %v1066_v14, %v1065_v13 }
 0x136   : > { %v1040_v18 = vadd.f32 %v1039_v16, %v1038_v15  ;;  %v1068_v19 = vrot.slane %v1067_v17, 2 }
 0x138   : > { %v1041_v20 = vrot.slane %v1040_v18, 1  ;;  %v1069_v21 = vadd.f32 %v1068_v19, %v1067_v17 }
 0x13a   : > { %v1042_v22 = vadd.f32 %v1041_v20, %v1040_v18  ;;  %v1070_v23 = vrot.slane %v1069_v21, 1 }
 0x13c   : > { %v1071_v24 = vadd.f32 %v1070_v23, %v1069_v21 }
 0x13e   : > { %v1073_v25 = vsel %vm1072_vm4, %v1042_v22, %v1071_v24 }
 0x13f   : > { %1075 = vst.msk [vmem:[%s1548_s10] sm:$0x3] %vm1074_vm5, %v1073_v25 }
 0x140 PF: > { %s14_s16 = sadd.s32 1, %s1472_s16   ;;  %s1694_s12 = smov %s1464_s14 }
 0x141   : > { %p11_p10 = scmp.ge.s32.totalorder %s14_s16, 12   ;;  %s1695_s13 = smov %s1468_s15 }
 0x142   : > { %s1696_s14 = smov %s1699_s17  ;;  %s1697_s15 = smov %s1703_s18 }
 0x143   :  { %13 = sbr.rel (!%p11_p10) target bundleno = 3 (0x3), region = 81 }

// kernel: _lambda_.13
= control target key start
LH: loop header
LB: loop body
LE: loop exit
PB: predicated region body
PF: predicated region fallthrough
CT: control target
= control target key end

     0   :  { %s510_s18 = smov 0   ;;  %s555_s0 = inlined_call_operand.vmem [shape: bf16[2,16,20], index: 0, kind: input, shape index: {}]   ;;  %s556_s1 = inlined_call_operand.vmem [shape: f32[1,1,20], index: 1, kind: input, shape index: {}]   ;;  %s557_s2 = inlined_call_operand.vmem [shape: f32[1,1,20], index: 2, kind: input, shape index: {}]   ;;  %s558_s3 = inlined_call_operand.vmem [shape: f32[2,16,20], index: 3, kind: output, shape index: {0}]   ;;  %s559_s4 = inlined_call_operand.vmem [shape: f32[2,1,16], index: 4, kind: output, shape index: {1}]   ;;  %s560_s5 = inlined_call_operand.vmem [shape: f32[2,1,16], index: 5, kind: output, shape index: {2}]  }
   0x1 LB: > { %s437_s19 = sadd.s32 4294967295, %s478_s18   ;;  %p441_p0 = scmp.ge.s32.totalorder %s478_s18, 1  ;;  %s478_s18 = sphi %s510_s18, %s16_s18  }
   0x2   : > { %p192_p1 = scmp.lt.s32.totalorder %s478_s18, 3 }
   0x4   : > { %p193_p2 = pnand %p441_p0, %p192_p1 }
   0x5   : > { %p226_p3 = scmp.lt.s32.totalorder (!%p193_p2), %s437_s19, 1 }
   0x6   : > { %196 = sbr.rel (%p193_p2) target bundleno = 482 (0x1e2), region = 32 }
   0xb   : > { %s562_s19 = smov (!%p226_p3, %s437_s19), 1  ;;  %vm246_vm0 = vcmask 162816   ;;  %v446_v18 = vld [vmem:[%s556_s1] ss:$0 sm:$0xff]  ;;  %v288_v31 = vlaneseq  ;;  %vm299_vm1 = vcmask 130112   ;;  %vm302_vm2 = vcmask 122880  }
   0xc   : > { %s450_s20 = sshll.u32 %s562_s19, 3  ;;  %s451_s24 = sshll.u32 %s562_s19, 4  ;;  %v447_v20 = vld [vmem:[%s557_s2] ss:$0 sm:$0xff] }
   0xd   : > { %s230_s23 = scalar_lea.vmem %s555_s0, %s450_s20  ;;  %s235_s27 = scalar_lea.vmem %s558_s3, %s451_s24  ;;  %v289_v32 = vand.u32 127, %v288_v31  ;;  %v291_v33 = vshrl.u32 %v288_v31, 7 }
   0xe   : > { %v453_v0 = vld [vmem:[%s230_s23] sm:$0xff]   ;;  %s238_s9 = scalar_lea.vmem %s559_s4, %s562_s19  ;;  %s241_s12 = scalar_lea.vmem %s560_s5, %s562_s19 }
   0xf   : > { %v454_v1 = vunpack.c.l.bf16 %v453_v0  ;;  %v455_v2 = vunpack.c.h.bf16 %v453_v0  ;;  %v294_v34 = vadd.s32 4294967288, %v289_v32  ;;  %v292_v36 = vsub.s32 %v289_v32, %v291_v33 }
  0x11   : > { %v247_v3 = vsel %vm246_vm0, %v454_v1, -inf  ;;  %v250_v4 = vsel %vm246_vm0, %v455_v2, -inf  ;;  %v297_v37 = vsub.s32 %v294_v34, %v291_v33 }
  0x12   : > { %248 = vmax.xlane.f32.xlu0 %v247_v3 }
  0x16   : > { %251 = vmax.xlane.f32.xlu0 %v250_v4 }
  0x9b   : > { %v249_v5 = vpop.xlane.xlu0 %248 }
  0x9c   : > { %v253_v6 = vsub.f32 %v454_v1, %v249_v5 }
  0x9e   : > { %v255_v7 = vmul.f32 1.442695, %v253_v6 }
  0x9f   : > { %v252_v8 = vpop.xlane.xlu0 %251 }
  0xa0   : > { %464 = vpow2.f32 %v255_v7  ;;  %v254_v9 = vsub.f32 %v455_v2, %v252_v8 }
  0xa2   : > { %v257_v10 = vmul.f32 1.442695, %v254_v9 }
  0xa4   : > { %466 = vpow2.f32 %v257_v10 }
  0xad   : > { %v465_v11 = vpop.eup %464 }
  0xae   : > { %v259_v12 = vsel %vm246_vm0, %v465_v11, 0.0 }
  0xaf   : > { %260 = vadd.xlane.f32.xlu1 %v259_v12 }
  0xb1   : > { %v467_v13 = vpop.eup %466 }
  0xb2   : > { %v262_v14 = vsel %vm246_vm0, %v467_v13, 0.0 }
  0xb3   : > { %263 = vadd.xlane.f32.xlu1 %v262_v14 }
 0x138   : > { %v261_v15 = vpop.xlane.xlu1 %260 }
 0x139   : > { %468 = vrcp.f32 %v261_v15 }
 0x13c   : > { %v264_v16 = vpop.xlane.xlu1 %263 }
 0x13d   : > { %470 = vrcp.f32 %v264_v16 }
 0x146   : > { %v469_v17 = vpop.eup %468 }
 0x147   : > { %v267_v19 = vmul.f32 %v469_v17, %v465_v11 }
 0x149   : > { %v278_v21 = vmul.f32 %v446_v18, %v267_v19  ;;  %269 = vst.msk [vmem:[%s235_s27] sm:$0xff] %vm246_vm0, %v267_v19  ;;  %v311_v24 = vmul.f32 %v447_v20, %v267_v19 }
 0x14a   : > { %v471_v22 = vpop.eup %470 }
 0x14b   : > { %v280_v23 = vsel %vm246_vm0, %v278_v21, 0.0  ;;  %v268_v25 = vmul.f32 %v471_v22, %v467_v13  ;;  %v313_v27 = vsel %vm246_vm0, %v311_v24, 0.0 }
 0x14c   : > { %281 = vadd.xlane.f32.xlu0 %v280_v23 }
 0x14d   : > { %v279_v26 = vmul.f32 %v446_v18, %v268_v25  ;;  %270 = vst.msk [vmem:[%s235_s27 + $0x8] sm:$0xff] %vm246_vm0, %v268_v25  ;;  %v312_v29 = vmul.f32 %v447_v20, %v268_v25 }
 0x14f   : > { %v283_v28 = vsel %vm246_vm0, %v279_v26, 0.0  ;;  %v316_v30 = vsel %vm246_vm0, %v312_v29, 0.0 }
 0x150   : > { %314 = vadd.xlane.f32.xlu0 %v313_v27  ;;  %284 = vadd.xlane.f32.xlu1 %v283_v28 }
 0x154   : > { %317 = vadd.xlane.f32.xlu1 %v316_v30 }
 0x1d5   : > { %v282_v35 = vpop.xlane.xlu0 %281 }
 0x1d6   : > { %v293_v39 = vrot.slane %v282_v35, %v292_v36 }
 0x1d9   : > { %v285_v38 = vpop.xlane.xlu1 %284  ;;  %v315_v41 = vpop.xlane.xlu0 %314 }
 0x1da   : > { %v298_v40 = vrot.slane %v285_v38, %v297_v37  ;;  %v324_v44 = vrot.slane %v315_v41, %v292_v36 }
 0x1dc   : > { %v300_v42 = vsel %vm299_vm1, %v298_v40, %v293_v39 }
 0x1dd   : > { %303 = vst.msk [vmem:[%s238_s9] sm:$0x1] %vm302_vm2, %v300_v42  ;;  %v318_v43 = vpop.xlane.xlu1 %317 }
 0x1de   : > { %v328_v45 = vrot.slane %v318_v43, %v297_v37 }
 0x1e0   : > { %v329_v46 = vsel %vm299_vm1, %v328_v45, %v324_v44 }
 0x1e1   : > { %331 = vst.msk [vmem:[%s241_s12] sm:$0x1] %vm302_vm2, %v329_v46 }
 0x1e2 PF: > { %s16_s18 = sadd.s32 1, %s478_s18  }
 0x1e3   : > { %p13_p4 = scmp.ge.s32.totalorder %s16_s18, 4  }
 0x1e5   :  { %15 = sbr.rel (!%p13_p4) target bundleno = 1 (0x1), region = 86 }

</bundles_post_ra>
